<compile_context>
chip_gen: v7x
topology: tpu7x:2x2x1
jax: 0.10.0
libtpu: 0.0.40
codegen_flags: <defaults>
</compile_context>

<pallas_src>
import functools

import jax
import jax.numpy as jnp
from jax.experimental import pallas as pl
from jax.experimental.pallas import tpu as pltpu

LANE = 128
VMEM_LIMIT_BYTES = 48 * 1024 * 1024  # <= v7x 64 MiB physical; fine on v5e/v6e


# ---------------------------------------------------------------------------
# Kernels
# ---------------------------------------------------------------------------
def _linear_kernel(x_ref, w_ref, o_ref):
    """o = X_tile @ W (bf16 MXU inputs, f32 accumulate, bf16 store)."""
    o_ref[...] = jnp.dot(
        x_ref[...], w_ref[...], preferred_element_type=jnp.float32
    ).astype(o_ref.dtype)


def _epilogue(acc_f32, b_ref, w2_ref, o_ref, apply_relu):
    """bias add (+ReLU) in f32 on the VPU, optional fused  h_bf16 @ W2  on the
    MXU, lane-dense store."""
    out = acc_f32 + b_ref[...]
    if apply_relu:
        out = jnp.maximum(out, 0.0)
    if w2_ref is not None:
        out = jnp.dot(
            out.astype(jnp.bfloat16), w2_ref[...],
            preferred_element_type=jnp.float32,
        )
    o_ref[...] = out.astype(o_ref.dtype)


def _aggregate_kernel(*refs, apply_relu, fuse_w2, multi_k):
    """out = A @ XW + b (+ReLU) [optionally (...) @ W2 fused in the epilogue].

    multi_k=True : grid (rows, K); f32 VMEM accumulator, init at k==0,
                   epilogue + store at k==last.
    multi_k=False: single contraction step; no scratch, no predicates.
    """
    if fuse_w2:
        a_ref, xw_ref, b_ref, w2_ref = refs[:4]
        refs = refs[4:]
    else:
        a_ref, xw_ref, b_ref = refs[:3]
        w2_ref = None
        refs = refs[3:]

    if multi_k:
        o_ref, acc_ref = refs
        k = pl.program_id(1)

        @pl.when(k == 0)
        def _():
            acc_ref[...] = jnp.zeros_like(acc_ref)

        acc_ref[...] += jnp.dot(
            a_ref[...], xw_ref[...], preferred_element_type=jnp.float32
        )

        @pl.when(k == pl.num_programs(1) - 1)
        def _():
            _epilogue(acc_ref[...], b_ref, w2_ref, o_ref, apply_relu)
    else:
        (o_ref,) = refs
        acc = jnp.dot(a_ref[...], xw_ref[...], preferred_element_type=jnp.float32)
        _epilogue(acc, b_ref, w2_ref, o_ref, apply_relu)


# ---------------------------------------------------------------------------
# Tiling / padding helpers
# ---------------------------------------------------------------------------
def _round_up(v, m):
    return -(-v // m) * m


def _choose_tiles(n, tm_want=512, tk_want=4096):
    """Return (n_pad, tm, tk): 128-aligned tiles dividing the padded node dim.

    tm is capped at n_pad/2 so the 'parallel' row axis has >= 2 blocks
    (keeps both v7x TensorCores busy); tk is the largest 128-multiple divisor
    of n_pad not exceeding tk_want (tk == n_pad => single-K specialization).
    """
    n128 = _round_up(n, 128)
    tm = min(tm_want, max(128, n128 // 2))
    tm -= tm % 128
    tm = max(tm, 128)
    n_pad = _round_up(n, tm)
    if n_pad // tm < 2:          # tiny graphs: single row block is unavoidable
        n_pad = n128
        tm = n_pad
    if n_pad <= tk_want:
        tk = n_pad
    else:
        tk = tk_want - tk_want % 128
        while n_pad % tk != 0:
            tk -= 128
    return n_pad, tm, tk


# ---------------------------------------------------------------------------
# Pallas-call wrappers
# ---------------------------------------------------------------------------
def linear(x_bf16, w_bf16, *, tm):
    """XW = X @ W, computed once (output bf16, lane-dense width)."""
    n, f = x_bf16.shape
    hp = w_bf16.shape[1]
    return pl.pallas_call(
        _linear_kernel,
        out_shape=jax.ShapeDtypeStruct((n, hp), jnp.bfloat16),
        grid_spec=pltpu.PrefetchScalarGridSpec(
            num_scalar_prefetch=0,
            grid=(n // tm,),
            in_specs=[
                pl.BlockSpec((tm, f), lambda i: (i, 0)),
                pl.BlockSpec((f, hp), lambda i: (0, 0)),
            ],
            out_specs=pl.BlockSpec((tm, hp), lambda i: (i, 0)),
        ),
        compiler_params=pltpu.CompilerParams(
            dimension_semantics=("parallel",),
            vmem_limit_bytes=VMEM_LIMIT_BYTES,
        ),
    )(x_bf16, w_bf16)


def aggregate(a_bf16, xw_bf16, b, *, w2=None, apply_relu, out_dtype, tm, tk):
    """out = A @ XW + b (+ReLU) [optionally fused @ W2].  K-tiled streaming
    contraction, f32 VMEM accumulator, or single-K specialization."""
    n_pad = a_bf16.shape[0]
    hp = xw_bf16.shape[1]
    out_w = w2.shape[1] if w2 is not None else hp
    multi_k = tk < n_pad
    kernel = functools.partial(
        _aggregate_kernel, apply_relu=apply_relu,
        fuse_w2=w2 is not None, multi_k=multi_k,
    )
    # NOTE: constant-index-map blocks (bias, W2, XW in the single-K case) could
    # be single-buffered via pipeline_mode=pl.Buffered(1) to shave VMEM; not
    # needed at this footprint (~11 MiB worst case vs 48 MiB limit).
    if multi_k:
        grid = (n_pad // tm, n_pad // tk)
        in_specs = [
            pl.BlockSpec((tm, tk), lambda i, k: (i, k)),    # adjacency tile
            pl.BlockSpec((tk, hp), lambda i, k: (k, 0)),    # XW K-slice
            pl.BlockSpec((1, hp), lambda i, k: (0, 0)),     # bias
        ]
        if w2 is not None:
            in_specs.append(pl.BlockSpec((hp, out_w), lambda i, k: (0, 0)))
        out_specs = pl.BlockSpec((tm, out_w), lambda i, k: (i, 0))
        scratch = [pltpu.VMEM((tm, hp), jnp.float32)]
        dims = ("parallel", "arbitrary")
    else:
        grid = (n_pad // tm,)
        in_specs = [
            pl.BlockSpec((tm, n_pad), lambda i: (i, 0)),    # adjacency rows
            pl.BlockSpec((n_pad, hp), lambda i: (0, 0)),    # whole XW (resident)
            pl.BlockSpec((1, hp), lambda i: (0, 0)),        # bias
        ]
        if w2 is not None:
            in_specs.append(pl.BlockSpec((hp, out_w), lambda i: (0, 0)))
        out_specs = pl.BlockSpec((tm, out_w), lambda i: (i, 0))
        scratch = []
        dims = ("parallel",)

    args = [a_bf16, xw_bf16, b] + ([w2] if w2 is not None else [])
    return pl.pallas_call(
        kernel,
        out_shape=jax.ShapeDtypeStruct((n_pad, out_w), out_dtype),
        grid_spec=pltpu.PrefetchScalarGridSpec(
            num_scalar_prefetch=0,
            grid=grid,
            in_specs=in_specs,
            out_specs=out_specs,
            scratch_shapes=scratch,
        ),
        compiler_params=pltpu.CompilerParams(
            dimension_semantics=dims,
            vmem_limit_bytes=VMEM_LIMIT_BYTES,
        ),
    )(*args)


def gcn_forward(x, a_norm_bf16, params, *, num_classes, tm_want=512, tk_want=4096):
    """conv1 -> ReLU -> conv2, matching the PyTorch module's forward.

    Three pallas_calls total:
      1) XW1 = x @ W1
      2) XW2 = relu(A @ XW1 + b1) @ W2      (layer-2 linear fused in epilogue)
      3) out = A @ XW2 + b2
    """
    w1p, b1p, w2p, b2p = params              # W bf16, b f32 (lane-padded)
    n = x.shape[0]
    n_pad, tm, tk = _choose_tiles(n, tm_want, tk_want)
    pad = n_pad - n
    if pad:
        a = jnp.pad(a_norm_bf16, ((0, pad), (0, pad)))
        xp = jnp.pad(x, ((0, pad), (0, 0)))
    else:
        a, xp = a_norm_bf16, x

    xw1 = linear(xp.astype(jnp.bfloat16), w1p, tm=tm)              # (Np, Hp) bf16
    xw2 = aggregate(a, xw1, b1p, w2=w2p, apply_relu=True,
                    out_dtype=jnp.bfloat16, tm=tm, tk=tk)          # (Np, Cp) bf16
    out = aggregate(a, xw2, b2p, apply_relu=False,
                    out_dtype=jnp.float32, tm=tm, tk=tk)           # (Np, Cp) f32
    return out[:n, :num_classes]


# ---------------------------------------------------------------------------
# Glue: dense normalized adjacency, parameter padding, reference
# ---------------------------------------------------------------------------
def build_normalized_adjacency(edge_index, num_nodes):
    """Dense D^-1/2 (A+I) D^-1/2, returned directly in bf16 (cast fused into
    the final scaling — no separate O(N^2) cast pass).

    Matches PyG gcn_norm defaults (add_remaining_self_loops: self-loop added
    only where the diagonal is zero, improved=False).  Plain-JAX glue.
    """
    src, dst = edge_index[0], edge_index[1]
    adj = jnp.zeros((num_nodes, num_nodes), jnp.float32)
    adj = adj.at[dst, src].add(1.0)              # message j -> i into row i
    diag = jnp.diagonal(adj)
    adj = adj + jnp.diag(jnp.where(diag == 0, 1.0, 0.0))
    deg = adj.sum(axis=1)
    dinv_sqrt = jnp.where(deg > 0, 1.0 / jnp.sqrt(deg), 0.0)
    return (dinv_sqrt[:, None] * adj * dinv_sqrt[None, :]).astype(jnp.bfloat16)


def pad_params(w1, b1, w2, b2):
    """Zero-pad hidden / class dims to 128 lanes; weights pre-cast to bf16."""
    h_p = _round_up(w1.shape[1], LANE)
    c_p = _round_up(w2.shape[1], LANE)
    w1p = jnp.pad(w1, ((0, 0), (0, h_p - w1.shape[1]))).astype(jnp.bfloat16)
    b1p = jnp.pad(b1, ((0, 0), (0, h_p - b1.shape[1])))
    w2p = jnp.pad(w2, ((0, h_p - w2.shape[0]), (0, c_p - w2.shape[1]))).astype(
        jnp.bfloat16)
    b2p = jnp.pad(b2, ((0, 0), (0, c_p - b2.shape[1])))
    return (w1p, b1p, w2p, b2p)


def reference_forward(x, a_norm, params, num_classes):
    """Pure-JAX reference with matching bf16 MXU-input semantics."""
    w1p, b1p, w2p, b2p = params
    f32, bf = jnp.float32, jnp.bfloat16
    hi = jax.lax.Precision.HIGHEST

    def as_bf(v):
        return v.astype(bf).astype(f32)

    a = as_bf(a_norm)
    xw1 = jnp.dot(as_bf(x), as_bf(w1p), precision=hi).astype(bf).astype(f32)
    h = jnp.maximum(jnp.dot(a, xw1, precision=hi) + b1p, 0.0)
    xw2 = jnp.dot(as_bf(h), as_bf(w2p), precision=hi).astype(bf).astype(f32)
    out = jnp.dot(a, xw2, precision=hi) + b2p
    return out[:, :num_classes]


def glorot(key, shape):
    fan_in, fan_out = shape
    limit = jnp.sqrt(6.0 / (fan_in + fan_out))
    return jax.random.uniform(key, shape, jnp.float32, -limit, limit)


# ---------------------------------------------------------------------------
if __name__ == "__main__":
    # Deterministic synthetic problem consistent with the module:
    #   dataset.num_node_features = 32, hidden = 16, dataset.num_classes = 8
    N = 1024          # nodes: tm=512 -> 2 parallel row blocks, tk=N -> single-K path
    F_IN = 32
    HIDDEN = 16
    NUM_CLASSES = 8
    NUM_EDGES = 4096

    key = jax.random.PRNGKey(0)
    kx, ke1, ke2, kw1, kw2 = jax.random.split(key, 5)

    x = jax.random.normal(kx, (N, F_IN), jnp.float32)
    src = jax.random.randint(ke1, (NUM_EDGES,), 0, N)
    dst = jax.random.randint(ke2, (NUM_EDGES,), 0, N)
    edge_index = jnp.stack([src, dst], axis=0)        # [2, E], like data.edge_index

    a_norm = build_normalized_adjacency(edge_index, N)   # bf16

    # GCNConv params: glorot weights, zero bias (deterministic), lane-padded.
    w1 = glorot(kw1, (F_IN, HIDDEN))
    b1 = jnp.zeros((1, HIDDEN), jnp.float32)
    w2 = glorot(kw2, (HIDDEN, NUM_CLASSES))
    b2 = jnp.zeros((1, NUM_CLASSES), jnp.float32)
    params = pad_params(w1, b1, w2, b2)

    fwd = jax.jit(functools.partial(gcn_forward, num_classes=NUM_CLASSES))
    out = jax.block_until_ready(fwd(x, a_norm, params))

    ref = reference_forward(x, a_norm, params, NUM_CLASSES)
    assert out.shape == (N, NUM_CLASSES)
    max_err = float(jnp.max(jnp.abs(out - ref)))
    assert jnp.allclose(out, ref, atol=1e-2, rtol=1e-2), max_err

    print("KERNEL_OK")
</pallas_src>

<mosaic_0001>
module attributes {stable_mosaic.version = 11 : i64} {
  func.func @_linear_kernel(%arg0: i32, %arg1: memref<512x32xbf16, #tpu.memory_space<vmem>>, %arg2: memref<32x128xbf16, #tpu.memory_space<vmem>>, %arg3: memref<512x128xbf16, #tpu.memory_space<vmem>>) attributes {dimension_semantics = [#tpu.dimension_semantics<parallel>], iteration_bounds = array<i64: 2>, scalar_prefetch = 0 : i64, scratch_operands = 0 : i64, tpu.core_type = #tpu.core_type<tc>, window_params = [{transform_indices = @transform_0, window_bounds = array<i64: 512, 32>}, {pipeline_mode = #tpu.pipeline_mode<synchronous>, transform_indices = @transform_1, window_bounds = array<i64: 32, 128>}, {transform_indices = @transform_2, window_bounds = array<i64: 512, 128>}]} {
    %c0 = arith.constant 0 : index
    %c0_0 = arith.constant 0 : index
    %0 = vector.load %arg1[%c0, %c0_0] : memref<512x32xbf16, #tpu.memory_space<vmem>>, vector<512x32xbf16>
    %c0_1 = arith.constant 0 : index
    %c0_2 = arith.constant 0 : index
    %1 = vector.load %arg2[%c0_1, %c0_2] : memref<32x128xbf16, #tpu.memory_space<vmem>>, vector<32x128xbf16>
    %cst = arith.constant dense<0.000000e+00> : vector<512x128xf32>
    %2 = tpu.matmul %0, %1, %cst {dimension_numbers = #tpu.dot_dimension_numbers<[1], [0], [0], [1], [0, 0, 1, 1], [], []>} : vector<512x32xbf16>, vector<32x128xbf16>, vector<512x128xf32> -> vector<512x128xf32>
    %3 = arith.truncf %2 : vector<512x128xf32> to vector<512x128xbf16>
    %c0_3 = arith.constant 0 : index
    %c0_4 = arith.constant 0 : index
    %4 = vector.load %arg3[%c0_3, %c0_4] : memref<512x128xbf16, #tpu.memory_space<vmem>>, vector<512x128xbf16>
    tpu.vector_store %arg3[%c0_3, %c0_4], %3 {strides = array<i32>} : memref<512x128xbf16, #tpu.memory_space<vmem>>, vector<512x128xbf16>,
    return
  }
  func.func @transform_0(%arg0: i32) -> (i32, i32) {
    %c0_i32 = arith.constant 0 : i32
    %c0_i32_0 = arith.constant 0 : i32
    return %arg0, %c0_i32 : i32, i32
  }
  func.func @transform_1(%arg0: i32) -> (i32, i32) {
    %c0_i32 = arith.constant 0 : i32
    %c0_i32_0 = arith.constant 0 : i32
    %c0_i32_1 = arith.constant 0 : i32
    return %c0_i32, %c0_i32_0 : i32, i32
  }
  func.func @transform_2(%arg0: i32) -> (i32, i32) {
    %c0_i32 = arith.constant 0 : i32
    %c0_i32_0 = arith.constant 0 : i32
    return %arg0, %c0_i32 : i32, i32
  }
}

module attributes {stable_mosaic.version = 11 : i64} {
  func.func @_aggregate_kernel(%arg0: i32, %arg1: memref<512x1024xbf16, #tpu.memory_space<vmem>>, %arg2: memref<1024x128xbf16, #tpu.memory_space<vmem>>, %arg3: memref<1x128xf32, #tpu.memory_space<vmem>>, %arg4: memref<128x128xbf16, #tpu.memory_space<vmem>>, %arg5: memref<512x128xbf16, #tpu.memory_space<vmem>>) attributes {dimension_semantics = [#tpu.dimension_semantics<parallel>], iteration_bounds = array<i64: 2>, scalar_prefetch = 0 : i64, scratch_operands = 0 : i64, tpu.core_type = #tpu.core_type<tc>, window_params = [{transform_indices = @transform_0, window_bounds = array<i64: 512, 1024>}, {pipeline_mode = #tpu.pipeline_mode<synchronous>, transform_indices = @transform_1, window_bounds = array<i64: 1024, 128>}, {pipeline_mode = #tpu.pipeline_mode<synchronous>, transform_indices = @transform_2, window_bounds = array<i64: 1, 128>}, {pipeline_mode = #tpu.pipeline_mode<synchronous>, transform_indices = @transform_3, window_bounds = array<i64: 128, 128>}, {transform_indices = @transform_4, window_bounds = array<i64: 512, 128>}]} {
    %c0 = arith.constant 0 : index
    %c0_0 = arith.constant 0 : index
    %0 = vector.load %arg1[%c0, %c0_0] : memref<512x1024xbf16, #tpu.memory_space<vmem>>, vector<512x1024xbf16>
    %c0_1 = arith.constant 0 : index
    %c0_2 = arith.constant 0 : index
    %1 = vector.load %arg2[%c0_1, %c0_2] : memref<1024x128xbf16, #tpu.memory_space<vmem>>, vector<1024x128xbf16>
    %cst = arith.constant dense<0.000000e+00> : vector<512x128xf32>
    %2 = tpu.matmul %0, %1, %cst {dimension_numbers = #tpu.dot_dimension_numbers<[1], [0], [0], [1], [0, 0, 1, 1], [], []>} : vector<512x1024xbf16>, vector<1024x128xbf16>, vector<512x128xf32> -> vector<512x128xf32>
    %c0_3 = arith.constant 0 : index
    %c0_4 = arith.constant 0 : index
    %3 = vector.load %arg3[%c0_3, %c0_4] : memref<1x128xf32, #tpu.memory_space<vmem>>, vector<1x128xf32>
    %4 = vector.broadcast %3 : vector<1x128xf32> to vector<512x128xf32>
    %5 = arith.addf %2, %4 : vector<512x128xf32>
    %cst_5 = arith.constant 0.000000e+00 : f32
    %6 = vector.broadcast %cst_5 : f32 to vector<512x128xf32>
    %7 = arith.maximumf %5, %6 : vector<512x128xf32>
    %8 = arith.truncf %7 : vector<512x128xf32> to vector<512x128xbf16>
    %c0_6 = arith.constant 0 : index
    %c0_7 = arith.constant 0 : index
    %9 = vector.load %arg4[%c0_6, %c0_7] : memref<128x128xbf16, #tpu.memory_space<vmem>>, vector<128x128xbf16>
    %cst_8 = arith.constant dense<0.000000e+00> : vector<512x128xf32>
    %10 = tpu.matmul %8, %9, %cst_8 {dimension_numbers = #tpu.dot_dimension_numbers<[1], [0], [0], [1], [0, 0, 1, 1], [], []>} : vector<512x128xbf16>, vector<128x128xbf16>, vector<512x128xf32> -> vector<512x128xf32>
    %11 = arith.truncf %10 : vector<512x128xf32> to vector<512x128xbf16>
    %c0_9 = arith.constant 0 : index
    %c0_10 = arith.constant 0 : index
    %12 = vector.load %arg5[%c0_9, %c0_10] : memref<512x128xbf16, #tpu.memory_space<vmem>>, vector<512x128xbf16>
    tpu.vector_store %arg5[%c0_9, %c0_10], %11 {strides = array<i32>} : memref<512x128xbf16, #tpu.memory_space<vmem>>, vector<512x128xbf16>,
    return
  }
  func.func @transform_0(%arg0: i32) -> (i32, i32) {
    %c0_i32 = arith.constant 0 : i32
    %c0_i32_0 = arith.constant 0 : i32
    return %arg0, %c0_i32 : i32, i32
  }
  func.func @transform_1(%arg0: i32) -> (i32, i32) {
    %c0_i32 = arith.constant 0 : i32
    %c0_i32_0 = arith.constant 0 : i32
    %c0_i32_1 = arith.constant 0 : i32
    return %c0_i32, %c0_i32_0 : i32, i32
  }
  func.func @transform_2(%arg0: i32) -> (i32, i32) {
    %c0_i32 = arith.constant 0 : i32
    %c0_i32_0 = arith.constant 0 : i32
    %c0_i32_1 = arith.constant 0 : i32
    return %c0_i32, %c0_i32_0 : i32, i32
  }
  func.func @transform_3(%arg0: i32) -> (i32, i32) {
    %c0_i32 = arith.constant 0 : i32
    %c0_i32_0 = arith.constant 0 : i32
    %c0_i32_1 = arith.constant 0 : i32
    return %c0_i32, %c0_i32_0 : i32, i32
  }
  func.func @transform_4(%arg0: i32) -> (i32, i32) {
    %c0_i32 = arith.constant 0 : i32
    %c0_i32_0 = arith.constant 0 : i32
    return %arg0, %c0_i32 : i32, i32
  }
}

module attributes {stable_mosaic.version = 11 : i64} {
  func.func @_aggregate_kernel(%arg0: i32, %arg1: memref<512x1024xbf16, #tpu.memory_space<vmem>>, %arg2: memref<1024x128xbf16, #tpu.memory_space<vmem>>, %arg3: memref<1x128xf32, #tpu.memory_space<vmem>>, %arg4: memref<512x128xf32, #tpu.memory_space<vmem>>) attributes {dimension_semantics = [#tpu.dimension_semantics<parallel>], iteration_bounds = array<i64: 2>, scalar_prefetch = 0 : i64, scratch_operands = 0 : i64, tpu.core_type = #tpu.core_type<tc>, window_params = [{transform_indices = @transform_0, window_bounds = array<i64: 512, 1024>}, {pipeline_mode = #tpu.pipeline_mode<synchronous>, transform_indices = @transform_1, window_bounds = array<i64: 1024, 128>}, {pipeline_mode = #tpu.pipeline_mode<synchronous>, transform_indices = @transform_2, window_bounds = array<i64: 1, 128>}, {transform_indices = @transform_3, window_bounds = array<i64: 512, 128>}]} {
    %c0 = arith.constant 0 : index
    %c0_0 = arith.constant 0 : index
    %0 = vector.load %arg1[%c0, %c0_0] : memref<512x1024xbf16, #tpu.memory_space<vmem>>, vector<512x1024xbf16>
    %c0_1 = arith.constant 0 : index
    %c0_2 = arith.constant 0 : index
    %1 = vector.load %arg2[%c0_1, %c0_2] : memref<1024x128xbf16, #tpu.memory_space<vmem>>, vector<1024x128xbf16>
    %cst = arith.constant dense<0.000000e+00> : vector<512x128xf32>
    %2 = tpu.matmul %0, %1, %cst {dimension_numbers = #tpu.dot_dimension_numbers<[1], [0], [0], [1], [0, 0, 1, 1], [], []>} : vector<512x1024xbf16>, vector<1024x128xbf16>, vector<512x128xf32> -> vector<512x128xf32>
    %c0_3 = arith.constant 0 : index
    %c0_4 = arith.constant 0 : index
    %3 = vector.load %arg3[%c0_3, %c0_4] : memref<1x128xf32, #tpu.memory_space<vmem>>, vector<1x128xf32>
    %4 = vector.broadcast %3 : vector<1x128xf32> to vector<512x128xf32>
    %5 = arith.addf %2, %4 : vector<512x128xf32>
    %c0_5 = arith.constant 0 : index
    %c0_6 = arith.constant 0 : index
    %6 = vector.load %arg4[%c0_5, %c0_6] : memref<512x128xf32, #tpu.memory_space<vmem>>, vector<512x128xf32>
    tpu.vector_store %arg4[%c0_5, %c0_6], %5 {strides = array<i32>} : memref<512x128xf32, #tpu.memory_space<vmem>>, vector<512x128xf32>,
    return
  }
  func.func @transform_0(%arg0: i32) -> (i32, i32) {
    %c0_i32 = arith.constant 0 : i32
    %c0_i32_0 = arith.constant 0 : i32
    return %arg0, %c0_i32 : i32, i32
  }
  func.func @transform_1(%arg0: i32) -> (i32, i32) {
    %c0_i32 = arith.constant 0 : i32
    %c0_i32_0 = arith.constant 0 : i32
    %c0_i32_1 = arith.constant 0 : i32
    return %c0_i32, %c0_i32_0 : i32, i32
  }
  func.func @transform_2(%arg0: i32) -> (i32, i32) {
    %c0_i32 = arith.constant 0 : i32
    %c0_i32_0 = arith.constant 0 : i32
    %c0_i32_1 = arith.constant 0 : i32
    return %c0_i32, %c0_i32_0 : i32, i32
  }
  func.func @transform_3(%arg0: i32) -> (i32, i32) {
    %c0_i32 = arith.constant 0 : i32
    %c0_i32_0 = arith.constant 0 : i32
    return %arg0, %c0_i32 : i32, i32
  }
}

</mosaic_0001>

<bundles_post_ra>
// kernel: gcn_forward.3
= control target key start
LH: loop header
LB: loop body
LE: loop exit
PB: predicated region body
PF: predicated region fallthrough
CT: control target
= control target key end

     0   :  { %7 = vsyncpa [#allocation3], 0  ;;  %s1794_s9 = smov 0   ;;  %s1960_s0 = inlined_call_operand.vmem [shape: bf16[1024,32], index: 0, kind: input, shape index: {}]   ;;  %s1961_s1 = inlined_call_operand.hbm [shape: bf16[32,128], index: 1, kind: input, shape index: {}]   ;;  %s1962_s2 = inlined_call_operand.vmem [shape: bf16[1024,128], index: 2, kind: output, shape index: {}]  }
   0x1 LB: > { %s1177_s10 = sadd.s32 4294967295, %s1774_s9   ;;  %p1179_p0 = scmp.ge.s32.totalorder %s1774_s9, 1  ;;  %s1774_s9 = sphi %s1794_s9, %s13_s9  }
   0x2   : > { %p91_p1 = scmp.lt.s32.totalorder %s1774_s9, 3  ;;  %s1776_s11 = smov [#allocation2]  }
   0x3   : > { %s103_s12 = sshll.u32 %s1776_s11, 4  ;;  %p1808_p3 = scmp.eq.s32.totalorder %s1177_s10, 0  ;;  %s104_s12 = int_to_ptr.vmem [resolvable:$true] %s103_s12 }
   0x4   : > { %p1802_p2 = pnand %p1179_p0, %p91_p1  ;;  %s1736_s18 = scalar_lea.hbm %s1961_s1, 256 }
   0x5   : > { %s1967_s14 = scalar_select %p1808_p3, 1, 0 }
   0x6   : > { %s1966_s13 = scalar_select %p1802_p2, 1, 0 }
   0x7   : > { %p1685_p4 = pneg %p1802_p2  ;;  %p1737_p6 = scmp.ne.s32.totalorder %s1961_s1, %s1736_s18 }
   0x8   : > { %p1743_p10 = scmp.lt.u32.totalorder %s1736_s18, %s1961_s1 }
   0x9   : > { %p1816_p5 = pnand %p1808_p3, %p1685_p4 }
   0xb   : > { %p1738_p7 = pneg %p1816_p5 }
   0xd   : > { %p1739_p8 = pnand %p1738_p7, %p1737_p6 }
   0xf   : > { %p1740_p9 = pneg %p1739_p8 }
  0x11   : > { %p1745_p11 = pnand %p1743_p10, %p1740_p9 }
  0x13   : > { %1748 = shalt.err (!%p1745_p11)
}
  0x14   : > { %s1749_s23 = scalar_lea.vmem %s104_s12, 256  ;;  %p1757_p1 = scmp.lt.s32.totalorder %s104_s12, %s104_s12 }
  0x15   : > { %p1750_p12 = scmp.ne.s32.totalorder %s104_s12, %s1749_s23  ;;  %p1758_p4 = scmp.lt.s32.totalorder %s1749_s23, %s1749_s23 }
  0x17   : > { %p1752_p13 = pnand %p1750_p12, %p1738_p7  ;;  %p1759_p3 = por %p1758_p4, %p1757_p1 }
  0x19   : > { %p1753_p0 = pneg %p1752_p13 }
  0x1b   : > { %p1760_p2 = pnand %p1759_p3, %p1753_p0 }
  0x1d   : > { %1763 = shalt.err (!%p1760_p2)
}
  0x1e   : > { %s1777_s24 = smov 64   ;;  %s1778_s25 = smov 4  }
  0x1f   : > { %1688 = dma.hbm_to_vmem [thread:$0]  (!%p1816_p5), %s1961_s1, 256, %s104_s12, [#allocation3], %s1777_s24, %s1777_s24, %s1778_s25  }
  0x20   : > { %p1969_p6 = scmp.ne.s32.totalorder %s1966_s13, 0 }
  0x21   : > { %p1970_p8 = scmp.ne.s32.totalorder (!%p1969_p6), %s1967_s14, 0 }
  0x22   : > { %128 = sbr.rel (%p1969_p6) target bundleno = 325 (0x145), region = 28 }
  0x29   : > { %1769 = dma.done.wait (%p1970_p8), [#allocation3], 256  }
  0x2a   : > { %1771 = vsyncadd (%p1970_p8), [#allocation3], 4294967040  ;;  %s1184_s28 = sshll.u32 %s1177_s10, 6  ;;  %v1702_v0 = vld [vmem:[#allocation2] sm:$0xff]   ;;  %v1703_v1 = vld [vmem:[#allocation2 + $0x8] sm:$0xff]   ;;  %vm403_vm0 = vcmask 261120  }
  0x2b   : > { %p151_p2 = scmp.lt.s32.totalorder %s1184_s28, 127  ;;  %1609 = vmatprep.subr.bf16.mxu0 %v1702_v0  ;;  %1677 = vmatprep.subr.bf16.mxu1 %v1702_v0 }
  0x2c   : > { %1610 = vmatpush3.bf16.msra.mxu0 %v1702_v0  ;;  %1679 = vmatpush3.bf16.msra.mxu1 %v1702_v0 }
  0x2d   : > { %s1972_s28 = smov (!%p151_p2, %s1184_s28), 127  ;;  %1611 = vmatprep.subr.bf16.mxu0 %v1703_v1  ;;  %1678 = vmatprep.subr.bf16.mxu1 %v1703_v1 }
  0x2e   : > { %s1185_s29 = sshll.u32 %s1972_s28, 2 }
  0x2f   : > { %s1852_s4 = scalar_lea.vmem %s1960_s0, %s1185_s29  ;;  %s1923_s7 = scalar_lea.vmem %s1962_s2, %s1185_s29 }
  0x30   : > { %v1704_v2 = vld [vmem:[%s1852_s4] sm:$0xff]   ;;  %v1706_v4 = vld [vmem:[%s1852_s4 + $0x8] sm:$0xff]   ;;  %v1708_v6 = vld [vmem:[%s1852_s4 + $0x10] sm:$0xff]   ;;  %1612 = vmatpush3.bf16.msra.mxu0 %v1703_v1  ;;  %1680 = vmatpush3.bf16.msra.mxu1 %v1703_v1 }
  0x31   : > { %v1705_v3 = vld [vmem:[%s1852_s4 + $0x80] sm:$0xff]   ;;  %1613 = vmatprep.mubr.msk.bf16.mxu0 %vm403_vm0, %v1704_v2  ;;  %v1707_v5 = vld [vmem:[%s1852_s4 + $0x88] sm:$0xff]   ;;  %v1709_v7 = vld [vmem:[%s1852_s4 + $0x90] sm:$0xff]  }
  0x32   : > { %1645 = vmatprep.mubr.msk.bf16.mxu1 %vm403_vm0, %v1705_v3  ;;  %v1710_v8 = vld [vmem:[%s1852_s4 + $0x18] sm:$0xff]   ;;  %v1712_v10 = vld [vmem:[%s1852_s4 + $0x20] sm:$0xff]   ;;  %v1714_v12 = vld [vmem:[%s1852_s4 + $0x28] sm:$0xff]  }
  0x33   : > { %1614 = vmatmul.mubr.msk.bf16.vlgmr.msra.gmra.mrb[0].mxu0 %vm403_vm0, %v1706_v4  ;;  %1646 = vmatmul.mubr.msk.bf16.vlgmr.msra.gmra.mrb[0].mxu1 %vm403_vm0, %v1707_v5  ;;  %v1711_v9 = vld [vmem:[%s1852_s4 + $0x98] sm:$0xff]   ;;  %v1713_v11 = vld [vmem:[%s1852_s4 + $0xa0] sm:$0xff]   ;;  %v1715_v13 = vld [vmem:[%s1852_s4 + $0xa8] sm:$0xff]  }
  0x34   : > { %1617 = vmatprep.mubr.msk.bf16.mxu0 %vm403_vm0, %v1708_v6  ;;  %1649 = vmatprep.mubr.msk.bf16.mxu1 %vm403_vm0, %v1709_v7  ;;  %v1716_v14 = vld [vmem:[%s1852_s4 + $0x30] sm:$0xff]   ;;  %v1718_v16 = vld [vmem:[%s1852_s4 + $0x38] sm:$0xff]   ;;  %v1720_v18 = vld [vmem:[%s1852_s4 + $0x40] sm:$0xff]  }
  0x35   : > { %v1717_v15 = vld [vmem:[%s1852_s4 + $0xb0] sm:$0xff]   ;;  %v1719_v17 = vld [vmem:[%s1852_s4 + $0xb8] sm:$0xff]   ;;  %v1721_v19 = vld [vmem:[%s1852_s4 + $0xc0] sm:$0xff]  }
  0x36   : > { %v1722_v20 = vld [vmem:[%s1852_s4 + $0x48] sm:$0xff]   ;;  %v1724_v22 = vld [vmem:[%s1852_s4 + $0x50] sm:$0xff]   ;;  %v1726_v24 = vld [vmem:[%s1852_s4 + $0x58] sm:$0xff]  }
  0x37   : > { %v1723_v21 = vld [vmem:[%s1852_s4 + $0xc8] sm:$0xff]   ;;  %v1725_v23 = vld [vmem:[%s1852_s4 + $0xd0] sm:$0xff]   ;;  %v1727_v25 = vld [vmem:[%s1852_s4 + $0xd8] sm:$0xff]  }
  0x38   : > { %v1728_v26 = vld [vmem:[%s1852_s4 + $0x60] sm:$0xff]   ;;  %v1730_v28 = vld [vmem:[%s1852_s4 + $0x68] sm:$0xff]   ;;  %v1732_v30 = vld [vmem:[%s1852_s4 + $0x70] sm:$0xff]  }
  0x39   : > { %v1729_v27 = vld [vmem:[%s1852_s4 + $0xe0] sm:$0xff]   ;;  %v1731_v29 = vld [vmem:[%s1852_s4 + $0xe8] sm:$0xff]   ;;  %v1733_v31 = vld [vmem:[%s1852_s4 + $0xf0] sm:$0xff]  }
  0x3a   : > { %v1734_v32 = vld [vmem:[%s1852_s4 + $0x78] sm:$0xff]  }
  0x3b   : > { %1618 = vmatmul.mubr.msk.bf16.gmra.mrb[4].mxu0 %vm403_vm0, %v1710_v8  ;;  %1650 = vmatmul.mubr.msk.bf16.gmra.mrb[4].mxu1 %vm403_vm0, %v1711_v9  ;;  %v1735_v33 = vld [vmem:[%s1852_s4 + $0xf8] sm:$0xff]  }
  0x3c   : > { %1621 = vmatprep.mubr.msk.bf16.mxu0 %vm403_vm0, %v1712_v10  ;;  %1653 = vmatprep.mubr.msk.bf16.mxu1 %vm403_vm0, %v1713_v11 }
  0x43   : > { %1622 = vmatmul.mubr.msk.bf16.gmra.mrb[8].mxu0 %vm403_vm0, %v1714_v12  ;;  %1654 = vmatmul.mubr.msk.bf16.gmra.mrb[8].mxu1 %vm403_vm0, %v1715_v13 }
  0x44   : > { %1625 = vmatprep.mubr.msk.bf16.mxu0 %vm403_vm0, %v1716_v14  ;;  %1657 = vmatprep.mubr.msk.bf16.mxu1 %vm403_vm0, %v1717_v15 }
  0x4b   : > { %1626 = vmatmul.mubr.msk.bf16.gmra.mrb[12].mxu0 %vm403_vm0, %v1718_v16  ;;  %1658 = vmatmul.mubr.msk.bf16.gmra.mrb[12].mxu1 %vm403_vm0, %v1719_v17 }
  0x4c   : > { %1629 = vmatprep.mubr.msk.bf16.mxu0 %vm403_vm0, %v1720_v18  ;;  %1661 = vmatprep.mubr.msk.bf16.mxu1 %vm403_vm0, %v1721_v19 }
  0x53   : > { %1630 = vmatmul.mubr.msk.bf16.gmra.mrb[16].mxu0 %vm403_vm0, %v1722_v20  ;;  %1662 = vmatmul.mubr.msk.bf16.gmra.mrb[16].mxu1 %vm403_vm0, %v1723_v21 }
  0x54   : > { %1633 = vmatprep.mubr.msk.bf16.mxu0 %vm403_vm0, %v1724_v22  ;;  %1665 = vmatprep.mubr.msk.bf16.mxu1 %vm403_vm0, %v1725_v23 }
  0x5b   : > { %1634 = vmatmul.mubr.msk.bf16.gmra.mrb[20].mxu0 %vm403_vm0, %v1726_v24  ;;  %1666 = vmatmul.mubr.msk.bf16.gmra.mrb[20].mxu1 %vm403_vm0, %v1727_v25 }
  0x5c   : > { %1637 = vmatprep.mubr.msk.bf16.mxu0 %vm403_vm0, %v1728_v26  ;;  %1669 = vmatprep.mubr.msk.bf16.mxu1 %vm403_vm0, %v1729_v27 }
  0x63   : > { %1638 = vmatmul.mubr.msk.bf16.gmra.mrb[24].mxu0 %vm403_vm0, %v1730_v28  ;;  %1670 = vmatmul.mubr.msk.bf16.gmra.mrb[24].mxu1 %vm403_vm0, %v1731_v29 }
  0x64   : > { %1641 = vmatprep.mubr.msk.bf16.mxu0 %vm403_vm0, %v1732_v30  ;;  %1673 = vmatprep.mubr.msk.bf16.mxu1 %vm403_vm0, %v1733_v31 }
  0x6b   : > { %1642 = vmatmul.mubr.msk.bf16.gmra.mrb[28].mxu0 %vm403_vm0, %v1734_v32  ;;  %1674 = vmatmul.mubr.msk.bf16.gmra.mrb[28].mxu1 %vm403_vm0, %v1735_v33 }
 0x106   : > { %v1615_v34 = vpop.f32.mrb[0].mxu0  ;;  %v1647_v35 = vpop.f32.mrb[0].mxu1 }
 0x107   : > { %v534_v36 = vpop.f32.mrb[1].mxu0  ;;  %v662_v37 = vpop.f32.mrb[1].mxu1 }
 0x108   : > { %v1616_v38 = vpop.f32.mrb[2].mxu0  ;;  %v1648_v39 = vpop.f32.mrb[2].mxu1 }
 0x109   : > { %v1392_v40 = vpack.c.bf16 %v1616_v38, %v1615_v34  ;;  %v1472_v41 = vpack.c.bf16 %v1648_v39, %v1647_v35  ;;  %v537_v42 = vpop.f32.mrb[3].mxu0  ;;  %v665_v43 = vpop.f32.mrb[3].mxu1 }
 0x10a   : > { %v1387_v44 = vpack.c.bf16 %v537_v42, %v534_v36  ;;  %v1467_v45 = vpack.c.bf16 %v665_v43, %v662_v37 }
 0x10b   : > { %1544 = vst [vmem:[%s1923_s7 + $0x8] sm:$0xff] %v1392_v40   ;;  %1560 = vst [vmem:[%s1923_s7 + $0x88] sm:$0xff] %v1472_v41  }
 0x10c   : > { %1388 = vst [vmem:[%s1923_s7] sm:$0xff] %v1387_v44   ;;  %1559 = vst [vmem:[%s1923_s7 + $0x80] sm:$0xff] %v1467_v45  }
 0x10e   : > { %v1619_v46 = vpop.f32.mrb[4].mxu0  ;;  %v1651_v47 = vpop.f32.mrb[4].mxu1 }
 0x10f   : > { %v550_v48 = vpop.f32.mrb[5].mxu0  ;;  %v678_v49 = vpop.f32.mrb[5].mxu1 }
 0x110   : > { %v1620_v50 = vpop.f32.mrb[6].mxu0  ;;  %v1652_v51 = vpop.f32.mrb[6].mxu1 }
 0x111   : > { %v1402_v52 = vpack.c.bf16 %v1620_v50, %v1619_v46  ;;  %v1482_v53 = vpack.c.bf16 %v1652_v51, %v1651_v47  ;;  %v553_v54 = vpop.f32.mrb[7].mxu0  ;;  %v681_v55 = vpop.f32.mrb[7].mxu1 }
 0x112   : > { %v1397_v56 = vpack.c.bf16 %v553_v54, %v550_v48  ;;  %v1477_v57 = vpack.c.bf16 %v681_v55, %v678_v49 }
 0x113   : > { %1546 = vst [vmem:[%s1923_s7 + $0x18] sm:$0xff] %v1402_v52   ;;  %1562 = vst [vmem:[%s1923_s7 + $0x98] sm:$0xff] %v1482_v53  }
 0x114   : > { %1545 = vst [vmem:[%s1923_s7 + $0x10] sm:$0xff] %v1397_v56   ;;  %1561 = vst [vmem:[%s1923_s7 + $0x90] sm:$0xff] %v1477_v57  }
 0x116   : > { %v1623_v58 = vpop.f32.mrb[8].mxu0  ;;  %v1655_v59 = vpop.f32.mrb[8].mxu1 }
 0x117   : > { %v566_v60 = vpop.f32.mrb[9].mxu0  ;;  %v694_v61 = vpop.f32.mrb[9].mxu1 }
 0x118   : > { %v1624_v62 = vpop.f32.mrb[10].mxu0  ;;  %v1656_v63 = vpop.f32.mrb[10].mxu1 }
 0x119   : > { %v1412_v0 = vpack.c.bf16 %v1624_v62, %v1623_v58  ;;  %v1492_v1 = vpack.c.bf16 %v1656_v63, %v1655_v59  ;;  %v569_v2 = vpop.f32.mrb[11].mxu0  ;;  %v697_v3 = vpop.f32.mrb[11].mxu1 }
 0x11a   : > { %v1407_v4 = vpack.c.bf16 %v569_v2, %v566_v60  ;;  %v1487_v5 = vpack.c.bf16 %v697_v3, %v694_v61 }
 0x11b   : > { %1548 = vst [vmem:[%s1923_s7 + $0x28] sm:$0xff] %v1412_v0   ;;  %1564 = vst [vmem:[%s1923_s7 + $0xa8] sm:$0xff] %v1492_v1  }
 0x11c   : > { %1547 = vst [vmem:[%s1923_s7 + $0x20] sm:$0xff] %v1407_v4   ;;  %1563 = vst [vmem:[%s1923_s7 + $0xa0] sm:$0xff] %v1487_v5  }
 0x11e   : > { %v1627_v6 = vpop.f32.mrb[12].mxu0  ;;  %v1659_v7 = vpop.f32.mrb[12].mxu1 }
 0x11f   : > { %v582_v8 = vpop.f32.mrb[13].mxu0  ;;  %v710_v9 = vpop.f32.mrb[13].mxu1 }
 0x120   : > { %v1628_v10 = vpop.f32.mrb[14].mxu0  ;;  %v1660_v11 = vpop.f32.mrb[14].mxu1 }
 0x121   : > { %v1422_v12 = vpack.c.bf16 %v1628_v10, %v1627_v6  ;;  %v1502_v13 = vpack.c.bf16 %v1660_v11, %v1659_v7  ;;  %v585_v14 = vpop.f32.mrb[15].mxu0  ;;  %v713_v15 = vpop.f32.mrb[15].mxu1 }
 0x122   : > { %v1417_v16 = vpack.c.bf16 %v585_v14, %v582_v8  ;;  %v1497_v17 = vpack.c.bf16 %v713_v15, %v710_v9 }
 0x123   : > { %1550 = vst [vmem:[%s1923_s7 + $0x38] sm:$0xff] %v1422_v12   ;;  %1566 = vst [vmem:[%s1923_s7 + $0xb8] sm:$0xff] %v1502_v13  }
 0x124   : > { %1549 = vst [vmem:[%s1923_s7 + $0x30] sm:$0xff] %v1417_v16   ;;  %1565 = vst [vmem:[%s1923_s7 + $0xb0] sm:$0xff] %v1497_v17  }
 0x126   : > { %v1631_v18 = vpop.f32.mrb[16].mxu0  ;;  %v1663_v19 = vpop.f32.mrb[16].mxu1 }
 0x127   : > { %v598_v20 = vpop.f32.mrb[17].mxu0  ;;  %v726_v21 = vpop.f32.mrb[17].mxu1 }
 0x128   : > { %v1632_v22 = vpop.f32.mrb[18].mxu0  ;;  %v1664_v23 = vpop.f32.mrb[18].mxu1 }
 0x129   : > { %v1432_v24 = vpack.c.bf16 %v1632_v22, %v1631_v18  ;;  %v1512_v25 = vpack.c.bf16 %v1664_v23, %v1663_v19  ;;  %v601_v26 = vpop.f32.mrb[19].mxu0  ;;  %v729_v27 = vpop.f32.mrb[19].mxu1 }
 0x12a   : > { %v1427_v28 = vpack.c.bf16 %v601_v26, %v598_v20  ;;  %v1507_v29 = vpack.c.bf16 %v729_v27, %v726_v21 }
 0x12b   : > { %1552 = vst [vmem:[%s1923_s7 + $0x48] sm:$0xff] %v1432_v24   ;;  %1568 = vst [vmem:[%s1923_s7 + $0xc8] sm:$0xff] %v1512_v25  }
 0x12c   : > { %1551 = vst [vmem:[%s1923_s7 + $0x40] sm:$0xff] %v1427_v28   ;;  %1567 = vst [vmem:[%s1923_s7 + $0xc0] sm:$0xff] %v1507_v29  }
 0x12e   : > { %v1635_v30 = vpop.f32.mrb[20].mxu0  ;;  %v1667_v31 = vpop.f32.mrb[20].mxu1 }
 0x12f   : > { %v614_v32 = vpop.f32.mrb[21].mxu0  ;;  %v742_v33 = vpop.f32.mrb[21].mxu1 }
 0x130   : > { %v1636_v34 = vpop.f32.mrb[22].mxu0  ;;  %v1668_v35 = vpop.f32.mrb[22].mxu1 }
 0x131   : > { %v1442_v36 = vpack.c.bf16 %v1636_v34, %v1635_v30  ;;  %v1522_v37 = vpack.c.bf16 %v1668_v35, %v1667_v31  ;;  %v617_v38 = vpop.f32.mrb[23].mxu0  ;;  %v745_v39 = vpop.f32.mrb[23].mxu1 }
 0x132   : > { %v1437_v40 = vpack.c.bf16 %v617_v38, %v614_v32  ;;  %v1517_v41 = vpack.c.bf16 %v745_v39, %v742_v33 }
 0x133   : > { %1554 = vst [vmem:[%s1923_s7 + $0x58] sm:$0xff] %v1442_v36   ;;  %1570 = vst [vmem:[%s1923_s7 + $0xd8] sm:$0xff] %v1522_v37  }
 0x134   : > { %1553 = vst [vmem:[%s1923_s7 + $0x50] sm:$0xff] %v1437_v40   ;;  %1569 = vst [vmem:[%s1923_s7 + $0xd0] sm:$0xff] %v1517_v41  }
 0x136   : > { %v1639_v42 = vpop.f32.mrb[24].mxu0  ;;  %v1671_v43 = vpop.f32.mrb[24].mxu1 }
 0x137   : > { %v630_v44 = vpop.f32.mrb[25].mxu0  ;;  %v758_v45 = vpop.f32.mrb[25].mxu1 }
 0x138   : > { %v1640_v46 = vpop.f32.mrb[26].mxu0  ;;  %v1672_v47 = vpop.f32.mrb[26].mxu1 }
 0x139   : > { %v1452_v48 = vpack.c.bf16 %v1640_v46, %v1639_v42  ;;  %v1532_v49 = vpack.c.bf16 %v1672_v47, %v1671_v43  ;;  %v633_v50 = vpop.f32.mrb[27].mxu0  ;;  %v761_v51 = vpop.f32.mrb[27].mxu1 }
 0x13a   : > { %v1447_v52 = vpack.c.bf16 %v633_v50, %v630_v44  ;;  %v1527_v53 = vpack.c.bf16 %v761_v51, %v758_v45 }
 0x13b   : > { %1556 = vst [vmem:[%s1923_s7 + $0x68] sm:$0xff] %v1452_v48   ;;  %1572 = vst [vmem:[%s1923_s7 + $0xe8] sm:$0xff] %v1532_v49  }
 0x13c   : > { %1555 = vst [vmem:[%s1923_s7 + $0x60] sm:$0xff] %v1447_v52   ;;  %1571 = vst [vmem:[%s1923_s7 + $0xe0] sm:$0xff] %v1527_v53  }
 0x13e   : > { %v1643_v54 = vpop.f32.mrb[28].mxu0  ;;  %v1675_v55 = vpop.f32.mrb[28].mxu1 }
 0x13f   : > { %v646_v56 = vpop.f32.mrb[29].mxu0  ;;  %v774_v57 = vpop.f32.mrb[29].mxu1 }
 0x140   : > { %v1644_v58 = vpop.f32.mrb[30].mxu0  ;;  %v1676_v59 = vpop.f32.mrb[30].mxu1 }
 0x141   : > { %v1462_v60 = vpack.c.bf16 %v1644_v58, %v1643_v54  ;;  %v1542_v61 = vpack.c.bf16 %v1676_v59, %v1675_v55  ;;  %v649_v62 = vpop.f32.mrb[31].mxu0  ;;  %v777_v63 = vpop.f32.mrb[31].mxu1 }
 0x142   : > { %v1457_v0 = vpack.c.bf16 %v649_v62, %v646_v56  ;;  %v1537_v1 = vpack.c.bf16 %v777_v63, %v774_v57 }
 0x143   : > { %1558 = vst [vmem:[%s1923_s7 + $0x78] sm:$0xff] %v1462_v60   ;;  %1574 = vst [vmem:[%s1923_s7 + $0xf8] sm:$0xff] %v1542_v61  }
 0x144   : > { %1557 = vst [vmem:[%s1923_s7 + $0x70] sm:$0xff] %v1457_v0   ;;  %1573 = vst [vmem:[%s1923_s7 + $0xf0] sm:$0xff] %v1537_v1  }
 0x145 PF: > { %s13_s9 = sadd.s32 1, %s1774_s9  }
 0x146   : > { %p10_p3 = scmp.ge.s32.totalorder %s13_s9, 4  }
 0x148   :  { %12 = sbr.rel (!%p10_p3) target bundleno = 1 (0x1), region = 63 }
 0x14f   :  { %1131 = vsyncpa [#allocation3], 1 }
 0x150   :  { %1133 = vsyncpa [#allocation3 + $0x1], 1 }

// kernel: gcn_forward.4
= control target key start
LH: loop header
LB: loop body
LE: loop exit
PB: predicated region body
PF: predicated region fallthrough
CT: control target
= control target key end

     0   :  { %9 = vsyncpa [#allocation3], 0  ;;  %s6889_s0 = inlined_call_operand.hbm [shape: bf16[1024,1024], index: 0, kind: input, shape index: {}]   ;;  %s6890_s1 = inlined_call_operand.vmem [shape: bf16[1024,128], index: 1, kind: input, shape index: {}]   ;;  %s6891_s2 = inlined_call_operand.hbm [shape: f32[1,128], index: 2, kind: input, shape index: {}]   ;;  %s6892_s3 = inlined_call_operand.hbm [shape: bf16[128,128], index: 3, kind: input, shape index: {}]   ;;  %s6893_s4 = inlined_call_operand.vmem [shape: bf16[1024,128], index: 4, kind: output, shape index: {}]  }
   0x1   :  { %11 = vsyncpa [#allocation3 + $0x1], 0 }
   0x2   :  { %12 = vsyncpa [#allocation5], 0  ;;  %s5815_s15 = smov 0   ;;  %s5817_s16 = smov 0  }
   0x3   :  { %s5819_s17 = smov 0   ;;  %s5821_s18 = smov 0  }
   0x4 LB: > { %s4315_s19 = sadd.s32 4294967295, %s5780_s18   ;;  %s5835_s20 = sadd.s32 1, %s5780_s18   ;;  %s5780_s18 = sphi %s5821_s18, %s6912_s18   ;;  %s5776_s17 = sphi %s5819_s17, %s6911_s17   ;;  %s5772_s16 = sphi %s5817_s16, %s6910_s16   ;;  %s5768_s15 = sphi %s5815_s15, %s6909_s15  }
   0x5   : > { %s22_s21 = ssub.s32 %s5780_s18, %s5835_s20  ;;  %s25_s22 = sadd.s32 1, %s5776_s17 }
   0x6   : > { %p23_p0 = scmp.eq.s32.totalorder %s22_s21, 0  ;;  %p32_p1 = scmp.ne.s32.totalorder %s5776_s17, %s5772_s16 }
   0x7   : > { %p33_p2 = scmp.eq.s32.totalorder %s5780_s18, 0  ;;  %p38_p3 = scmp.ne.s32.totalorder %s5772_s16, %s5768_s15 }
   0x8   : > { %s5845_s23 = scalar_select %p23_p0, %s5776_s17, %s25_s22  }
   0x9   : > { %p5847_p4 = por %p33_p2, %p32_p1  ;;  %p5853_p5 = scmp.eq.s32.totalorder %s4315_s19, 0 }
   0xa   : > { %p4317_p6 = scmp.ge.s32.totalorder %s5780_s18, 1  ;;  %p138_p7 = scmp.lt.s32.totalorder %s5780_s18, 3 }
   0xb   : > { %s6900_s25 = scalar_select %p5853_p5, 1, 0 }
   0xc   : > { %p5861_p8 = por %p5853_p5, %p38_p3  ;;  %p5865_p9 = pnand %p4317_p6, %p138_p7 }
   0xd   : > { %s5782_s28 = smov [#allocation4]   ;;  %p5542_p11 = scmp.lt.s32.totalorder %s5780_s18, 2 }
   0xe   : > { %s6901_s26 = scalar_select %p5861_p8, 1, 0 }
   0xf   : > { %s6902_s27 = scalar_select %p5865_p9, 1, 0 }
  0x10   : > { %s154_s29 = sshll.u32 %s5782_s28, 4  ;;  %p5529_p10 = pneg %p5865_p9  ;;  %s155_s29 = int_to_ptr.vmem [resolvable:$true] %s154_s29 }
  0x11   : > { %s5783_s5 = smov [#allocation6]   ;;  %p5880_p13 = pnand %p5542_p11, %p5847_p4 }
  0x12   : > { %p5874_p12 = pnand %p5529_p10, %p5853_p5  ;;  %s164_s6 = sshll.u32 %s5783_s5, 4  ;;  %s5884_s6 = int_to_ptr.vmem [resolvable:$true] %s164_s6 }
  0x13   : > { %s6904_s7 = scalar_select %p5880_p13, 1, 0 }
  0x14   : > { %s5656_s10 = scalar_lea.hbm %s6891_s2, 16  ;;  %p5658_p1 = pneg %p5874_p12 }
  0x15   : > { %p5657_p0 = scmp.ne.s32.totalorder %s6891_s2, %s5656_s10  ;;  %p5663_p4 = scmp.lt.u32.totalorder %s5656_s10, %s6891_s2 }
  0x17   : > { %p5659_p2 = pnand %p5658_p1, %p5657_p0 }
  0x19   : > { %p5660_p3 = pneg %p5659_p2 }
  0x1b   : > { %p5665_p6 = pnand %p5663_p4, %p5660_p3 }
  0x1d   : > { %5668 = shalt.err (!%p5665_p6)
}
  0x1e   : > { %s5669_s15 = scalar_lea.vmem %s155_s29, 16  ;;  %s5676_s21 = scalar_lea.vmem %s155_s29, 32 }
  0x1f   : > { %p5670_p7 = scmp.ne.s32.totalorder %s155_s29, %s5669_s15  ;;  %p5677_p5 = scmp.lt.s32.totalorder %s155_s29, %s155_s29 }
  0x20   : > { %p5678_p8 = scmp.lt.s32.totalorder %s5676_s21, %s5669_s15 }
  0x21   : > { %p5672_p10 = pnand %p5670_p7, %p5658_p1 }
  0x22   : > { %p5679_p9 = por %p5678_p8, %p5677_p5 }
  0x23   : > { %p5673_p11 = pneg %p5672_p10 }
  0x25   : > { %p5680_p13 = pnand %p5679_p9, %p5673_p11 }
  0x27   : > { %5683 = shalt.err (!%p5680_p13)
}
  0x28   : > { %5532 = dma.hbm_to_vmem [thread:$0]  (!%p5874_p12), %s6891_s2, 16, %s155_s29, [#allocation5]  }
  0x29   : > { %s5684_s8 = scalar_lea.hbm %s6892_s3, 1024 }
  0x2a   : > { %p5685_p0 = scmp.ne.s32.totalorder %s6892_s3, %s5684_s8  ;;  %p5691_p9 = scmp.lt.u32.totalorder %s5684_s8, %s6892_s3 }
  0x2c   : > { %p5687_p5 = pnand %p5685_p0, %p5658_p1 }
  0x2e   : > { %p5688_p8 = pneg %p5687_p5 }
  0x30   : > { %p5693_p13 = pnand %p5691_p9, %p5688_p8 }
  0x32   : > { %5696 = shalt.err (!%p5693_p13)
}
  0x33   : > { %s5697_s29 = scalar_lea.vmem %s5884_s6, 1024  ;;  %p5705_p6 = scmp.lt.s32.totalorder %s5884_s6, %s5884_s6 }
  0x34   : > { %p5698_p2 = scmp.ne.s32.totalorder %s5884_s6, %s5697_s29  ;;  %p5706_p7 = scmp.lt.s32.totalorder %s5697_s29, %s5697_s29 }
  0x36   : > { %p5700_p3 = pnand %p5698_p2, %p5658_p1  ;;  %p5707_p10 = por %p5706_p7, %p5705_p6 }
  0x38   : > { %p5701_p4 = pneg %p5700_p3 }
  0x3a   : > { %p5708_p11 = pnand %p5707_p10, %p5701_p4 }
  0x3c   : > { %5711 = shalt.err (!%p5708_p11)
}
  0x3d   : > { %s5784_s13 = smov 64   ;;  %s5785_s14 = smov 4  }
  0x3e   : > { %5535 = dma.hbm_to_vmem [thread:$0]  (!%p5874_p12), %s6892_s3, 1024, %s5884_s6, [#allocation5], %s5784_s13, %s5784_s13, %s5785_s14  }
  0x3f   : > { %s178_s22 = sand.u32 1, %s5776_s17   ;;  %s4727_s24 = sshll.u32 %s5780_s18, 15 }
  0x40   : > { %s4321_s28 = sshll.u32 %s178_s22, 11  ;;  %s5938_s9 = scalar_lea.hbm %s6889_s0, %s4727_s24 }
  0x41   : > { %s182_s10 = scalar_lea.vmem [#allocation2], %s4321_s28  ;;  %s5942_s30 = scalar_lea.sflag [#allocation3], %s178_s22 }
  0x42   : > { %s190_s11 = sshll.u32 %s182_s10, 4  ;;  %s5712_s12 = scalar_lea.hbm %s5938_s9, 32768  ;;  %s5940_s11 = int_to_ptr.vmem [resolvable:$true] %s190_s11 }
  0x43   : > { %p5713_p12 = scmp.ne.s32.totalorder %s5938_s9, %s5712_s12  ;;  %p6905_p1 = scmp.ne.s32.totalorder %s6904_s7, 0 }
  0x44   : > { %s5717_s13 = scalar_lea.hbm %s6889_s0, 65536  ;;  %p5718_p9 = scmp.lt.u32.totalorder %s5938_s9, %s6889_s0 }
  0x45   : > { %p5714_p0 = pneg %p6905_p1  ;;  %p5719_p13 = scmp.lt.u32.totalorder %s5717_s13, %s5712_s12 }
  0x46   : > { %p5721_p3 = scmp.lt.u32.totalorder %s5712_s12, %s5938_s9 }
  0x47   : > { %p5715_p5 = pnand %p5714_p0, %p5713_p12  ;;  %p5720_p2 = por %p5719_p13, %p5718_p9 }
  0x49   : > { %p5716_p8 = pneg %p5715_p5  ;;  %p5722_p4 = por %p5721_p3, %p5720_p2 }
  0x4b   : > { %p5723_p6 = pnand %p5722_p4, %p5716_p8 }
  0x4d   : > { %5726 = shalt.err (!%p5723_p6)
}
  0x4e   : > { %s5727_s21 = scalar_lea.vmem %s5940_s11, 32768  ;;  %s5786_s22 = smov [#allocation2]  }
  0x4f   : > { %p5728_p7 = scmp.ne.s32.totalorder %s5940_s11, %s5727_s21  ;;  %s5732_s24 = sshll.u32 %s5786_s22, 4  ;;  %s5733_s24 = int_to_ptr.vmem [resolvable:$false] %s5732_s24 }
  0x50   : > { %s5734_s28 = scalar_lea.vmem %s5733_s24, 65536  ;;  %p5735_p12 = scmp.lt.s32.totalorder %s5940_s11, %s5733_s24 }
  0x51   : > { %p5730_p10 = pnand %p5728_p7, %p5714_p0  ;;  %p5736_p5 = scmp.lt.s32.totalorder %s5734_s28, %s5727_s21 }
  0x53   : > { %p5731_p11 = pneg %p5730_p10  ;;  %p5737_p9 = por %p5736_p5, %p5735_p12 }
  0x55   : > { %p5738_p13 = pnand %p5737_p9, %p5731_p11 }
  0x57   : > { %5741 = shalt.err (!%p5738_p13)
}
  0x58   : > { %s5787_s5 = smov 512   ;;  %s5788_s8 = smov 32  }
  0x59   : > { %5539 = dma.hbm_to_vmem [thread:$0]  (!%p6905_p1), %s5938_s9, 32768, %s5940_s11, %s5942_s30, %s5787_s5, %s5787_s5, %s5788_s8  }
  0x5a   : > { %p6906_p0 = scmp.ne.s32.totalorder %s6902_s27, 0 }
  0x5b   : > { %s204_s10 = sand.u32 (!%p6906_p0), 1, %s5772_s16   ;;  %p6907_p8 = scmp.ne.s32.totalorder (!%p6906_p0), %s6901_s26, 0 }
  0x5c   : > { %202 = sbr.rel (%p6906_p0) target bundleno = 1175 (0x497), region = 36  ;;  %s4326_s12 = sshll.u32 (!%p6906_p0), %s204_s10, 11 }
  0x5d   : > { %s205_s6 = scalar_lea.sflag (!%p6906_p0), [#allocation3], %s204_s10  ;;  %s5973_s29 = scalar_lea.vmem (!%p6906_p0), [#allocation2], %s4326_s12 }
  0x63   : > { %5759 = dma.done.wait (%p6907_p8), %s205_s6, 32768  }
  0x64   : > { %5761 = vsyncadd (%p6907_p8), %s205_s6, 4294934528  ;;  %p6908_p2 = scmp.ne.s32.totalorder %s6900_s25, 0 }
  0x66   : > { %5763 = dma.done.wait (%p6908_p2), [#allocation5], 1040  }
  0x67   : > { %5765 = vsyncadd (%p6908_p2), [#allocation5], 4294966256  ;;  %v5789_v0 = vmov 0   ;;  %v5584_v1 = vld [vmem:[%s6890_s1] sm:$0xff]   ;;  %v5586_v3 = vld [vmem:[%s6890_s1 + $0x8] sm:$0xff]  }
  0x68   : > { %2304 = vmatprep.subr.bf16.mxu1 %v5789_v0  ;;  %2593 = vmatprep.subr.bf16.mxu0 %v5789_v0  ;;  %v5991_v2 = vld [vmem:[%s6890_s1 + $0x80] sm:$0xff]   ;;  %v6001_v4 = vld [vmem:[%s6890_s1 + $0x88] sm:$0xff]   ;;  %v5588_v5 = vld [vmem:[%s6890_s1 + $0x10] sm:$0xff]  }
  0x69   : > { %2305 = vmatpush1.bf16.msra.mxu1 %v5584_v1  ;;  %2594 = vmatpush1.bf16.msra.mxu0 %v5991_v2  ;;  %v6012_v6 = vld [vmem:[%s6890_s1 + $0x90] sm:$0xff]   ;;  %v5590_v7 = vld [vmem:[%s6890_s1 + $0x18] sm:$0xff]   ;;  %v5592_v9 = vld [vmem:[%s6890_s1 + $0x20] sm:$0xff]  }
  0x6a   : > { %2306 = vmatprep.subr.bf16.mxu1 %v5789_v0  ;;  %2595 = vmatprep.subr.bf16.mxu0 %v5789_v0  ;;  %v6023_v8 = vld [vmem:[%s6890_s1 + $0x98] sm:$0xff]   ;;  %v6034_v10 = vld [vmem:[%s6890_s1 + $0xa0] sm:$0xff]   ;;  %v5594_v11 = vld [vmem:[%s6890_s1 + $0x28] sm:$0xff]  }
  0x6b   : > { %v6045_v12 = vld [vmem:[%s6890_s1 + $0xa8] sm:$0xff]   ;;  %v5596_v13 = vld [vmem:[%s6890_s1 + $0x30] sm:$0xff]   ;;  %v5598_v15 = vld [vmem:[%s6890_s1 + $0x38] sm:$0xff]  }
  0x6c   : > { %v6056_v14 = vld [vmem:[%s6890_s1 + $0xb0] sm:$0xff]   ;;  %v6067_v16 = vld [vmem:[%s6890_s1 + $0xb8] sm:$0xff]   ;;  %v5600_v17 = vld [vmem:[%s6890_s1 + $0x40] sm:$0xff]  }
  0x6d   : > { %2307 = vmatpush1.bf16.msra.mxu1 %v5586_v3  ;;  %2596 = vmatpush1.bf16.msra.mxu0 %v6001_v4  ;;  %v6078_v18 = vld [vmem:[%s6890_s1 + $0xc0] sm:$0xff]   ;;  %v250_v21 = vld [vmem:[%s5973_s29 + $0x8] sm:$0xff]  ;;  %v5604_v27 = vld [vmem:[%s6890_s1 + $0x50] sm:$0xff]  }
  0x6e   : > { %2308 = vmatprep.subr.bf16.mxu1 %v5789_v0  ;;  %2597 = vmatprep.subr.bf16.mxu0 %v5789_v0  ;;  %v6082_v19 = vld [vmem:[%s5973_s29] sm:$0xff]  ;;  %v254_v23 = vld [vmem:[%s5973_s29 + $0x28] sm:$0xff]  ;;  %v6107_v28 = vld [vmem:[%s6890_s1 + $0xd0] sm:$0xff]  }
  0x6f   : > { %v253_v20 = vld [vmem:[%s5973_s29 + $0x20] sm:$0xff]  ;;  %v5602_v24 = vld [vmem:[%s6890_s1 + $0x48] sm:$0xff]   ;;  %v4335_v25 = vcombine.high %v250_v21, %v254_v23  ;;  %v5606_v29 = vld [vmem:[%s6890_s1 + $0x58] sm:$0xff]   ;;  %v4334_v44 = vcombine.low %v250_v21, %v254_v23 }
  0x70   : > { %v4333_v22 = vcombine.high %v6082_v19, %v253_v20  ;;  %v6096_v26 = vld [vmem:[%s6890_s1 + $0xc8] sm:$0xff]   ;;  %v6118_v30 = vld [vmem:[%s6890_s1 + $0xd8] sm:$0xff]   ;;  %v5608_v31 = vld [vmem:[%s6890_s1 + $0x60] sm:$0xff]   ;;  %v4332_v43 = vcombine.low %v6082_v19, %v253_v20 }
  0x71   : > { %2309 = vmatpush1.bf16.msra.mxu1 %v5588_v5  ;;  %2598 = vmatpush1.bf16.msra.mxu0 %v6012_v6  ;;  %v6129_v32 = vld [vmem:[%s6890_s1 + $0xe0] sm:$0xff]   ;;  %v5610_v33 = vld [vmem:[%s6890_s1 + $0x68] sm:$0xff]   ;;  %v5612_v35 = vld [vmem:[%s6890_s1 + $0x70] sm:$0xff]  }
  0x72   : > { %2310 = vmatprep.subr.bf16.mxu1 %v5789_v0  ;;  %2599 = vmatprep.subr.bf16.mxu0 %v5789_v0  ;;  %v6140_v34 = vld [vmem:[%s6890_s1 + $0xe8] sm:$0xff]   ;;  %v6151_v36 = vld [vmem:[%s6890_s1 + $0xf0] sm:$0xff]   ;;  %v5614_v37 = vld [vmem:[%s6890_s1 + $0x78] sm:$0xff]  }
  0x73   : > { %2336 = vmatprep.mubr.bf16.mxu1 %v4333_v22  ;;  %2625 = vmatprep.mubr.bf16.mxu0 %v4335_v25  ;;  %v6160_v38 = vld [vmem:[%s6890_s1 + $0xf8] sm:$0xff]   ;;  %v257_v39 = vld [vmem:[%s5973_s29 + $0x40] sm:$0xff]  ;;  %v258_v41 = vld [vmem:[%s5973_s29 + $0x48] sm:$0xff] }
  0x74   : > { %v261_v40 = vld [vmem:[%s5973_s29 + $0x60] sm:$0xff]  ;;  %v262_v42 = vld [vmem:[%s5973_s29 + $0x68] sm:$0xff]  ;;  %v5618_v56 = vld [vmem:[%s6890_s1 + $0x110] sm:$0xff]  }
  0x75   : > { %2311 = vmatpush1.bf16.msra.mxu1 %v5590_v7  ;;  %2600 = vmatpush1.bf16.msra.mxu0 %v6023_v8  ;;  %v4341_v45 = vcombine.high %v257_v39, %v261_v40  ;;  %v5616_v46 = vld [vmem:[%s6890_s1 + $0x100] sm:$0xff]   ;;  %v4343_v47 = vcombine.high %v258_v41, %v262_v42  ;;  %v5617_v48 = vld [vmem:[%s6890_s1 + $0x108] sm:$0xff]   ;;  %v4340_v53 = vcombine.low %v257_v39, %v261_v40  ;;  %v5619_v58 = vld [vmem:[%s6890_s1 + $0x118] sm:$0xff]  }
  0x76   : > { %2312 = vmatprep.subr.bf16.mxu1 %v5789_v0  ;;  %2601 = vmatprep.subr.bf16.mxu0 %v5789_v0  ;;  %v265_v49 = vld [vmem:[%s5973_s29 + $0x80] sm:$0xff]  ;;  %v266_v51 = vld [vmem:[%s5973_s29 + $0x88] sm:$0xff]  ;;  %v4342_v54 = vcombine.low %v258_v41, %v262_v42  ;;  %v5626_v41 = vld [vmem:[%s6890_s1 + $0x150] sm:$0xff]  }
  0x77   : > { %v269_v50 = vld [vmem:[%s5973_s29 + $0xa0] sm:$0xff]  ;;  %v270_v52 = vld [vmem:[%s5973_s29 + $0xa8] sm:$0xff] }
  0x78   : > { %v4349_v55 = vcombine.high %v265_v49, %v269_v50  ;;  %v4351_v57 = vcombine.high %v266_v51, %v270_v52  ;;  %v273_v59 = vld [vmem:[%s5973_s29 + $0xc0] sm:$0xff]  ;;  %v274_v61 = vld [vmem:[%s5973_s29 + $0xc8] sm:$0xff]  ;;  %v4348_v63 = vcombine.low %v265_v49, %v269_v50  ;;  %v4350_v1 = vcombine.low %v266_v51, %v270_v52 }
  0x79   : > { %2313 = vmatpush1.bf16.msra.mxu1 %v5592_v9  ;;  %2602 = vmatpush1.bf16.msra.mxu0 %v6034_v10  ;;  %v277_v60 = vld [vmem:[%s5973_s29 + $0xe0] sm:$0xff]  ;;  %v278_v62 = vld [vmem:[%s5973_s29 + $0xe8] sm:$0xff] }
  0x7a   : > { %2314 = vmatprep.subr.bf16.mxu1 %v5789_v0  ;;  %2603 = vmatprep.subr.bf16.mxu0 %v5789_v0  ;;  %v4357_v3 = vcombine.high %v273_v59, %v277_v60  ;;  %v5621_v5 = vld [vmem:[%s6890_s1 + $0x128] sm:$0xff]   ;;  %v285_v7 = vld [vmem:[%s5973_s29 + $0x120] sm:$0xff] }
  0x7b   : > { %v282_v9 = vld [vmem:[%s5973_s29 + $0x108] sm:$0xff]  ;;  %v289_v20 = vld [vmem:[%s5973_s29 + $0x140] sm:$0xff] }
  0x7c   : > { %v293_v21 = vld [vmem:[%s5973_s29 + $0x160] sm:$0xff]  ;;  %v290_v22 = vld [vmem:[%s5973_s29 + $0x148] sm:$0xff] }
  0x7d   : > { %2315 = vmatpush1.bf16.msra.mxu1 %v5594_v11  ;;  %2604 = vmatpush1.bf16.msra.mxu0 %v6045_v12  ;;  %v286_v11 = vld [vmem:[%s5973_s29 + $0x128] sm:$0xff]  ;;  %v4373_v25 = vcombine.high %v289_v20, %v293_v21  ;;  %v5628_v49 = vld [vmem:[%s6890_s1 + $0x160] sm:$0xff]  }
  0x7e   : > { %2316 = vmatprep.subr.bf16.mxu1 %v5789_v0  ;;  %2605 = vmatprep.subr.bf16.mxu0 %v5789_v0  ;;  %v4367_v19 = vcombine.high %v282_v9, %v286_v11  ;;  %v294_v23 = vld [vmem:[%s5973_s29 + $0x168] sm:$0xff]  ;;  %v313_v51 = vld [vmem:[%s5973_s29 + $0x200] sm:$0xff] }
  0x7f   : > { %v4374_v39 = vcombine.low %v290_v22, %v294_v23  ;;  %v317_v52 = vld [vmem:[%s5973_s29 + $0x220] sm:$0xff] }
  0x81   : > { %2317 = vmatpush1.bf16.msra.mxu1 %v5596_v13  ;;  %2606 = vmatpush1.bf16.msra.mxu0 %v6056_v14  ;;  %v5622_v13 = vld [vmem:[%s6890_s1 + $0x130] sm:$0xff]  }
  0x82   : > { %2318 = vmatprep.subr.bf16.mxu1 %v5789_v0  ;;  %2607 = vmatprep.subr.bf16.mxu0 %v5789_v0 }
  0x85   : > { %2319 = vmatpush1.bf16.msra.mxu1 %v5598_v15  ;;  %2608 = vmatpush1.bf16.msra.mxu0 %v6067_v16  ;;  %v4358_v15 = vcombine.low %v274_v61, %v278_v62 }
  0x86   : > { %2320 = vmatprep.subr.bf16.mxu1 %v5789_v0  ;;  %2609 = vmatprep.subr.bf16.mxu0 %v5789_v0 }
  0x89   : > { %2321 = vmatpush1.bf16.msra.mxu1 %v5600_v17  ;;  %2610 = vmatpush1.bf16.msra.mxu0 %v6078_v18 }
  0x8a   : > { %2322 = vmatprep.subr.bf16.mxu1 %v5789_v0  ;;  %2611 = vmatprep.subr.bf16.mxu0 %v5789_v0 }
  0x8d   : > { %2323 = vmatpush1.bf16.msra.mxu1 %v5602_v24  ;;  %2612 = vmatpush1.bf16.msra.mxu0 %v6096_v26  ;;  %v4366_v24 = vcombine.low %v282_v9, %v286_v11 }
  0x8e   : > { %2324 = vmatprep.subr.bf16.mxu1 %v5789_v0  ;;  %2613 = vmatprep.subr.bf16.mxu0 %v5789_v0 }
  0x91   : > { %2325 = vmatpush1.bf16.msra.mxu1 %v5604_v27  ;;  %2614 = vmatpush1.bf16.msra.mxu0 %v6107_v28  ;;  %v5624_v27 = vld [vmem:[%s6890_s1 + $0x140] sm:$0xff]  }
  0x92   : > { %2326 = vmatprep.subr.bf16.mxu1 %v5789_v0  ;;  %2615 = vmatprep.subr.bf16.mxu0 %v5789_v0 }
  0x95   : > { %2327 = vmatpush1.bf16.msra.mxu1 %v5606_v29  ;;  %2616 = vmatpush1.bf16.msra.mxu0 %v6118_v30  ;;  %v4375_v29 = vcombine.high %v290_v22, %v294_v23 }
  0x96   : > { %2328 = vmatprep.subr.bf16.mxu1 %v5789_v0  ;;  %2617 = vmatprep.subr.bf16.mxu0 %v5789_v0 }
  0x99   : > { %2329 = vmatpush1.bf16.msra.mxu1 %v5608_v31  ;;  %2618 = vmatpush1.bf16.msra.mxu0 %v6129_v32  ;;  %v297_v31 = vld [vmem:[%s5973_s29 + $0x180] sm:$0xff] }
  0x9a   : > { %2330 = vmatprep.subr.bf16.mxu1 %v5789_v0  ;;  %2619 = vmatprep.subr.bf16.mxu0 %v5789_v0 }
  0x9d   : > { %2331 = vmatpush1.bf16.msra.mxu1 %v5610_v33  ;;  %2620 = vmatpush1.bf16.msra.mxu0 %v6140_v34  ;;  %v301_v33 = vld [vmem:[%s5973_s29 + $0x1a0] sm:$0xff] }
  0x9e   : > { %2332 = vmatprep.subr.bf16.mxu1 %v5789_v0  ;;  %2621 = vmatprep.subr.bf16.mxu0 %v5789_v0  ;;  %v4381_v40 = vcombine.high %v297_v31, %v301_v33 }
  0xa1   : > { %2333 = vmatpush1.bf16.msra.mxu1 %v5612_v35  ;;  %2622 = vmatpush1.bf16.msra.mxu0 %v6151_v36  ;;  %v298_v35 = vld [vmem:[%s5973_s29 + $0x188] sm:$0xff] }
  0xa2   : > { %2334 = vmatprep.subr.bf16.mxu1 %v5789_v0  ;;  %2623 = vmatprep.subr.bf16.mxu0 %v5789_v0 }
  0xa5   : > { %2335 = vmatpush1.bf16.msra.mxu1 %v5614_v37  ;;  %2624 = vmatpush1.bf16.msra.mxu0 %v6160_v38  ;;  %v302_v37 = vld [vmem:[%s5973_s29 + $0x1a8] sm:$0xff] }
  0xa6   : > { %2882 = vmatprep.subr.bf16.mxu0 %v5789_v0  ;;  %5103 = vmatprep.subr.bf16.mxu1 %v5789_v0  ;;  %v4383_v42 = vcombine.high %v298_v35, %v302_v37 }
  0xa8   : > { %2337 = vmatmul.mubr.bf16.vlgmr.msra.gmra.mrb[0].mxu1 %v4332_v43  ;;  %2626 = vmatmul.mubr.bf16.vlgmr.msra.gmra.mrb[0].mxu0 %v4334_v44  ;;  %v305_v43 = vld [vmem:[%s5973_s29 + $0x1c0] sm:$0xff] }
  0xa9   : > { %2344 = vmatprep.mubr.bf16.mxu1 %v4341_v45  ;;  %2883 = vmatpush1.bf16.msra.mxu0 %v5616_v46  ;;  %v309_v44 = vld [vmem:[%s5973_s29 + $0x1e0] sm:$0xff]  ;;  %v306_v45 = vld [vmem:[%s5973_s29 + $0x1c8] sm:$0xff] }
  0xaa   : > { %2633 = vmatprep.mubr.bf16.mxu0 %v4343_v47  ;;  %2884 = vmatprep.subr.bf16.mxu0 %v5789_v0  ;;  %v310_v46 = vld [vmem:[%s5973_s29 + $0x1e8] sm:$0xff]  ;;  %v4382_v47 = vcombine.low %v298_v35, %v302_v37 }
  0xab   : > { %5119 = vmatpush1.bf16.msra.mxu1 %v5991_v2  ;;  %v5620_v2 = vld [vmem:[%s6890_s1 + $0x120] sm:$0xff]   ;;  %v4391_v50 = vcombine.high %v306_v45, %v310_v46 }
  0xac   : > { %5104 = vmatprep.subr.bf16.mxu1 %v5789_v0 }
  0xad   : > { %2885 = vmatpush1.bf16.msra.mxu0 %v5617_v48  ;;  %v4389_v48 = vcombine.high %v305_v43, %v309_v44 }
  0xae   : > { %2886 = vmatprep.subr.bf16.mxu0 %v5789_v0 }
  0xaf   : > { %5120 = vmatpush1.bf16.msra.mxu1 %v6001_v4  ;;  %v4359_v4 = vcombine.high %v274_v61, %v278_v62  ;;  %v259_v61 = vld [vmem:[%s5973_s29 + $0x50] sm:$0xff] }
  0xb0   : > { %2345 = vmatmul.mubr.bf16.gmra.mrb[4].mxu1 %v4340_v53  ;;  %5105 = vmatprep.subr.bf16.mxu1 %v5789_v0  ;;  %v251_v53 = vld [vmem:[%s5973_s29 + $0x10] sm:$0xff] }
  0xb1   : > { %2634 = vmatmul.mubr.bf16.gmra.mrb[4].mxu0 %v4342_v54  ;;  %2352 = vmatprep.mubr.bf16.mxu1 %v4349_v55  ;;  %v255_v54 = vld [vmem:[%s5973_s29 + $0x30] sm:$0xff]  ;;  %v4390_v55 = vcombine.low %v306_v45, %v310_v46 }
  0xb2   : > { %2887 = vmatpush1.bf16.msra.mxu0 %v5618_v56  ;;  %2641 = vmatprep.mubr.bf16.mxu0 %v4351_v57  ;;  %v4397_v56 = vcombine.high %v313_v51, %v317_v52  ;;  %v5630_v57 = vld [vmem:[%s6890_s1 + $0x170] sm:$0xff]  }
  0xb3   : > { %2888 = vmatprep.subr.bf16.mxu0 %v5789_v0  ;;  %5121 = vmatpush1.bf16.msra.mxu1 %v6012_v6  ;;  %v281_v6 = vld [vmem:[%s5973_s29 + $0x100] sm:$0xff]  ;;  %v263_v62 = vld [vmem:[%s5973_s29 + $0x70] sm:$0xff] }
  0xb4   : > { %5106 = vmatprep.subr.bf16.mxu1 %v5789_v0  ;;  %v4365_v17 = vcombine.high %v281_v6, %v285_v7 }
  0xb6   : > { %2889 = vmatpush1.bf16.msra.mxu0 %v5619_v58  ;;  %v4337_v58 = vcombine.high %v251_v53, %v255_v54 }
  0xb7   : > { %2890 = vmatprep.subr.bf16.mxu0 %v5789_v0  ;;  %5122 = vmatpush1.bf16.msra.mxu1 %v6023_v8  ;;  %v4356_v8 = vcombine.low %v273_v59, %v277_v60  ;;  %v321_v59 = vld [vmem:[%s5973_s29 + $0x240] sm:$0xff] }
  0xb8   : > { %2353 = vmatmul.mubr.bf16.gmra.mrb[8].mxu1 %v4348_v63  ;;  %5107 = vmatprep.subr.bf16.mxu1 %v5789_v0  ;;  %v325_v60 = vld [vmem:[%s5973_s29 + $0x260] sm:$0xff]  ;;  %v4336_v63 = vcombine.low %v251_v53, %v255_v54 }
  0xb9   : > { %2642 = vmatmul.mubr.bf16.gmra.mrb[8].mxu0 %v4350_v1  ;;  %2360 = vmatprep.mubr.bf16.mxu1 %v4357_v3  ;;  %v4405_v1 = vcombine.high %v321_v59, %v325_v60  ;;  %v4345_v3 = vcombine.high %v259_v61, %v263_v62  ;;  %v4404_v9 = vcombine.low %v321_v59, %v325_v60 }
  0xba   : > { %2891 = vmatpush1.bf16.msra.mxu0 %v5620_v2  ;;  %2649 = vmatprep.mubr.bf16.mxu0 %v4359_v4  ;;  %v5632_v2 = vld [vmem:[%s6890_s1 + $0x180] sm:$0xff]  }
  0xbb   : > { %2892 = vmatprep.subr.bf16.mxu0 %v5789_v0  ;;  %5123 = vmatpush1.bf16.msra.mxu1 %v6034_v10  ;;  %v5623_v10 = vld [vmem:[%s6890_s1 + $0x138] sm:$0xff]   ;;  %v333_v4 = vld [vmem:[%s5973_s29 + $0x2a0] sm:$0xff] }
  0xbc   : > { %5108 = vmatprep.subr.bf16.mxu1 %v5789_v0 }
  0xbe   : > { %2893 = vmatpush1.bf16.msra.mxu0 %v5621_v5  ;;  %v5633_v5 = vld [vmem:[%s6890_s1 + $0x188] sm:$0xff]  }
  0xbf   : > { %2894 = vmatprep.subr.bf16.mxu0 %v5789_v0  ;;  %5124 = vmatpush1.bf16.msra.mxu1 %v6045_v12  ;;  %v4364_v12 = vcombine.low %v281_v6, %v285_v7  ;;  %v267_v6 = vld [vmem:[%s5973_s29 + $0x90] sm:$0xff] }
  0xc0   : > { %2361 = vmatmul.mubr.bf16.gmra.mrb[12].mxu1 %v4356_v8  ;;  %5109 = vmatprep.subr.bf16.mxu1 %v5789_v0  ;;  %v271_v7 = vld [vmem:[%s5973_s29 + $0xb0] sm:$0xff] }
  0xc1   : > { %2650 = vmatmul.mubr.bf16.gmra.mrb[12].mxu0 %v4358_v15  ;;  %2368 = vmatprep.mubr.bf16.mxu1 %v4365_v17  ;;  %v4353_v8 = vcombine.high %v267_v6, %v271_v7  ;;  %v337_v15 = vld [vmem:[%s5973_s29 + $0x2c0] sm:$0xff]  ;;  %v4352_v22 = vcombine.low %v267_v6, %v271_v7 }
  0xc2   : > { %2895 = vmatpush1.bf16.msra.mxu0 %v5622_v13  ;;  %2657 = vmatprep.mubr.bf16.mxu0 %v4367_v19  ;;  %v5634_v13 = vld [vmem:[%s6890_s1 + $0x190] sm:$0xff]   ;;  %v341_v17 = vld [vmem:[%s5973_s29 + $0x2e0] sm:$0xff]  ;;  %v5635_v19 = vld [vmem:[%s6890_s1 + $0x198] sm:$0xff]  }
  0xc3   : > { %2896 = vmatprep.subr.bf16.mxu0 %v5789_v0  ;;  %5125 = vmatpush1.bf16.msra.mxu1 %v6056_v14  ;;  %v5625_v14 = vld [vmem:[%s6890_s1 + $0x148] sm:$0xff]   ;;  %v4421_v23 = vcombine.high %v337_v15, %v341_v17  ;;  %v385_v7 = vld [vmem:[%s5973_s29 + $0x440] sm:$0xff] }
  0xc4   : > { %5110 = vmatprep.subr.bf16.mxu1 %v5789_v0 }
  0xc6   : > { %2897 = vmatpush1.bf16.msra.mxu0 %v5623_v10  ;;  %v275_v10 = vld [vmem:[%s5973_s29 + $0xd0] sm:$0xff] }
  0xc7   : > { %2898 = vmatprep.subr.bf16.mxu0 %v5789_v0  ;;  %5126 = vmatpush1.bf16.msra.mxu1 %v6067_v16  ;;  %v4372_v16 = vcombine.low %v289_v20, %v293_v21  ;;  %v279_v20 = vld [vmem:[%s5973_s29 + $0xf0] sm:$0xff] }
  0xc8   : > { %2369 = vmatmul.mubr.bf16.gmra.mrb[16].mxu1 %v4364_v12  ;;  %5111 = vmatprep.subr.bf16.mxu1 %v5789_v0  ;;  %v4361_v12 = vcombine.high %v275_v10, %v279_v20  ;;  %v4360_v35 = vcombine.low %v275_v10, %v279_v20  ;;  %v393_v10 = vld [vmem:[%s5973_s29 + $0x480] sm:$0xff] }
  0xc9   : > { %2658 = vmatmul.mubr.bf16.gmra.mrb[16].mxu0 %v4366_v24  ;;  %2376 = vmatprep.mubr.bf16.mxu1 %v4373_v25  ;;  %v5636_v24 = vld [vmem:[%s6890_s1 + $0x1a0] sm:$0xff]  }
  0xca   : > { %2899 = vmatpush1.bf16.msra.mxu0 %v5624_v27  ;;  %2665 = vmatprep.mubr.bf16.mxu0 %v4375_v29  ;;  %v345_v25 = vld [vmem:[%s5973_s29 + $0x300] sm:$0xff]  ;;  %v5637_v29 = vld [vmem:[%s6890_s1 + $0x1a8] sm:$0xff]  }
  0xcb   : > { %2900 = vmatprep.subr.bf16.mxu0 %v5789_v0  ;;  %5127 = vmatpush1.bf16.msra.mxu1 %v6078_v18  ;;  %v5627_v18 = vld [vmem:[%s6890_s1 + $0x158] sm:$0xff]   ;;  %v349_v27 = vld [vmem:[%s5973_s29 + $0x320] sm:$0xff] }
  0xcc   : > { %5112 = vmatprep.subr.bf16.mxu1 %v5789_v0  ;;  %v4429_v37 = vcombine.high %v345_v25, %v349_v27  ;;  %v397_v20 = vld [vmem:[%s5973_s29 + $0x4a0] sm:$0xff] }
  0xce   : > { %2901 = vmatpush1.bf16.msra.mxu0 %v5625_v14  ;;  %v283_v14 = vld [vmem:[%s5973_s29 + $0x110] sm:$0xff] }
  0xcf   : > { %2902 = vmatprep.subr.bf16.mxu0 %v5789_v0  ;;  %5128 = vmatpush1.bf16.msra.mxu1 %v6096_v26  ;;  %v4380_v26 = vcombine.low %v297_v31, %v301_v33  ;;  %v287_v31 = vld [vmem:[%s5973_s29 + $0x130] sm:$0xff]  ;;  %v4420_v33 = vcombine.low %v337_v15, %v341_v17 }
  0xd0   : > { %2377 = vmatmul.mubr.bf16.gmra.mrb[20].mxu1 %v4372_v16  ;;  %5113 = vmatprep.subr.bf16.mxu1 %v5789_v0  ;;  %v4369_v16 = vcombine.high %v283_v14, %v287_v31  ;;  %v4368_v45 = vcombine.low %v283_v14, %v287_v31  ;;  %v339_v14 = vld [vmem:[%s5973_s29 + $0x2d0] sm:$0xff] }
  0xd1   : > { %2666 = vmatmul.mubr.bf16.gmra.mrb[20].mxu0 %v4374_v39  ;;  %2384 = vmatprep.mubr.bf16.mxu1 %v4381_v40  ;;  %v5638_v39 = vld [vmem:[%s6890_s1 + $0x1b0] sm:$0xff]   ;;  %v353_v40 = vld [vmem:[%s5973_s29 + $0x340] sm:$0xff] }
  0xd2   : > { %2903 = vmatpush1.bf16.msra.mxu0 %v5626_v41  ;;  %2673 = vmatprep.mubr.bf16.mxu0 %v4383_v42  ;;  %v357_v41 = vld [vmem:[%s5973_s29 + $0x360] sm:$0xff]  ;;  %v5639_v42 = vld [vmem:[%s6890_s1 + $0x1b8] sm:$0xff]   ;;  %v343_v31 = vld [vmem:[%s5973_s29 + $0x2f0] sm:$0xff] }
  0xd3   : > { %2904 = vmatprep.subr.bf16.mxu0 %v5789_v0  ;;  %5129 = vmatpush1.bf16.msra.mxu1 %v6107_v28  ;;  %v5629_v28 = vld [vmem:[%s6890_s1 + $0x168] sm:$0xff]   ;;  %v4437_v46 = vcombine.high %v353_v40, %v357_v41 }
  0xd4   : > { %5114 = vmatprep.subr.bf16.mxu1 %v5789_v0 }
  0xd6   : > { %2905 = vmatpush1.bf16.msra.mxu0 %v5627_v18  ;;  %v291_v18 = vld [vmem:[%s5973_s29 + $0x150] sm:$0xff] }
  0xd7   : > { %2906 = vmatprep.subr.bf16.mxu0 %v5789_v0  ;;  %5130 = vmatpush1.bf16.msra.mxu1 %v6118_v30  ;;  %v4388_v30 = vcombine.low %v305_v43, %v309_v44  ;;  %v295_v43 = vld [vmem:[%s5973_s29 + $0x170] sm:$0xff]  ;;  %v4428_v44 = vcombine.low %v345_v25, %v349_v27  ;;  %v401_v27 = vld [vmem:[%s5973_s29 + $0x4c0] sm:$0xff] }
  0xd8   : > { %2385 = vmatmul.mubr.bf16.gmra.mrb[24].mxu1 %v4380_v26  ;;  %5115 = vmatprep.subr.bf16.mxu1 %v5789_v0  ;;  %v4377_v26 = vcombine.high %v291_v18, %v295_v43  ;;  %v4376_v53 = vcombine.low %v291_v18, %v295_v43  ;;  %v351_v18 = vld [vmem:[%s5973_s29 + $0x330] sm:$0xff] }
  0xd9   : > { %2674 = vmatmul.mubr.bf16.gmra.mrb[24].mxu0 %v4382_v47  ;;  %2392 = vmatprep.mubr.bf16.mxu1 %v4389_v48  ;;  %v5640_v47 = vld [vmem:[%s6890_s1 + $0x1c0] sm:$0xff]  }
  0xda   : > { %2907 = vmatpush1.bf16.msra.mxu0 %v5628_v49  ;;  %2681 = vmatprep.mubr.bf16.mxu0 %v4391_v50  ;;  %v361_v48 = vld [vmem:[%s5973_s29 + $0x380] sm:$0xff]  ;;  %v5641_v50 = vld [vmem:[%s6890_s1 + $0x1c8] sm:$0xff]  }
  0xdb   : > { %2908 = vmatprep.subr.bf16.mxu0 %v5789_v0  ;;  %5131 = vmatpush1.bf16.msra.mxu1 %v6129_v32  ;;  %v5631_v32 = vld [vmem:[%s6890_s1 + $0x178] sm:$0xff]   ;;  %v365_v49 = vld [vmem:[%s5973_s29 + $0x3a0] sm:$0xff] }
  0xdc   : > { %5116 = vmatprep.subr.bf16.mxu1 %v5789_v0  ;;  %v4445_v54 = vcombine.high %v361_v48, %v365_v49  ;;  %v4444_v59 = vcombine.low %v361_v48, %v365_v49  ;;  %v355_v48 = vld [vmem:[%s5973_s29 + $0x350] sm:$0xff] }
  0xdd   : > { %v359_v49 = vld [vmem:[%s5973_s29 + $0x370] sm:$0xff] }
  0xde   : > { %2909 = vmatpush1.bf16.msra.mxu0 %v5629_v28  ;;  %v299_v28 = vld [vmem:[%s5973_s29 + $0x190] sm:$0xff] }
  0xdf   : > { %2910 = vmatprep.subr.bf16.mxu0 %v5789_v0  ;;  %5132 = vmatpush1.bf16.msra.mxu1 %v6140_v34  ;;  %v4396_v34 = vcombine.low %v313_v51, %v317_v52  ;;  %v303_v51 = vld [vmem:[%s5973_s29 + $0x1b0] sm:$0xff]  ;;  %v4436_v52 = vcombine.low %v353_v40, %v357_v41  ;;  %v409_v40 = vld [vmem:[%s5973_s29 + $0x500] sm:$0xff] }
  0xe0   : > { %2393 = vmatmul.mubr.bf16.gmra.mrb[28].mxu1 %v4388_v30  ;;  %5117 = vmatprep.subr.bf16.mxu1 %v5789_v0  ;;  %v4385_v30 = vcombine.high %v299_v28, %v303_v51  ;;  %v4384_v60 = vcombine.low %v299_v28, %v303_v51  ;;  %v413_v41 = vld [vmem:[%s5973_s29 + $0x520] sm:$0xff] }
  0xe1   : > { %2682 = vmatmul.mubr.bf16.gmra.mrb[28].mxu0 %v4390_v55  ;;  %2400 = vmatprep.mubr.bf16.mxu1 %v4397_v56  ;;  %v5642_v55 = vld [vmem:[%s6890_s1 + $0x1d0] sm:$0xff]   ;;  %v369_v56 = vld [vmem:[%s5973_s29 + $0x3c0] sm:$0xff] }
  0xe2   : > { %2911 = vmatpush1.bf16.msra.mxu0 %v5630_v57  ;;  %2914 = vmatprep.mubr.bf16.mxu0 %v4337_v58  ;;  %v373_v57 = vld [vmem:[%s5973_s29 + $0x3e0] sm:$0xff]  ;;  %v307_v58 = vld [vmem:[%s5973_s29 + $0x1d0] sm:$0xff] }
  0xe3   : > { %2912 = vmatprep.subr.bf16.mxu0 %v5789_v0  ;;  %5133 = vmatpush1.bf16.msra.mxu1 %v6151_v36  ;;  %v329_v36 = vld [vmem:[%s5973_s29 + $0x280] sm:$0xff] }
  0xe4   : > { %5118 = vmatprep.subr.bf16.mxu1 %v5789_v0  ;;  %v4413_v11 = vcombine.high %v329_v36, %v333_v4  ;;  %v4412_v21 = vcombine.low %v329_v36, %v333_v4  ;;  %v4452_v36 = vcombine.low %v369_v56, %v373_v57 }
  0xe6   : > { %2913 = vmatpush1.bf16.msra.mxu0 %v5631_v32  ;;  %v311_v32 = vld [vmem:[%s5973_s29 + $0x1f0] sm:$0xff] }
  0xe7   : > { %3171 = vmatprep.subr.bf16.mxu0 %v5789_v0  ;;  %5134 = vmatpush1.bf16.msra.mxu1 %v6160_v38  ;;  %v4344_v38 = vcombine.low %v259_v61, %v263_v62  ;;  %v4453_v61 = vcombine.high %v369_v56, %v373_v57  ;;  %v4393_v62 = vcombine.high %v307_v58, %v311_v32  ;;  %v367_v56 = vld [vmem:[%s5973_s29 + $0x3b0] sm:$0xff] }
  0xe8   : > { %2401 = vmatmul.mubr.bf16.gmra.mrb[32].mxu1 %v4396_v34  ;;  %v5643_v34 = vld [vmem:[%s6890_s1 + $0x1d8] sm:$0xff]   ;;  %v4392_v4 = vcombine.low %v307_v58, %v311_v32  ;;  %v4440_v58 = vcombine.low %v355_v48, %v359_v49 }
  0xe9   : > { %2915 = vmatmul.mubr.bf16.vlgmr.msra.gmra.mrb[0].mxu0 %v4336_v63  ;;  %2408 = vmatprep.mubr.bf16.mxu1 %v4405_v1  ;;  %v377_v63 = vld [vmem:[%s5973_s29 + $0x400] sm:$0xff] }
  0xea   : > { %3172 = vmatpush1.bf16.msra.mxu0 %v5632_v2  ;;  %2922 = vmatprep.mubr.bf16.mxu0 %v4345_v3  ;;  %v381_v1 = vld [vmem:[%s5973_s29 + $0x420] sm:$0xff]  ;;  %v315_v2 = vld [vmem:[%s5973_s29 + $0x210] sm:$0xff] }
  0xeb   : > { %3173 = vmatprep.subr.bf16.mxu0 %v5789_v0  ;;  %v319_v3 = vld [vmem:[%s5973_s29 + $0x230] sm:$0xff] }
  0xec   : > { %v4401_v6 = vcombine.high %v315_v2, %v319_v3 }
  0xee   : > { %3174 = vmatpush1.bf16.msra.mxu0 %v5633_v5  ;;  %v4461_v5 = vcombine.high %v377_v63, %v381_v1 }
  0xef   : > { %3175 = vmatprep.subr.bf16.mxu0 %v5789_v0 }
  0xf0   : > { %2409 = vmatmul.mubr.bf16.gmra.mrb[36].mxu1 %v4404_v9  ;;  %v389_v9 = vld [vmem:[%s5973_s29 + $0x460] sm:$0xff] }
  0xf1   : > { %2923 = vmatmul.mubr.bf16.gmra.mrb[4].mxu0 %v4344_v38  ;;  %2416 = vmatprep.mubr.bf16.mxu1 %v4413_v11  ;;  %v323_v38 = vld [vmem:[%s5973_s29 + $0x250] sm:$0xff]  ;;  %v4469_v15 = vcombine.high %v385_v7, %v389_v9 }
  0xf2   : > { %2930 = vmatprep.mubr.bf16.mxu0 %v4353_v8  ;;  %3176 = vmatpush1.bf16.msra.mxu0 %v5634_v13  ;;  %v327_v11 = vld [vmem:[%s5973_s29 + $0x270] sm:$0xff]  ;;  %v4460_v8 = vcombine.low %v377_v63, %v381_v1  ;;  %v4400_v13 = vcombine.low %v315_v2, %v319_v3 }
  0xf3   : > { %3177 = vmatprep.subr.bf16.mxu0 %v5789_v0  ;;  %v4409_v17 = vcombine.high %v323_v38, %v327_v11 }
  0xf6   : > { %3178 = vmatpush1.bf16.msra.mxu0 %v5635_v19  ;;  %v5644_v19 = vld [vmem:[%s6890_s1 + $0x1e0] sm:$0xff]  }
  0xf7   : > { %3179 = vmatprep.subr.bf16.mxu0 %v5789_v0 }
  0xf8   : > { %2417 = vmatmul.mubr.bf16.gmra.mrb[40].mxu1 %v4412_v21  ;;  %v331_v21 = vld [vmem:[%s5973_s29 + $0x290] sm:$0xff] }
  0xf9   : > { %2931 = vmatmul.mubr.bf16.gmra.mrb[8].mxu0 %v4352_v22  ;;  %2424 = vmatprep.mubr.bf16.mxu1 %v4421_v23  ;;  %v335_v22 = vld [vmem:[%s5973_s29 + $0x2b0] sm:$0xff]  ;;  %v4468_v23 = vcombine.low %v385_v7, %v389_v9 }
  0xfa   : > { %2938 = vmatprep.mubr.bf16.mxu0 %v4361_v12  ;;  %3180 = vmatpush1.bf16.msra.mxu0 %v5636_v24  ;;  %v4408_v12 = vcombine.low %v323_v38, %v327_v11  ;;  %v4477_v24 = vcombine.high %v393_v10, %v397_v20  ;;  %v4417_v25 = vcombine.high %v331_v21, %v335_v22 }
  0xfb   : > { %3181 = vmatprep.subr.bf16.mxu0 %v5789_v0 }
  0xfe   : > { %3182 = vmatpush1.bf16.msra.mxu0 %v5637_v29  ;;  %v405_v29 = vld [vmem:[%s5973_s29 + $0x4e0] sm:$0xff] }
  0xff   : > { %3183 = vmatprep.subr.bf16.mxu0 %v5789_v0  ;;  %v4484_v43 = vcombine.low %v401_v27, %v405_v29 }
 0x100   : > { %2425 = vmatmul.mubr.bf16.gmra.mrb[44].mxu1 %v4420_v33  ;;  %v4476_v33 = vcombine.low %v393_v10, %v397_v20 }
 0x101   : > { %2939 = vmatmul.mubr.bf16.gmra.mrb[12].mxu0 %v4360_v35  ;;  %2432 = vmatprep.mubr.bf16.mxu1 %v4429_v37  ;;  %v4416_v35 = vcombine.low %v331_v21, %v335_v22  ;;  %v4485_v37 = vcombine.high %v401_v27, %v405_v29  ;;  %v457_v22 = vld [vmem:[%s5973_s29 + $0x680] sm:$0xff] }
 0x102   : > { %2946 = vmatprep.mubr.bf16.mxu0 %v4369_v16  ;;  %3184 = vmatpush1.bf16.msra.mxu0 %v5638_v39  ;;  %v4425_v16 = vcombine.high %v339_v14, %v343_v31  ;;  %v5645_v39 = vld [vmem:[%s6890_s1 + $0x1e8] sm:$0xff]  }
 0x103   : > { %3185 = vmatprep.subr.bf16.mxu0 %v5789_v0 }
 0x106   : > { %3186 = vmatpush1.bf16.msra.mxu0 %v5639_v42  ;;  %v347_v42 = vld [vmem:[%s5973_s29 + $0x310] sm:$0xff] }
 0x107   : > { %3187 = vmatprep.subr.bf16.mxu0 %v5789_v0  ;;  %v4432_v28 = vcombine.low %v347_v42, %v351_v18 }
 0x108   : > { %2433 = vmatmul.mubr.bf16.gmra.mrb[48].mxu1 %v4428_v44  ;;  %v4424_v44 = vcombine.low %v339_v14, %v343_v31  ;;  %v465_v31 = vld [vmem:[%s5973_s29 + $0x6c0] sm:$0xff] }
 0x109   : > { %2947 = vmatmul.mubr.bf16.gmra.mrb[16].mxu0 %v4368_v45  ;;  %2440 = vmatprep.mubr.bf16.mxu1 %v4437_v46  ;;  %v4493_v45 = vcombine.high %v409_v40, %v413_v41  ;;  %v4433_v46 = vcombine.high %v347_v42, %v351_v18  ;;  %v473_v42 = vld [vmem:[%s5973_s29 + $0x700] sm:$0xff] }
 0x10a   : > { %2954 = vmatprep.mubr.bf16.mxu0 %v4377_v26  ;;  %3188 = vmatpush1.bf16.msra.mxu0 %v5640_v47  ;;  %v417_v26 = vld [vmem:[%s5973_s29 + $0x540] sm:$0xff] }
 0x10b   : > { %3189 = vmatprep.subr.bf16.mxu0 %v5789_v0  ;;  %v421_v47 = vld [vmem:[%s5973_s29 + $0x560] sm:$0xff] }
 0x10c   : > { %v4501_v51 = vcombine.high %v417_v26, %v421_v47  ;;  %v4500_v57 = vcombine.low %v417_v26, %v421_v47  ;;  %v477_v18 = vld [vmem:[%s5973_s29 + $0x720] sm:$0xff] }
 0x10e   : > { %3190 = vmatpush1.bf16.msra.mxu0 %v5641_v50  ;;  %v4492_v50 = vcombine.low %v409_v40, %v413_v41 }
 0x10f   : > { %3191 = vmatprep.subr.bf16.mxu0 %v5789_v0 }
 0x110   : > { %2441 = vmatmul.mubr.bf16.gmra.mrb[52].mxu1 %v4436_v52  ;;  %v4441_v52 = vcombine.high %v355_v48, %v359_v49  ;;  %v4557_v48 = vcombine.high %v473_v42, %v477_v18 }
 0x111   : > { %2955 = vmatmul.mubr.bf16.gmra.mrb[20].mxu0 %v4376_v53  ;;  %2448 = vmatprep.mubr.bf16.mxu1 %v4445_v54  ;;  %v5646_v53 = vld [vmem:[%s6890_s1 + $0x1f0] sm:$0xff]   ;;  %v425_v54 = vld [vmem:[%s5973_s29 + $0x580] sm:$0xff] }
 0x112   : > { %2962 = vmatprep.mubr.bf16.mxu0 %v4385_v30  ;;  %3192 = vmatpush1.bf16.msra.mxu0 %v5642_v55  ;;  %v429_v30 = vld [vmem:[%s5973_s29 + $0x5a0] sm:$0xff]  ;;  %v363_v55 = vld [vmem:[%s5973_s29 + $0x390] sm:$0xff] }
 0x113   : > { %3193 = vmatprep.subr.bf16.mxu0 %v5789_v0  ;;  %v4509_v32 = vcombine.high %v425_v54, %v429_v30  ;;  %v4508_v63 = vcombine.low %v425_v54, %v429_v30  ;;  %v4448_v1 = vcombine.low %v363_v55, %v367_v56  ;;  %v423_v54 = vld [vmem:[%s5973_s29 + $0x570] sm:$0xff] }
 0x116   : > { %3194 = vmatpush1.bf16.msra.mxu0 %v5643_v34  ;;  %v375_v34 = vld [vmem:[%s5973_s29 + $0x3f0] sm:$0xff] }
 0x117   : > { %3195 = vmatprep.subr.bf16.mxu0 %v5789_v0 }
 0x118   : > { %2449 = vmatmul.mubr.bf16.gmra.mrb[56].mxu1 %v4444_v59  ;;  %v4449_v59 = vcombine.high %v363_v55, %v367_v56  ;;  %v4556_v55 = vcombine.low %v473_v42, %v477_v18 }
 0x119   : > { %2963 = vmatmul.mubr.bf16.gmra.mrb[24].mxu0 %v4384_v60  ;;  %2456 = vmatprep.mubr.bf16.mxu1 %v4453_v61  ;;  %v433_v60 = vld [vmem:[%s5973_s29 + $0x5c0] sm:$0xff] }
 0x11a   : > { %2970 = vmatprep.mubr.bf16.mxu0 %v4393_v62  ;;  %3196 = vmatpush1.bf16.msra.mxu0 %v5644_v19  ;;  %v437_v61 = vld [vmem:[%s5973_s29 + $0x5e0] sm:$0xff]  ;;  %v371_v62 = vld [vmem:[%s5973_s29 + $0x3d0] sm:$0xff] }
 0x11b   : > { %3197 = vmatprep.subr.bf16.mxu0 %v5789_v0  ;;  %v4517_v2 = vcombine.high %v433_v60, %v437_v61  ;;  %v4457_v3 = vcombine.high %v371_v62, %v375_v34  ;;  %v4516_v7 = vcombine.low %v433_v60, %v437_v61  ;;  %v4456_v9 = vcombine.low %v371_v62, %v375_v34  ;;  %v489_v61 = vld [vmem:[%s5973_s29 + $0x780] sm:$0xff]  ;;  %v427_v34 = vld [vmem:[%s5973_s29 + $0x590] sm:$0xff] }
 0x11c   : > { %v493_v62 = vld [vmem:[%s5973_s29 + $0x7a0] sm:$0xff] }
 0x11e   : > { %3198 = vmatpush1.bf16.msra.mxu0 %v5645_v39 }
 0x11f   : > { %3199 = vmatprep.subr.bf16.mxu0 %v5789_v0 }
 0x120   : > { %2457 = vmatmul.mubr.bf16.gmra.mrb[60].mxu1 %v4452_v36  ;;  %v441_v36 = vld [vmem:[%s5973_s29 + $0x600] sm:$0xff] }
 0x121   : > { %2971 = vmatmul.mubr.bf16.gmra.mrb[28].mxu0 %v4392_v4  ;;  %2464 = vmatprep.mubr.bf16.mxu1 %v4461_v5  ;;  %v445_v4 = vld [vmem:[%s5973_s29 + $0x620] sm:$0xff]  ;;  %v379_v5 = vld [vmem:[%s5973_s29 + $0x410] sm:$0xff] }
 0x122   : > { %2978 = vmatprep.mubr.bf16.mxu0 %v4401_v6  ;;  %3200 = vmatpush1.bf16.msra.mxu0 %v5646_v53  ;;  %v383_v6 = vld [vmem:[%s5973_s29 + $0x430] sm:$0xff]  ;;  %v4525_v38 = vcombine.high %v441_v36, %v445_v4  ;;  %v4524_v19 = vcombine.low %v441_v36, %v445_v4  ;;  %v4573_v36 = vcombine.high %v489_v61, %v493_v62 }
 0x123   : > { %3201 = vmatprep.subr.bf16.mxu0 %v5789_v0  ;;  %v5647_v0 = vld [vmem:[%s6890_s1 + $0x1f8] sm:$0xff]   ;;  %v4465_v11 = vcombine.high %v379_v5, %v383_v6  ;;  %v4464_v10 = vcombine.low %v379_v5, %v383_v6  ;;  %v419_v53 = vld [vmem:[%s5973_s29 + $0x550] sm:$0xff] }
 0x126   : > { %3202 = vmatpush1.bf16.msra.mxu0 %v5647_v0  ;;  %v4504_v0 = vcombine.low %v419_v53, %v423_v54 }
 0x128   : > { %2465 = vmatmul.mubr.bf16.gmra.mrb[64].mxu1 %v4460_v8  ;;  %v449_v8 = vld [vmem:[%s5973_s29 + $0x640] sm:$0xff] }
 0x129   : > { %2979 = vmatmul.mubr.bf16.gmra.mrb[32].mxu0 %v4400_v13  ;;  %2472 = vmatprep.mubr.bf16.mxu1 %v4469_v15  ;;  %v453_v13 = vld [vmem:[%s5973_s29 + $0x660] sm:$0xff]  ;;  %v387_v15 = vld [vmem:[%s5973_s29 + $0x450] sm:$0xff] }
 0x12a   : > { %2986 = vmatprep.mubr.bf16.mxu0 %v4409_v17  ;;  %v391_v17 = vld [vmem:[%s5973_s29 + $0x470] sm:$0xff]  ;;  %v4533_v20 = vcombine.high %v449_v8, %v453_v13 }
 0x12b   : > { %v4473_v21 = vcombine.high %v387_v15, %v391_v17  ;;  %v4472_v27 = vcombine.low %v387_v15, %v391_v17 }
 0x130   : > { %2473 = vmatmul.mubr.bf16.gmra.mrb[68].mxu1 %v4468_v23  ;;  %v461_v23 = vld [vmem:[%s5973_s29 + $0x6a0] sm:$0xff] }
 0x131   : > { %2987 = vmatmul.mubr.bf16.gmra.mrb[36].mxu0 %v4408_v12  ;;  %2480 = vmatprep.mubr.bf16.mxu1 %v4477_v24  ;;  %v395_v12 = vld [vmem:[%s5973_s29 + $0x490] sm:$0xff]  ;;  %v4541_v29 = vcombine.high %v457_v22, %v461_v23 }
 0x132   : > { %2994 = vmatprep.mubr.bf16.mxu0 %v4417_v25  ;;  %v399_v24 = vld [vmem:[%s5973_s29 + $0x4b0] sm:$0xff]  ;;  %v4532_v25 = vcombine.low %v449_v8, %v453_v13  ;;  %v4572_v13 = vcombine.low %v489_v61, %v493_v62  ;;  %v338_v61 = vld [vmem:[%s5973_s29 + $0x2c8] sm:$0xff] }
 0x133   : > { %v4481_v14 = vcombine.high %v395_v12, %v399_v24  ;;  %v4480_v39 = vcombine.low %v395_v12, %v399_v24  ;;  %v443_v12 = vld [vmem:[%s5973_s29 + $0x610] sm:$0xff]  ;;  %v342_v62 = vld [vmem:[%s5973_s29 + $0x2e8] sm:$0xff] }
 0x134   : > { %v447_v24 = vld [vmem:[%s5973_s29 + $0x630] sm:$0xff] }
 0x138   : > { %2481 = vmatmul.mubr.bf16.gmra.mrb[72].mxu1 %v4476_v33  ;;  %v469_v33 = vld [vmem:[%s5973_s29 + $0x6e0] sm:$0xff] }
 0x139   : > { %2995 = vmatmul.mubr.bf16.gmra.mrb[40].mxu0 %v4416_v35  ;;  %2488 = vmatprep.mubr.bf16.mxu1 %v4485_v37  ;;  %v403_v35 = vld [vmem:[%s5973_s29 + $0x4d0] sm:$0xff]  ;;  %v4549_v40 = vcombine.high %v465_v31, %v469_v33 }
 0x13a   : > { %3002 = vmatprep.mubr.bf16.mxu0 %v4425_v16  ;;  %v407_v37 = vld [vmem:[%s5973_s29 + $0x4f0] sm:$0xff]  ;;  %v4540_v16 = vcombine.low %v457_v22, %v461_v23  ;;  %v314_v22 = vld [vmem:[%s5973_s29 + $0x208] sm:$0xff] }
 0x13b   : > { %v4489_v41 = vcombine.high %v403_v35, %v407_v37  ;;  %v4488_v47 = vcombine.low %v403_v35, %v407_v37  ;;  %v318_v23 = vld [vmem:[%s5973_s29 + $0x228] sm:$0xff]  ;;  %v4529_v35 = vcombine.high %v443_v12, %v447_v24 }
 0x13c   : > { %v4398_v18 = vcombine.low %v314_v22, %v318_v23 }
 0x140   : > { %2489 = vmatmul.mubr.bf16.gmra.mrb[76].mxu1 %v4484_v43  ;;  %v411_v43 = vld [vmem:[%s5973_s29 + $0x510] sm:$0xff] }
 0x141   : > { %3003 = vmatmul.mubr.bf16.gmra.mrb[44].mxu0 %v4424_v44  ;;  %2496 = vmatprep.mubr.bf16.mxu1 %v4493_v45  ;;  %v415_v44 = vld [vmem:[%s5973_s29 + $0x530] sm:$0xff] }
 0x142   : > { %3010 = vmatprep.mubr.bf16.mxu0 %v4433_v46  ;;  %v4548_v46 = vcombine.low %v465_v31, %v469_v33  ;;  %v4399_v31 = vcombine.high %v314_v22, %v318_v23  ;;  %v354_v22 = vld [vmem:[%s5973_s29 + $0x348] sm:$0xff] }
 0x143   : > { %v358_v23 = vld [vmem:[%s5973_s29 + $0x368] sm:$0xff] }
 0x148   : > { %2497 = vmatmul.mubr.bf16.gmra.mrb[80].mxu1 %v4492_v50  ;;  %v4497_v50 = vcombine.high %v411_v43, %v415_v44 }
 0x149   : > { %3011 = vmatmul.mubr.bf16.gmra.mrb[48].mxu0 %v4432_v28  ;;  %2504 = vmatprep.mubr.bf16.mxu1 %v4501_v51  ;;  %v481_v51 = vld [vmem:[%s5973_s29 + $0x740] sm:$0xff] }
 0x14a   : > { %3018 = vmatprep.mubr.bf16.mxu0 %v4441_v52  ;;  %v485_v52 = vld [vmem:[%s5973_s29 + $0x760] sm:$0xff] }
 0x150   : > { %2505 = vmatmul.mubr.bf16.gmra.mrb[84].mxu1 %v4500_v57  ;;  %v4496_v57 = vcombine.low %v411_v43, %v415_v44  ;;  %v4528_v44 = vcombine.low %v443_v12, %v447_v24  ;;  %v483_v12 = vld [vmem:[%s5973_s29 + $0x750] sm:$0xff] }
 0x151   : > { %3019 = vmatmul.mubr.bf16.gmra.mrb[52].mxu0 %v4440_v58  ;;  %2512 = vmatprep.mubr.bf16.mxu1 %v4509_v32  ;;  %v4565_v58 = vcombine.high %v481_v51, %v485_v52  ;;  %v487_v24 = vld [vmem:[%s5973_s29 + $0x770] sm:$0xff] }
 0x152   : > { %3026 = vmatprep.mubr.bf16.mxu0 %v4449_v59  ;;  %v4505_v59 = vcombine.high %v419_v53, %v423_v54 }
 0x158   : > { %2513 = vmatmul.mubr.bf16.gmra.mrb[88].mxu1 %v4508_v63  ;;  %v431_v63 = vld [vmem:[%s5973_s29 + $0x5b0] sm:$0xff] }
 0x159   : > { %3027 = vmatmul.mubr.bf16.gmra.mrb[56].mxu0 %v4448_v1  ;;  %2520 = vmatprep.mubr.bf16.mxu1 %v4517_v2  ;;  %v4564_v2 = vcombine.low %v481_v51, %v485_v52  ;;  %v4513_v5 = vcombine.high %v427_v34, %v431_v63  ;;  %v4512_v17 = vcombine.low %v427_v34, %v431_v63  ;;  %v459_v51 = vld [vmem:[%s5973_s29 + $0x690] sm:$0xff] }
 0x15a   : > { %3034 = vmatprep.mubr.bf16.mxu0 %v4457_v3  ;;  %v463_v52 = vld [vmem:[%s5973_s29 + $0x6b0] sm:$0xff] }
 0x15b   : > { %v467_v34 = vld [vmem:[%s5973_s29 + $0x6d0] sm:$0xff] }
 0x15c   : > { %v471_v63 = vld [vmem:[%s5973_s29 + $0x6f0] sm:$0xff] }
 0x160   : > { %2521 = vmatmul.mubr.bf16.gmra.mrb[92].mxu1 %v4516_v7  ;;  %v497_v7 = vld [vmem:[%s5973_s29 + $0x7c0] sm:$0xff] }
 0x161   : > { %3035 = vmatmul.mubr.bf16.gmra.mrb[60].mxu0 %v4456_v9  ;;  %2528 = vmatprep.mubr.bf16.mxu1 %v4525_v38  ;;  %v501_v9 = vld [vmem:[%s5973_s29 + $0x7e0] sm:$0xff]  ;;  %v435_v38 = vld [vmem:[%s5973_s29 + $0x5d0] sm:$0xff] }
 0x162   : > { %3042 = vmatprep.mubr.bf16.mxu0 %v4465_v11  ;;  %v439_v11 = vld [vmem:[%s5973_s29 + $0x5f0] sm:$0xff] }
 0x168   : > { %2529 = vmatmul.mubr.bf16.gmra.mrb[96].mxu1 %v4524_v19  ;;  %v4581_v19 = vcombine.high %v497_v7, %v501_v9 }
 0x169   : > { %3043 = vmatmul.mubr.bf16.gmra.mrb[64].mxu0 %v4464_v10  ;;  %2536 = vmatprep.mubr.bf16.mxu1 %v4533_v20  ;;  %v4521_v20 = vcombine.high %v435_v38, %v439_v11 }
 0x16a   : > { %3050 = vmatprep.mubr.bf16.mxu0 %v4473_v21 }
 0x170   : > { %2537 = vmatmul.mubr.bf16.gmra.mrb[100].mxu1 %v4532_v25 }
 0x171   : > { %3051 = vmatmul.mubr.bf16.gmra.mrb[68].mxu0 %v4472_v27  ;;  %2544 = vmatprep.mubr.bf16.mxu1 %v4541_v29  ;;  %v4580_v27 = vcombine.low %v497_v7, %v501_v9  ;;  %v4553_v7 = vcombine.high %v467_v34, %v471_v63 }
 0x172   : > { %3058 = vmatprep.mubr.bf16.mxu0 %v4481_v14  ;;  %v4520_v14 = vcombine.low %v435_v38, %v439_v11  ;;  %v346_v38 = vld [vmem:[%s5973_s29 + $0x308] sm:$0xff] }
 0x173   : > { %v350_v11 = vld [vmem:[%s5973_s29 + $0x328] sm:$0xff] }
 0x178   : > { %2545 = vmatmul.mubr.bf16.gmra.mrb[104].mxu1 %v4540_v16  ;;  %v322_v16 = vld [vmem:[%s5973_s29 + $0x248] sm:$0xff] }
 0x179   : > { %3059 = vmatmul.mubr.bf16.gmra.mrb[72].mxu0 %v4480_v39  ;;  %2552 = vmatprep.mubr.bf16.mxu1 %v4549_v40  ;;  %v326_v39 = vld [vmem:[%s5973_s29 + $0x268] sm:$0xff]  ;;  %v451_v40 = vld [vmem:[%s5973_s29 + $0x650] sm:$0xff] }
 0x17a   : > { %3066 = vmatprep.mubr.bf16.mxu0 %v4489_v41  ;;  %v455_v41 = vld [vmem:[%s5973_s29 + $0x670] sm:$0xff]  ;;  %v4406_v54 = vcombine.low %v322_v16, %v326_v39 }
 0x17b   : > { %v6439_v45 = vpop.f32.mrb[0].mxu1 }
 0x17c   : > { %v2340_v26 = vpop.f32.mrb[1].mxu1 }
 0x17d   : > { %v6441_v49 = vpop.f32.mrb[2].mxu1 }
 0x17e   : > { %v2343_v28 = vpop.f32.mrb[3].mxu1 }
 0x17f   : > { %v334_v28 = vld [vmem:[%s5973_s29 + $0x2a8] sm:$0xff] }
 0x180   : > { %2553 = vmatmul.mubr.bf16.gmra.mrb[108].mxu1 %v4548_v46  ;;  %v4407_v46 = vcombine.high %v322_v16, %v326_v39  ;;  %v491_v16 = vld [vmem:[%s5973_s29 + $0x790] sm:$0xff] }
 0x181   : > { %3067 = vmatmul.mubr.bf16.gmra.mrb[76].mxu0 %v4488_v47  ;;  %2560 = vmatprep.mubr.bf16.mxu1 %v4557_v48  ;;  %v4537_v47 = vcombine.high %v451_v40, %v455_v41  ;;  %v495_v39 = vld [vmem:[%s5973_s29 + $0x7b0] sm:$0xff] }
 0x182   : > { %3074 = vmatprep.mubr.bf16.mxu0 %v4497_v50  ;;  %v330_v50 = vld [vmem:[%s5973_s29 + $0x288] sm:$0xff] }
 0x183   : > { %v6447_v30 = vpop.f32.mrb[4].mxu1 }
 0x184   : > { %v2348_v56 = vpop.f32.mrb[5].mxu1 }
 0x185   : > { %v6449_v32 = vpop.f32.mrb[6].mxu1  ;;  %v4536_v56 = vcombine.low %v451_v40, %v455_v41  ;;  %v4438_v40 = vcombine.low %v354_v22, %v358_v23  ;;  %v4568_v41 = vcombine.low %v483_v12, %v487_v24 }
 0x186   : > { %v2351_v60 = vpop.f32.mrb[7].mxu1 }
 0x188   : > { %2561 = vmatmul.mubr.bf16.gmra.mrb[112].mxu1 %v4556_v55 }
 0x189   : > { %3075 = vmatmul.mubr.bf16.gmra.mrb[80].mxu0 %v4496_v57  ;;  %2568 = vmatprep.mubr.bf16.mxu1 %v4565_v58  ;;  %v4415_v57 = vcombine.high %v330_v50, %v334_v28 }
 0x18a   : > { %3082 = vmatprep.mubr.bf16.mxu0 %v4505_v59  ;;  %v4545_v59 = vcombine.high %v459_v51, %v463_v52 }
 0x18b   : > { %v6455_v1 = vpop.f32.mrb[8].mxu1 }
 0x18c   : > { %v2356_v3 = vpop.f32.mrb[9].mxu1 }
 0x18d   : > { %v6457_v4 = vpop.f32.mrb[10].mxu1  ;;  %v4414_v3 = vcombine.low %v330_v50, %v334_v28  ;;  %v4576_v28 = vcombine.low %v491_v16, %v495_v39 }
 0x18e   : > { %v2359_v6 = vpop.f32.mrb[11].mxu1 }
 0x190   : > { %2569 = vmatmul.mubr.bf16.gmra.mrb[116].mxu1 %v4564_v2 }
 0x191   : > { %3083 = vmatmul.mubr.bf16.gmra.mrb[84].mxu0 %v4504_v0  ;;  %2576 = vmatprep.mubr.bf16.mxu1 %v4573_v36  ;;  %v4544_v36 = vcombine.low %v459_v51, %v463_v52 }
 0x192   : > { %3090 = vmatprep.mubr.bf16.mxu0 %v4513_v5  ;;  %v4423_v5 = vcombine.high %v338_v61, %v342_v62 }
 0x193   : > { %v6463_v8 = vpop.f32.mrb[12].mxu1 }
 0x194   : > { %v2364_v15 = vpop.f32.mrb[13].mxu1 }
 0x195   : > { %v6465_v10 = vpop.f32.mrb[14].mxu1  ;;  %v479_v15 = vld [vmem:[%s5973_s29 + $0x730] sm:$0xff] }
 0x196   : > { %v2367_v21 = vpop.f32.mrb[15].mxu1 }
 0x198   : > { %2577 = vmatmul.mubr.bf16.gmra.mrb[120].mxu1 %v4572_v13  ;;  %v475_v13 = vld [vmem:[%s5973_s29 + $0x710] sm:$0xff] }
 0x199   : > { %3091 = vmatmul.mubr.bf16.gmra.mrb[88].mxu0 %v4512_v17  ;;  %2584 = vmatprep.mubr.bf16.mxu1 %v4581_v19  ;;  %v4422_v17 = vcombine.low %v338_v61, %v342_v62  ;;  %v4552_v19 = vcombine.low %v467_v34, %v471_v63  ;;  %v4561_v21 = vcombine.high %v475_v13, %v479_v15  ;;  %v386_v34 = vld [vmem:[%s5973_s29 + $0x448] sm:$0xff] }
 0x19a   : > { %3098 = vmatprep.mubr.bf16.mxu0 %v4521_v20  ;;  %v4431_v20 = vcombine.high %v346_v38, %v350_v11  ;;  %v390_v63 = vld [vmem:[%s5973_s29 + $0x468] sm:$0xff] }
 0x19b   : > { %v6471_v25 = vpop.f32.mrb[16].mxu1 }
 0x19c   : > { %v2372_v29 = vpop.f32.mrb[17].mxu1 }
 0x19d   : > { %v6473_v33 = vpop.f32.mrb[18].mxu1  ;;  %v4560_v29 = vcombine.low %v475_v13, %v479_v15  ;;  %v268_v13 = vld [vmem:[%s5973_s29 + $0x98] sm:$0xff] }
 0x19e   : > { %v2375_v37 = vpop.f32.mrb[19].mxu1  ;;  %v272_v15 = vld [vmem:[%s5973_s29 + $0xb8] sm:$0xff] }
 0x19f   : > { %v366_v37 = vld [vmem:[%s5973_s29 + $0x3a8] sm:$0xff] }
 0x1a0   : > { %2585 = vmatmul.mubr.bf16.gmra.mrb[124].mxu1 %v4580_v27  ;;  %v4430_v27 = vcombine.low %v346_v38, %v350_v11  ;;  %v394_v38 = vld [vmem:[%s5973_s29 + $0x488] sm:$0xff] }
 0x1a1   : > { %3099 = vmatmul.mubr.bf16.gmra.mrb[92].mxu0 %v4520_v14  ;;  %2689 = vmatprep.mubr.bf16.mxu1 %v4399_v31  ;;  %v4439_v14 = vcombine.high %v354_v22, %v358_v23  ;;  %v4569_v31 = vcombine.high %v483_v12, %v487_v24  ;;  %v398_v11 = vld [vmem:[%s5973_s29 + $0x4a8] sm:$0xff]  ;;  %v276_v12 = vld [vmem:[%s5973_s29 + $0xd8] sm:$0xff] }
 0x1a2   : > { %3106 = vmatprep.mubr.bf16.mxu0 %v4529_v35  ;;  %v362_v35 = vld [vmem:[%s5973_s29 + $0x388] sm:$0xff]  ;;  %v280_v24 = vld [vmem:[%s5973_s29 + $0xf8] sm:$0xff] }
 0x1a3   : > { %v6479_v42 = vpop.f32.mrb[20].mxu1  ;;  %v4446_v50 = vcombine.low %v362_v35, %v366_v37  ;;  %v402_v22 = vld [vmem:[%s5973_s29 + $0x4c8] sm:$0xff] }
 0x1a4   : > { %v2380_v43 = vpop.f32.mrb[21].mxu1  ;;  %v406_v23 = vld [vmem:[%s5973_s29 + $0x4e8] sm:$0xff] }
 0x1a5   : > { %v6481_v26 = vpop.f32.mrb[22].mxu1  ;;  %v4577_v43 = vcombine.high %v491_v16, %v495_v39  ;;  %v284_v16 = vld [vmem:[%s5973_s29 + $0x118] sm:$0xff] }
 0x1a6   : > { %v2383_v48 = vpop.f32.mrb[23].mxu1  ;;  %v288_v39 = vld [vmem:[%s5973_s29 + $0x138] sm:$0xff] }
 0x1a7   : > { %v503_v48 = vld [vmem:[%s5973_s29 + $0x7f0] sm:$0xff] }
 0x1a8   : > { %2690 = vmatmul.mubr.bf16.vlgmr.msra.gmra.mrb[32].mxu1 %v4398_v18  ;;  %v4447_v18 = vcombine.high %v362_v35, %v366_v37  ;;  %v410_v35 = vld [vmem:[%s5973_s29 + $0x508] sm:$0xff] }
 0x1a9   : > { %3107 = vmatmul.mubr.bf16.gmra.mrb[96].mxu0 %v4528_v44  ;;  %2697 = vmatprep.mubr.bf16.mxu1 %v4407_v46  ;;  %v370_v44 = vld [vmem:[%s5973_s29 + $0x3c8] sm:$0xff] }
 0x1aa   : > { %3114 = vmatprep.mubr.bf16.mxu0 %v4537_v47  ;;  %v374_v46 = vld [vmem:[%s5973_s29 + $0x3e8] sm:$0xff]  ;;  %v499_v47 = vld [vmem:[%s5973_s29 + $0x7d0] sm:$0xff] }
 0x1ab   : > { %v6487_v53 = vpop.f32.mrb[24].mxu1  ;;  %v4455_v51 = vcombine.high %v370_v44, %v374_v46  ;;  %v4585_v52 = vcombine.high %v499_v47, %v503_v48  ;;  %v414_v37 = vld [vmem:[%s5973_s29 + $0x528] sm:$0xff] }
 0x1ac   : > { %v2388_v55 = vpop.f32.mrb[25].mxu1 }
 0x1ad   : > { %v6489_v58 = vpop.f32.mrb[26].mxu1  ;;  %v382_v55 = vld [vmem:[%s5973_s29 + $0x428] sm:$0xff] }
 0x1ae   : > { %v2391_v60 = vpop.f32.mrb[27].mxu1 }
 0x1af   : > { %v4584_v60 = vcombine.low %v499_v47, %v503_v48  ;;  %v292_v47 = vld [vmem:[%s5973_s29 + $0x158] sm:$0xff] }
 0x1b0   : > { %2698 = vmatmul.mubr.bf16.gmra.mrb[36].mxu1 %v4406_v54  ;;  %v378_v54 = vld [vmem:[%s5973_s29 + $0x408] sm:$0xff]  ;;  %v296_v48 = vld [vmem:[%s5973_s29 + $0x178] sm:$0xff] }
 0x1b1   : > { %3115 = vmatmul.mubr.bf16.gmra.mrb[100].mxu0 %v4536_v56  ;;  %2705 = vmatprep.mubr.bf16.mxu1 %v4415_v57  ;;  %v252_v56 = vld [vmem:[%s5973_s29 + $0x18] sm:$0xff]  ;;  %v4463_v61 = vcombine.high %v378_v54, %v382_v55 }
 0x1b2   : > { %3122 = vmatprep.mubr.bf16.mxu0 %v4545_v59  ;;  %v256_v57 = vld [vmem:[%s5973_s29 + $0x38] sm:$0xff]  ;;  %v4454_v59 = vcombine.low %v370_v44, %v374_v46  ;;  %v418_v44 = vld [vmem:[%s5973_s29 + $0x548] sm:$0xff] }
 0x1b3   : > { %v6495_v2 = vpop.f32.mrb[28].mxu1  ;;  %v4339_v62 = vcombine.high %v252_v56, %v256_v57  ;;  %v422_v46 = vld [vmem:[%s5973_s29 + $0x568] sm:$0xff] }
 0x1b4   : > { %v2396_v0 = vpop.f32.mrb[29].mxu1 }
 0x1b5   : > { %v6497_v6 = vpop.f32.mrb[30].mxu1  ;;  %v264_v0 = vld [vmem:[%s5973_s29 + $0x78] sm:$0xff] }
 0x1b6   : > { %v2399_v9 = vpop.f32.mrb[31].mxu1 }
 0x1b8   : > { %2706 = vmatmul.mubr.bf16.gmra.mrb[40].mxu1 %v4414_v3  ;;  %v260_v3 = vld [vmem:[%s5973_s29 + $0x58] sm:$0xff] }
 0x1b9   : > { %3123 = vmatmul.mubr.bf16.gmra.mrb[104].mxu0 %v4544_v36  ;;  %2713 = vmatprep.mubr.bf16.mxu1 %v4423_v5  ;;  %v4462_v36 = vcombine.low %v378_v54, %v382_v55  ;;  %v4338_v5 = vcombine.low %v252_v56, %v256_v57  ;;  %v4347_v9 = vcombine.high %v260_v3, %v264_v0  ;;  %v426_v55 = vld [vmem:[%s5973_s29 + $0x588] sm:$0xff]  ;;  %v300_v57 = vld [vmem:[%s5973_s29 + $0x198] sm:$0xff] }
 0x1ba   : > { %3130 = vmatprep.mubr.bf16.mxu0 %v4553_v7  ;;  %v4471_v7 = vcombine.high %v386_v34, %v390_v63  ;;  %v4379_v54 = vcombine.high %v292_v47, %v296_v48  ;;  %v430_v56 = vld [vmem:[%s5973_s29 + $0x5a8] sm:$0xff] }
 0x1c0   : > { %2714 = vmatmul.mubr.bf16.gmra.mrb[44].mxu1 %v4422_v17  ;;  %v4470_v17 = vcombine.low %v386_v34, %v390_v63  ;;  %v434_v63 = vld [vmem:[%s5973_s29 + $0x5c8] sm:$0xff] }
 0x1c1   : > { %3131 = vmatmul.mubr.bf16.gmra.mrb[108].mxu0 %v4552_v19  ;;  %2721 = vmatprep.mubr.bf16.mxu1 %v4431_v20  ;;  %v4346_v19 = vcombine.low %v260_v3, %v264_v0  ;;  %v4479_v20 = vcombine.high %v394_v38, %v398_v11  ;;  %v438_v3 = vld [vmem:[%s5973_s29 + $0x5e8] sm:$0xff]  ;;  %v308_v0 = vld [vmem:[%s5973_s29 + $0x1d8] sm:$0xff] }
 0x1c2   : > { %3138 = vmatprep.mubr.bf16.mxu0 %v4561_v21  ;;  %v4355_v21 = vcombine.high %v268_v13, %v272_v15 }
 0x1c8   : > { %2722 = vmatmul.mubr.bf16.gmra.mrb[48].mxu1 %v4430_v27  ;;  %v4478_v27 = vcombine.low %v394_v38, %v398_v11  ;;  %v442_v11 = vld [vmem:[%s5973_s29 + $0x608] sm:$0xff] }
 0x1c9   : > { %3139 = vmatmul.mubr.bf16.gmra.mrb[112].mxu0 %v4560_v29  ;;  %2729 = vmatprep.mubr.bf16.mxu1 %v4439_v14  ;;  %v4354_v29 = vcombine.low %v268_v13, %v272_v15  ;;  %v4487_v14 = vcombine.high %v402_v22, %v406_v23  ;;  %v446_v13 = vld [vmem:[%s5973_s29 + $0x628] sm:$0xff]  ;;  %v316_v15 = vld [vmem:[%s5973_s29 + $0x218] sm:$0xff] }
 0x1ca   : > { %3146 = vmatprep.mubr.bf16.mxu0 %v4569_v31  ;;  %v4363_v31 = vcombine.high %v276_v12, %v280_v24 }
 0x1d0   : > { %2730 = vmatmul.mubr.bf16.gmra.mrb[52].mxu1 %v4438_v40  ;;  %v4486_v40 = vcombine.low %v402_v22, %v406_v23  ;;  %v4527_v22 = vcombine.high %v442_v11, %v446_v13 }
 0x1d1   : > { %3147 = vmatmul.mubr.bf16.gmra.mrb[116].mxu0 %v4568_v41  ;;  %2737 = vmatprep.mubr.bf16.mxu1 %v4447_v18  ;;  %v4362_v41 = vcombine.low %v276_v12, %v280_v24  ;;  %v4495_v18 = vcombine.high %v410_v35, %v414_v37  ;;  %v450_v12 = vld [vmem:[%s5973_s29 + $0x648] sm:$0xff] }
 0x1d2   : > { %3154 = vmatprep.mubr.bf16.mxu0 %v4577_v43  ;;  %v4371_v43 = vcombine.high %v284_v16, %v288_v39  ;;  %v454_v24 = vld [vmem:[%s5973_s29 + $0x668] sm:$0xff] }
 0x1d8   : > { %2738 = vmatmul.mubr.bf16.gmra.mrb[56].mxu1 %v4446_v50  ;;  %v4494_v50 = vcombine.low %v410_v35, %v414_v37  ;;  %v4535_v35 = vcombine.high %v450_v12, %v454_v24 }
 0x1d9   : > { %3155 = vmatmul.mubr.bf16.gmra.mrb[120].mxu0 %v4576_v28  ;;  %2745 = vmatprep.mubr.bf16.mxu1 %v4455_v51  ;;  %v5648_v28 = vld [vmem:[#allocation6] sm:$0xff]   ;;  %v4370_v51 = vcombine.low %v284_v16, %v288_v39 }
 0x1da   : > { %3162 = vmatprep.mubr.bf16.mxu0 %v4585_v52  ;;  %v4503_v52 = vcombine.high %v418_v44, %v422_v46  ;;  %5023 = vmatprep.subr.bf16.mxu1 %v5648_v28  ;;  %v458_v16 = vld [vmem:[%s5973_s29 + $0x688] sm:$0xff] }
 0x1db   : > { %5024 = vmatpush3.bf16.msra.mxu1 %v5648_v28  ;;  %v462_v39 = vld [vmem:[%s5973_s29 + $0x6a8] sm:$0xff]  ;;  %v344_v28 = vld [vmem:[%s5973_s29 + $0x2f8] sm:$0xff] }
 0x1e0   : > { %2746 = vmatmul.mubr.bf16.gmra.mrb[60].mxu1 %v4454_v59  ;;  %v304_v59 = vld [vmem:[%s5973_s29 + $0x1b8] sm:$0xff] }
 0x1e1   : > { %3163 = vmatmul.mubr.bf16.gmra.mrb[124].mxu0 %v4584_v60  ;;  %2753 = vmatprep.mubr.bf16.mxu1 %v4463_v61  ;;  %v4502_v60 = vcombine.low %v418_v44, %v422_v46  ;;  %v4378_v61 = vcombine.low %v292_v47, %v296_v48  ;;  %v4387_v34 = vcombine.high %v300_v57, %v304_v59  ;;  %v466_v47 = vld [vmem:[%s5973_s29 + $0x6c8] sm:$0xff] }
 0x1e2   : > { %3203 = vmatprep.mubr.bf16.mxu0 %v4339_v62  ;;  %v4511_v62 = vcombine.high %v426_v55, %v430_v56  ;;  %v4543_v44 = vcombine.high %v458_v16, %v462_v39  ;;  %v470_v48 = vld [vmem:[%s5973_s29 + $0x6e8] sm:$0xff] }
 0x1e8   : > { %2754 = vmatmul.mubr.bf16.gmra.mrb[64].mxu1 %v4462_v36  ;;  %v312_v36 = vld [vmem:[%s5973_s29 + $0x1f8] sm:$0xff] }
 0x1e9   : > { %3204 = vmatmul.mubr.bf16.vlgmr.msra.gmra.mrb[0].mxu0 %v4338_v5  ;;  %2761 = vmatprep.mubr.bf16.mxu1 %v4471_v7  ;;  %v4510_v5 = vcombine.low %v426_v55, %v430_v56  ;;  %v4386_v7 = vcombine.low %v300_v57, %v304_v59  ;;  %v4395_v38 = vcombine.high %v308_v0, %v312_v36  ;;  %v5651_v57 = vld [vmem:[#allocation6 + $0x18] sm:$0xff]   ;;  %v474_v59 = vld [vmem:[%s5973_s29 + $0x708] sm:$0xff] }
 0x1ea   : > { %3211 = vmatprep.mubr.bf16.mxu0 %v4347_v9  ;;  %v4519_v9 = vcombine.high %v434_v63, %v438_v3  ;;  %v4551_v55 = vcombine.high %v466_v47, %v470_v48 }
 0x1f0   : > { %2762 = vmatmul.mubr.bf16.gmra.mrb[68].mxu1 %v4470_v17  ;;  %v320_v17 = vld [vmem:[%s5973_s29 + $0x238] sm:$0xff] }
 0x1f1   : > { %3212 = vmatmul.mubr.bf16.gmra.mrb[4].mxu0 %v4346_v19  ;;  %2769 = vmatprep.mubr.bf16.mxu1 %v4479_v20  ;;  %v4518_v19 = vcombine.low %v434_v63, %v438_v3  ;;  %v5649_v20 = vld [vmem:[#allocation6 + $0x8] sm:$0xff]   ;;  %v4403_v23 = vcombine.high %v316_v15, %v320_v17  ;;  %v4550_v63 = vcombine.low %v466_v47, %v470_v48 }
 0x1f2   : > { %3219 = vmatprep.mubr.bf16.mxu0 %v4355_v21  ;;  %v4394_v21 = vcombine.low %v308_v0, %v312_v36  ;;  %5025 = vmatprep.subr.bf16.mxu1 %v5649_v20 }
 0x1f3   : > { %5026 = vmatpush3.bf16.msra.mxu1 %v5649_v20 }
 0x1f8   : > { %2770 = vmatmul.mubr.bf16.gmra.mrb[72].mxu1 %v4478_v27  ;;  %v324_v27 = vld [vmem:[%s5973_s29 + $0x258] sm:$0xff] }
 0x1f9   : > { %3220 = vmatmul.mubr.bf16.gmra.mrb[8].mxu0 %v4354_v29  ;;  %2777 = vmatprep.mubr.bf16.mxu1 %v4487_v14  ;;  %v328_v29 = vld [vmem:[%s5973_s29 + $0x278] sm:$0xff]  ;;  %v4526_v14 = vcombine.low %v442_v11, %v446_v13 }
 0x1fa   : > { %3227 = vmatprep.mubr.bf16.mxu0 %v4363_v31  ;;  %v4402_v31 = vcombine.low %v316_v15, %v320_v17  ;;  %v4411_v37 = vcombine.high %v324_v27, %v328_v29  ;;  %v360_v11 = vld [vmem:[%s5973_s29 + $0x378] sm:$0xff] }
 0x1fb   : > { %v5654_v13 = vld [vmem:[#allocation6 + $0x30] sm:$0xff]  }
 0x200   : > { %2778 = vmatmul.mubr.bf16.gmra.mrb[76].mxu1 %v4486_v40  ;;  %v332_v40 = vld [vmem:[%s5973_s29 + $0x298] sm:$0xff] }
 0x201   : > { %3228 = vmatmul.mubr.bf16.gmra.mrb[12].mxu0 %v4362_v41  ;;  %2785 = vmatprep.mubr.bf16.mxu1 %v4495_v18  ;;  %v336_v41 = vld [vmem:[%s5973_s29 + $0x2b8] sm:$0xff]  ;;  %v4534_v18 = vcombine.low %v450_v12, %v454_v24 }
 0x202   : > { %3235 = vmatprep.mubr.bf16.mxu0 %v4371_v43  ;;  %v4410_v43 = vcombine.low %v324_v27, %v328_v29  ;;  %v4419_v46 = vcombine.high %v332_v40, %v336_v41  ;;  %v364_v12 = vld [vmem:[%s5973_s29 + $0x398] sm:$0xff] }
 0x203   : > { %v368_v24 = vld [vmem:[%s5973_s29 + $0x3b8] sm:$0xff] }
 0x208   : > { %2786 = vmatmul.mubr.bf16.gmra.mrb[80].mxu1 %v4494_v50  ;;  %v340_v50 = vld [vmem:[%s5973_s29 + $0x2d8] sm:$0xff] }
 0x209   : > { %3236 = vmatmul.mubr.bf16.gmra.mrb[16].mxu0 %v4370_v51  ;;  %2793 = vmatprep.mubr.bf16.mxu1 %v4503_v52  ;;  %v5650_v51 = vld [vmem:[#allocation6 + $0x10] sm:$0xff]   ;;  %v4542_v52 = vcombine.low %v458_v16, %v462_v39  ;;  %v4427_v56 = vcombine.high %v340_v50, %v344_v28  ;;  %v4426_v3 = vcombine.low %v340_v50, %v344_v28 }
 0x20a   : > { %3243 = vmatprep.mubr.bf16.mxu0 %v4379_v54  ;;  %v4418_v54 = vcombine.low %v332_v40, %v336_v41  ;;  %5027 = vmatprep.subr.bf16.mxu1 %v5650_v51  ;;  %v372_v16 = vld [vmem:[%s5973_s29 + $0x3d8] sm:$0xff]  ;;  %v4450_v41 = vcombine.low %v364_v12, %v368_v24 }
 0x20b   : > { %5028 = vmatpush3.bf16.msra.mxu1 %v5650_v51  ;;  %v376_v39 = vld [vmem:[%s5973_s29 + $0x3f8] sm:$0xff] }
 0x20c   : > { %5029 = vmatprep.subr.bf16.mxu1 %v5651_v57  ;;  %v4458_v48 = vcombine.low %v372_v16, %v376_v39  ;;  %v388_v28 = vld [vmem:[%s5973_s29 + $0x458] sm:$0xff] }
 0x20d   : > { %v392_v51 = vld [vmem:[%s5973_s29 + $0x478] sm:$0xff] }
 0x20f   : > { %5030 = vmatpush3.bf16.msra.mxu1 %v5651_v57  ;;  %v4474_v57 = vcombine.low %v388_v28, %v392_v51 }
 0x210   : > { %2794 = vmatmul.mubr.bf16.gmra.mrb[84].mxu1 %v4502_v60  ;;  %v478_v60 = vld [vmem:[%s5973_s29 + $0x728] sm:$0xff] }
 0x211   : > { %3244 = vmatmul.mubr.bf16.gmra.mrb[20].mxu0 %v4378_v61  ;;  %2801 = vmatprep.mubr.bf16.mxu1 %v4511_v62  ;;  %v348_v61 = vld [vmem:[%s5973_s29 + $0x318] sm:$0xff]  ;;  %v4559_v0 = vcombine.high %v474_v59, %v478_v60  ;;  %v4558_v15 = vcombine.low %v474_v59, %v478_v60 }
 0x212   : > { %3251 = vmatprep.mubr.bf16.mxu0 %v4387_v34  ;;  %v352_v62 = vld [vmem:[%s5973_s29 + $0x338] sm:$0xff]  ;;  %v5652_v34 = vld [vmem:[#allocation6 + $0x20] sm:$0xff]  }
 0x213   : > { %5031 = vmatprep.subr.bf16.mxu1 %v5652_v34  ;;  %v4435_v36 = vcombine.high %v348_v61, %v352_v62  ;;  %v4434_v17 = vcombine.low %v348_v61, %v352_v62  ;;  %v404_v60 = vld [vmem:[%s5973_s29 + $0x4d8] sm:$0xff] }
 0x214   : > { %5032 = vmatpush3.bf16.msra.mxu1 %v5652_v34  ;;  %v408_v61 = vld [vmem:[%s5973_s29 + $0x4f8] sm:$0xff] }
 0x215   : > { %v4491_v34 = vcombine.high %v404_v60, %v408_v61 }
 0x218   : > { %2802 = vmatmul.mubr.bf16.gmra.mrb[88].mxu1 %v4510_v5  ;;  %v5653_v5 = vld [vmem:[#allocation6 + $0x28] sm:$0xff]  }
 0x219   : > { %3252 = vmatmul.mubr.bf16.gmra.mrb[24].mxu0 %v4386_v7  ;;  %2809 = vmatprep.mubr.bf16.mxu1 %v4519_v9  ;;  %v482_v7 = vld [vmem:[%s5973_s29 + $0x748] sm:$0xff] }
 0x21a   : > { %3259 = vmatprep.mubr.bf16.mxu0 %v4395_v38  ;;  %v486_v9 = vld [vmem:[%s5973_s29 + $0x768] sm:$0xff]  ;;  %5033 = vmatprep.subr.bf16.mxu1 %v5653_v5  ;;  %v356_v38 = vld [vmem:[%s5973_s29 + $0x358] sm:$0xff] }
 0x21b   : > { %5034 = vmatpush3.bf16.msra.mxu1 %v5653_v5  ;;  %v4443_v20 = vcombine.high %v356_v38, %v360_v11  ;;  %v4566_v27 = vcombine.low %v482_v7, %v486_v9  ;;  %v4442_v29 = vcombine.low %v356_v38, %v360_v11 }
 0x21c   : > { %5035 = vmatprep.subr.bf16.mxu1 %v5654_v13 }
 0x21f   : > { %5036 = vmatpush3.bf16.msra.mxu1 %v5654_v13  ;;  %v420_v13 = vld [vmem:[%s5973_s29 + $0x558] sm:$0xff] }
 0x220   : > { %2810 = vmatmul.mubr.bf16.gmra.mrb[92].mxu1 %v4518_v19  ;;  %v4567_v19 = vcombine.high %v482_v7, %v486_v9  ;;  %v4490_v7 = vcombine.low %v404_v60, %v408_v61 }
 0x221   : > { %3260 = vmatmul.mubr.bf16.gmra.mrb[28].mxu0 %v4394_v21  ;;  %2817 = vmatprep.mubr.bf16.mxu1 %v4527_v22  ;;  %v5655_v21 = vld [vmem:[#allocation6 + $0x38] sm:$0xff]   ;;  %v490_v22 = vld [vmem:[%s5973_s29 + $0x788] sm:$0xff] }
 0x222   : > { %3267 = vmatprep.mubr.bf16.mxu0 %v4403_v23  ;;  %v494_v23 = vld [vmem:[%s5973_s29 + $0x7a8] sm:$0xff]  ;;  %5037 = vmatprep.subr.bf16.mxu1 %v5655_v21 }
 0x223   : > { %5038 = vmatpush3.bf16.msra.mxu1 %v5655_v21  ;;  %v4574_v40 = vcombine.low %v490_v22, %v494_v23 }
 0x228   : > { %2818 = vmatmul.mubr.bf16.gmra.mrb[96].mxu1 %v4526_v14  ;;  %v4575_v14 = vcombine.high %v490_v22, %v494_v23 }
 0x229   : > { %3268 = vmatmul.mubr.bf16.gmra.mrb[32].mxu0 %v4402_v31  ;;  %2825 = vmatprep.mubr.bf16.mxu1 %v4535_v35  ;;  %v4451_v31 = vcombine.high %v364_v12, %v368_v24  ;;  %v498_v35 = vld [vmem:[%s5973_s29 + $0x7c8] sm:$0xff]  ;;  %v428_v12 = vld [vmem:[%s5973_s29 + $0x598] sm:$0xff] }
 0x22a   : > { %3275 = vmatprep.mubr.bf16.mxu0 %v4411_v37  ;;  %v502_v37 = vld [vmem:[%s5973_s29 + $0x7e8] sm:$0xff]  ;;  %v432_v24 = vld [vmem:[%s5973_s29 + $0x5b8] sm:$0xff] }
 0x22b   : > { %v4582_v47 = vcombine.low %v498_v35, %v502_v37 }
 0x230   : > { %2826 = vmatmul.mubr.bf16.gmra.mrb[100].mxu1 %v4534_v18  ;;  %v4583_v18 = vcombine.high %v498_v35, %v502_v37  ;;  %v4515_v35 = vcombine.high %v428_v12, %v432_v24 }
 0x231   : > { %3276 = vmatmul.mubr.bf16.gmra.mrb[36].mxu0 %v4410_v43  ;;  %2833 = vmatprep.mubr.bf16.mxu1 %v4543_v44  ;;  %v4459_v43 = vcombine.high %v372_v16, %v376_v39  ;;  %v380_v44 = vld [vmem:[%s5973_s29 + $0x418] sm:$0xff] }
 0x232   : > { %3283 = vmatprep.mubr.bf16.mxu0 %v4419_v46  ;;  %v384_v46 = vld [vmem:[%s5973_s29 + $0x438] sm:$0xff] }
 0x233   : > { %v4467_v50 = vcombine.high %v380_v44, %v384_v46  ;;  %v436_v16 = vld [vmem:[%s5973_s29 + $0x5d8] sm:$0xff] }
 0x234   : > { %v440_v39 = vld [vmem:[%s5973_s29 + $0x5f8] sm:$0xff] }
 0x238   : > { %2834 = vmatmul.mubr.bf16.gmra.mrb[104].mxu1 %v4542_v52  ;;  %v4466_v52 = vcombine.low %v380_v44, %v384_v46  ;;  %v4523_v44 = vcombine.high %v436_v16, %v440_v39 }
 0x239   : > { %3284 = vmatmul.mubr.bf16.gmra.mrb[40].mxu0 %v4418_v54  ;;  %2841 = vmatprep.mubr.bf16.mxu1 %v4551_v55  ;;  %v4475_v54 = vcombine.high %v388_v28, %v392_v51  ;;  %v396_v55 = vld [vmem:[%s5973_s29 + $0x498] sm:$0xff]  ;;  %v4522_v51 = vcombine.low %v436_v16, %v440_v39 }
 0x23a   : > { %3291 = vmatprep.mubr.bf16.mxu0 %v4427_v56  ;;  %v400_v56 = vld [vmem:[%s5973_s29 + $0x4b8] sm:$0xff] }
 0x23b   : > { %v4483_v59 = vcombine.high %v396_v55, %v400_v56  ;;  %v4482_v62 = vcombine.low %v396_v55, %v400_v56  ;;  %v452_v56 = vld [vmem:[%s5973_s29 + $0x658] sm:$0xff] }
 0x23c   : > { %v476_v39 = vld [vmem:[%s5973_s29 + $0x718] sm:$0xff] }
 0x240   : > { %2842 = vmatmul.mubr.bf16.gmra.mrb[108].mxu1 %v4550_v63 }
 0x241   : > { %3292 = vmatmul.mubr.bf16.gmra.mrb[44].mxu0 %v4426_v3  ;;  %2849 = vmatprep.mubr.bf16.mxu1 %v4559_v0  ;;  %v412_v3 = vld [vmem:[%s5973_s29 + $0x518] sm:$0xff] }
 0x242   : > { %3299 = vmatprep.mubr.bf16.mxu0 %v4435_v36  ;;  %v416_v0 = vld [vmem:[%s5973_s29 + $0x538] sm:$0xff] }
 0x243   : > { %v4499_v38 = vcombine.high %v412_v3, %v416_v0 }
 0x248   : > { %2850 = vmatmul.mubr.bf16.gmra.mrb[112].mxu1 %v4558_v15  ;;  %v424_v15 = vld [vmem:[%s5973_s29 + $0x578] sm:$0xff] }
 0x249   : > { %3300 = vmatmul.mubr.bf16.gmra.mrb[48].mxu0 %v4434_v17  ;;  %2857 = vmatprep.mubr.bf16.mxu1 %v4567_v19  ;;  %v4507_v22 = vcombine.high %v420_v13, %v424_v15 }
 0x24a   : > { %3307 = vmatprep.mubr.bf16.mxu0 %v4443_v20  ;;  %v4498_v20 = vcombine.low %v412_v3, %v416_v0  ;;  %v460_v0 = vld [vmem:[%s5973_s29 + $0x698] sm:$0xff] }
 0x250   : > { %2858 = vmatmul.mubr.bf16.gmra.mrb[116].mxu1 %v4566_v27 }
 0x251   : > { %3308 = vmatmul.mubr.bf16.gmra.mrb[52].mxu0 %v4442_v29  ;;  %2865 = vmatprep.mubr.bf16.mxu1 %v4575_v14  ;;  %v4506_v14 = vcombine.low %v420_v13, %v424_v15 }
 0x252   : > { %3315 = vmatprep.mubr.bf16.mxu0 %v4451_v31 }
 0x258   : > { %2866 = vmatmul.mubr.bf16.gmra.mrb[120].mxu1 %v4574_v40 }
 0x259   : > { %3316 = vmatmul.mubr.bf16.gmra.mrb[56].mxu0 %v4450_v41  ;;  %2873 = vmatprep.mubr.bf16.mxu1 %v4583_v18  ;;  %v4514_v18 = vcombine.low %v428_v12, %v432_v24 }
 0x25a   : > { %3323 = vmatprep.mubr.bf16.mxu0 %v4459_v43 }
 0x260   : > { %2874 = vmatmul.mubr.bf16.gmra.mrb[124].mxu1 %v4582_v47  ;;  %v444_v47 = vld [vmem:[%s5973_s29 + $0x618] sm:$0xff] }
 0x261   : > { %3324 = vmatmul.mubr.bf16.gmra.mrb[60].mxu0 %v4458_v48  ;;  %v448_v48 = vld [vmem:[%s5973_s29 + $0x638] sm:$0xff] }
 0x262   : > { %3331 = vmatprep.mubr.bf16.mxu0 %v4467_v50  ;;  %v4530_v61 = vcombine.low %v444_v47, %v448_v48 }
 0x269   : > { %3332 = vmatmul.mubr.bf16.gmra.mrb[64].mxu0 %v4466_v52 }
 0x26a   : > { %3339 = vmatprep.mubr.bf16.mxu0 %v4475_v54  ;;  %v4531_v54 = vcombine.high %v444_v47, %v448_v48 }
 0x271   : > { %3340 = vmatmul.mubr.bf16.gmra.mrb[68].mxu0 %v4474_v57  ;;  %v456_v57 = vld [vmem:[%s5973_s29 + $0x678] sm:$0xff] }
 0x272   : > { %3347 = vmatprep.mubr.bf16.mxu0 %v4483_v59 }
 0x279   : > { %3348 = vmatmul.mubr.bf16.gmra.mrb[72].mxu0 %v4482_v62 }
 0x27a   : > { %3355 = vmatprep.mubr.bf16.mxu0 %v4491_v34  ;;  %v4539_v34 = vcombine.high %v452_v56, %v456_v57 }
 0x27b   : > { %v6587_v63 = vpop.f32.mrb[32].mxu1 }
 0x27c   : > { %v2693_v36 = vpop.f32.mrb[33].mxu1 }
 0x27d   : > { %v6591_v5 = vpop.f32.mrb[34].mxu1  ;;  %v464_v36 = vld [vmem:[%s5973_s29 + $0x6b8] sm:$0xff] }
 0x27e   : > { %v2696_v9 = vpop.f32.mrb[35].mxu1  ;;  %v4547_v15 = vcombine.high %v460_v0, %v464_v36  ;;  %v4546_v24 = vcombine.low %v460_v0, %v464_v36  ;;  %v484_v0 = vld [vmem:[%s5973_s29 + $0x758] sm:$0xff] }
 0x27f   : > { %v488_v36 = vld [vmem:[%s5973_s29 + $0x778] sm:$0xff] }
 0x281   : > { %3356 = vmatmul.mubr.bf16.gmra.mrb[76].mxu0 %v4490_v7 }
 0x282   : > { %3363 = vmatprep.mubr.bf16.mxu0 %v4499_v38  ;;  %v4538_v38 = vcombine.low %v452_v56, %v456_v57 }
 0x283   : > { %v6593_v11 = vpop.f32.mrb[36].mxu1 }
 0x284   : > { %v2701_v17 = vpop.f32.mrb[37].mxu1 }
 0x285   : > { %v6597_v19 = vpop.f32.mrb[38].mxu1 }
 0x286   : > { %v2704_v21 = vpop.f32.mrb[39].mxu1 }
 0x287   : > { %v472_v21 = vld [vmem:[%s5973_s29 + $0x6f8] sm:$0xff] }
 0x289   : > { %3364 = vmatmul.mubr.bf16.gmra.mrb[80].mxu0 %v4498_v20  ;;  %v468_v20 = vld [vmem:[%s5973_s29 + $0x6d8] sm:$0xff] }
 0x28a   : > { %3371 = vmatprep.mubr.bf16.mxu0 %v4507_v22 }
 0x28b   : > { %v6599_v23 = vpop.f32.mrb[40].mxu1 }
 0x28c   : > { %v2709_v27 = vpop.f32.mrb[41].mxu1 }
 0x28d   : > { %v6603_v29 = vpop.f32.mrb[42].mxu1 }
 0x28e   : > { %v2712_v31 = vpop.f32.mrb[43].mxu1 }
 0x28f   : > { %v6635_v31 = vld [vmem:[#allocation4] ss:$0 sm:$0xff] }
 0x291   : > { %3372 = vmatmul.mubr.bf16.gmra.mrb[84].mxu0 %v4506_v14  ;;  %v4555_v14 = vcombine.high %v468_v20, %v472_v21 }
 0x292   : > { %3379 = vmatprep.mubr.bf16.mxu0 %v4515_v35  ;;  %v2339_v35 = vadd.f32 %v6635_v31, %v6439_v45 }
 0x293   : > { %v6605_v37 = vpop.f32.mrb[44].mxu1 }
 0x294   : > { %v2717_v40 = vpop.f32.mrb[45].mxu1 }
 0x295   : > { %v6609_v41 = vpop.f32.mrb[46].mxu1  ;;  %v480_v40 = vld [vmem:[%s5973_s29 + $0x738] sm:$0xff] }
 0x296   : > { %v2720_v43 = vpop.f32.mrb[47].mxu1  ;;  %v4563_v56 = vcombine.high %v476_v39, %v480_v40 }
 0x299   : > { %3380 = vmatmul.mubr.bf16.gmra.mrb[88].mxu0 %v4514_v18 }
 0x29a   : > { %3387 = vmatprep.mubr.bf16.mxu0 %v4523_v44  ;;  %v2342_v44 = vadd.f32 %v6635_v31, %v6441_v49 }
 0x29b   : > { %v6611_v46 = vpop.f32.mrb[48].mxu1 }
 0x29c   : > { %v2725_v50 = vpop.f32.mrb[49].mxu1 }
 0x29d   : > { %v6615_v28 = vpop.f32.mrb[50].mxu1 }
 0x29e   : > { %v2728_v52 = vpop.f32.mrb[51].mxu1 }
 0x2a1   : > { %3388 = vmatmul.mubr.bf16.gmra.mrb[92].mxu0 %v4522_v51  ;;  %v4554_v51 = vcombine.low %v468_v20, %v472_v21 }
 0x2a2   : > { %3395 = vmatprep.mubr.bf16.mxu0 %v4531_v54 }
 0x2a3   : > { %v6617_v55 = vpop.f32.mrb[52].mxu1 }
 0x2a4   : > { %v2733_v59 = vpop.f32.mrb[53].mxu1 }
 0x2a5   : > { %v6621_v60 = vpop.f32.mrb[54].mxu1 }
 0x2a6   : > { %v2736_v62 = vpop.f32.mrb[55].mxu1 }
 0x2a7   : > { %v2347_v62 = vadd.f32 %v6635_v31, %v6447_v30 }
 0x2a9   : > { %3396 = vmatmul.mubr.bf16.gmra.mrb[96].mxu0 %v4530_v61 }
 0x2aa   : > { %3403 = vmatprep.mubr.bf16.mxu0 %v4539_v34 }
 0x2ab   : > { %v6623_v3 = vpop.f32.mrb[56].mxu1 }
 0x2ac   : > { %v2741_v7 = vpop.f32.mrb[57].mxu1 }
 0x2ad   : > { %v6627_v9 = vpop.f32.mrb[58].mxu1 }
 0x2ae   : > { %v2744_v13 = vpop.f32.mrb[59].mxu1 }
 0x2af   : > { %v2350_v13 = vadd.f32 %v6635_v31, %v6449_v32  ;;  %v2355_v32 = vadd.f32 %v6635_v31, %v6455_v1 }
 0x2b1   : > { %3404 = vmatmul.mubr.bf16.gmra.mrb[100].mxu0 %v4538_v38 }
 0x2b2   : > { %3411 = vmatprep.mubr.bf16.mxu0 %v4547_v15 }
 0x2b3   : > { %v6629_v17 = vpop.f32.mrb[60].mxu1 }
 0x2b4   : > { %v2749_v22 = vpop.f32.mrb[61].mxu1 }
 0x2b5   : > { %v6633_v12 = vpop.f32.mrb[62].mxu1  ;;  %v4562_v22 = vcombine.low %v476_v39, %v480_v40  ;;  %v2358_v39 = vadd.f32 %v6635_v31, %v6457_v4  ;;  %v2363_v4 = vadd.f32 %v6635_v31, %v6463_v8 }
 0x2b6   : > { %v2752_v27 = vpop.f32.mrb[63].mxu1 }
 0x2b7   : > { %v4571_v27 = vcombine.high %v484_v0, %v488_v36 }
 0x2b9   : > { %3412 = vmatmul.mubr.bf16.gmra.mrb[104].mxu0 %v4546_v24 }
 0x2ba   : > { %3419 = vmatprep.mubr.bf16.mxu0 %v4555_v14 }
 0x2bb   : > { %v6639_v16 = vpop.f32.mrb[64].mxu1 }
 0x2bc   : > { %v3205_v18 = vpop.f32.mrb[0].mxu0  ;;  %v2757_v43 = vpop.f32.mrb[65].mxu1 }
 0x2bd   : > { %v5136_v47 = vadd.f32 %v3205_v18, %v2339_v35  ;;  %v3207_v48 = vpop.f32.mrb[1].mxu0  ;;  %v6645_v50 = vpop.f32.mrb[66].mxu1 }
 0x2be   : > { %v3208_v52 = vpop.f32.mrb[2].mxu0  ;;  %v2760_v54 = vpop.f32.mrb[67].mxu1  ;;  %v492_v48 = vld [vmem:[%s5973_s29 + $0x798] sm:$0xff] }
 0x2bf   : > { %v5138_v45 = vadd.f32 %v3208_v52, %v2342_v44  ;;  %v3210_v57 = vpop.f32.mrb[3].mxu0  ;;  %v3460_v59 = vmax.f32 %v5136_v47, 0.0 }
 0x2c0   : > { %v4570_v57 = vcombine.low %v484_v0, %v488_v36  ;;  %v2366_v0 = vadd.f32 %v6635_v31, %v6465_v10 }
 0x2c1   : > { %v3461_v61 = vmax.f32 %v5138_v45, 0.0  ;;  %3420 = vmatmul.mubr.bf16.gmra.mrb[108].mxu0 %v4554_v51  ;;  %v496_v51 = vld [vmem:[%s5973_s29 + $0x7b8] sm:$0xff] }
 0x2c2   : > { %3427 = vmatprep.mubr.bf16.mxu0 %v4563_v56 }
 0x2c3   : > { %v3524_v49 = vpack.c.bf16 %v3461_v61, %v3460_v59  ;;  %v6649_v34 = vpop.f32.mrb[68].mxu1  ;;  %v4579_v61 = vcombine.high %v492_v48, %v496_v51 }
 0x2c4   : > { %v3213_v7 = vpop.f32.mrb[4].mxu0  ;;  %v2765_v38 = vpop.f32.mrb[69].mxu1 }
 0x2c5   : > { %v5140_v15 = vadd.f32 %v3213_v7, %v2347_v62  ;;  %v3215_v20 = vpop.f32.mrb[5].mxu0  ;;  %5039 = vmatprep.mubr.bf16.mxu1 %v3524_v49  ;;  %v6655_v21 = vpop.f32.mrb[70].mxu1 }
 0x2c6   : > { %v3216_v24 = vpop.f32.mrb[6].mxu0  ;;  %v2768_v30 = vpop.f32.mrb[71].mxu1  ;;  %v500_v20 = vld [vmem:[%s5973_s29 + $0x7d8] sm:$0xff] }
 0x2c7   : > { %v5142_v14 = vadd.f32 %v3216_v24, %v2350_v13  ;;  %v3218_v35 = vpop.f32.mrb[7].mxu0  ;;  %v3462_v18 = vmax.f32 %v5140_v15, 0.0 }
 0x2c8   : > { %v4578_v35 = vcombine.low %v492_v48, %v496_v51  ;;  %v2374_v48 = vadd.f32 %v6635_v31, %v6473_v33 }
 0x2c9   : > { %v3463_v43 = vmax.f32 %v5142_v14, 0.0  ;;  %3428 = vmatmul.mubr.bf16.gmra.mrb[112].mxu0 %v4562_v22  ;;  %v504_v22 = vld [vmem:[%s5973_s29 + $0x7f8] sm:$0xff]  ;;  %s4329_s29 = sshll.u32 %s4315_s19, 6 }
 0x2ca   : > { %3435 = vmatprep.mubr.bf16.mxu0 %v4571_v27  ;;  %p243_p1 = scmp.lt.s32.totalorder %s4329_s29, 127 }
 0x2cb   : > { %v3525_v44 = vpack.c.bf16 %v3463_v43, %v3462_v18  ;;  %v6659_v47 = vpop.f32.mrb[72].mxu1 }
 0x2cc   : > { %v3221_v52 = vpop.f32.mrb[8].mxu0  ;;  %v2773_v54 = vpop.f32.mrb[73].mxu1  ;;  %s6914_s29 = smov (!%p243_p1, %s4329_s29), 127 }
 0x2cd   : > { %v5144_v40 = vadd.f32 %v3221_v52, %v2355_v32  ;;  %v3223_v56 = vpop.f32.mrb[9].mxu0  ;;  %5040 = vmatmul.mubr.bf16.vlgmr.msra.gmra.mrb[128].mxu1 %v3525_v44  ;;  %v6665_v45 = vpop.f32.mrb[74].mxu1  ;;  %v4587_v32 = vcombine.high %v500_v20, %v504_v22  ;;  %s4330_s18 = sshll.u32 %s6914_s29, 2 }
 0x2ce   : > { %v3224_v59 = vpop.f32.mrb[10].mxu0  ;;  %v2776_v1 = vpop.f32.mrb[75].mxu1  ;;  %s6830_s8 = scalar_lea.vmem %s6893_s4, %s4330_s18 }
 0x2cf   : > { %v5146_v62 = vadd.f32 %v3224_v59, %v2358_v39  ;;  %v3226_v49 = vpop.f32.mrb[11].mxu0  ;;  %v3464_v7 = vmax.f32 %v5144_v40, 0.0  ;;  %v2371_v39 = vadd.f32 %v6635_v31, %v6471_v25 }
 0x2d1   : > { %v3465_v38 = vmax.f32 %v5146_v62, 0.0  ;;  %3436 = vmatmul.mubr.bf16.gmra.mrb[116].mxu0 %v4570_v57 }
 0x2d2   : > { %3443 = vmatprep.mubr.bf16.mxu0 %v4579_v61  ;;  %v4586_v61 = vcombine.low %v500_v20, %v504_v22 }
 0x2d3   : > { %v3526_v13 = vpack.c.bf16 %v3465_v38, %v3464_v7  ;;  %v6669_v15 = vpop.f32.mrb[76].mxu1 }
 0x2d4   : > { %v3229_v24 = vpop.f32.mrb[12].mxu0  ;;  %v2781_v30 = vpop.f32.mrb[77].mxu1 }
 0x2d5   : > { %v5148_v36 = vadd.f32 %v3229_v24, %v2363_v4  ;;  %v3231_v27 = vpop.f32.mrb[13].mxu0  ;;  %5043 = vmatprep.mubr.bf16.mxu1 %v3526_v13  ;;  %v6675_v14 = vpop.f32.mrb[78].mxu1  ;;  %v2379_v13 = vadd.f32 %v6635_v31, %v6479_v42  ;;  %v2387_v42 = vadd.f32 %v6635_v31, %v6487_v53  ;;  %v2395_v53 = vadd.f32 %v6635_v31, %v6495_v2 }
 0x2d6   : > { %v3232_v18 = vpop.f32.mrb[14].mxu0  ;;  %v2784_v43 = vpop.f32.mrb[79].mxu1  ;;  %v5167_v2 = vadd.f32 %v6635_v31, %v6587_v63  ;;  %v5171_v63 = vadd.f32 %v6635_v31, %v6593_v11  ;;  %v5175_v11 = vadd.f32 %v6635_v31, %v6599_v23  ;;  %v5179_v23 = vadd.f32 %v6635_v31, %v6605_v37 }
 0x2d7   : > { %v5150_v8 = vadd.f32 %v3232_v18, %v2366_v0  ;;  %v3234_v44 = vpop.f32.mrb[15].mxu0  ;;  %v3466_v52 = vmax.f32 %v5148_v36, 0.0  ;;  %v2382_v36 = vadd.f32 %v6635_v31, %v6481_v26  ;;  %v2390_v26 = vadd.f32 %v6635_v31, %v6489_v58 }
 0x2d8   : > { %v2398_v58 = vadd.f32 %v6635_v31, %v6497_v6  ;;  %v5169_v6 = vadd.f32 %v6635_v31, %v6591_v5  ;;  %v5173_v5 = vadd.f32 %v6635_v31, %v6597_v19  ;;  %v5177_v19 = vadd.f32 %v6635_v31, %v6603_v29 }
 0x2d9   : > { %v3467_v54 = vmax.f32 %v5150_v8, 0.0  ;;  %3444 = vmatmul.mubr.bf16.gmra.mrb[120].mxu0 %v4578_v35  ;;  %v5181_v29 = vadd.f32 %v6635_v31, %v6609_v41  ;;  %v5183_v37 = vadd.f32 %v6635_v31, %v6611_v46  ;;  %v5185_v41 = vadd.f32 %v6635_v31, %v6615_v28 }
 0x2da   : > { %3451 = vmatprep.mubr.bf16.mxu0 %v4587_v32  ;;  %v5187_v46 = vadd.f32 %v6635_v31, %v6617_v55  ;;  %v5189_v28 = vadd.f32 %v6635_v31, %v6621_v60  ;;  %v5191_v55 = vadd.f32 %v6635_v31, %v6623_v3  ;;  %v5193_v60 = vadd.f32 %v6635_v31, %v6627_v9 }
 0x2db   : > { %v3527_v40 = vpack.c.bf16 %v3467_v54, %v3466_v52  ;;  %v6679_v10 = vpop.f32.mrb[80].mxu1  ;;  %v5195_v3 = vadd.f32 %v6635_v31, %v6629_v17  ;;  %v5197_v9 = vadd.f32 %v6635_v31, %v6633_v12  ;;  %v5199_v17 = vadd.f32 %v6635_v31, %v6639_v16 }
 0x2dc   : > { %v3237_v56 = vpop.f32.mrb[16].mxu0  ;;  %v2789_v57 = vpop.f32.mrb[81].mxu1  ;;  %v5205_v16 = vadd.f32 %v6635_v31, %v6655_v21 }
 0x2dd   : > { %v5152_v51 = vadd.f32 %v3237_v56, %v2371_v39  ;;  %v3239_v59 = vpop.f32.mrb[17].mxu0  ;;  %5044 = vmatmul.mubr.bf16.gmra.mrb[132].mxu1 %v3527_v40  ;;  %v6683_v1 = vpop.f32.mrb[82].mxu1 }
 0x2de   : > { %v3240_v62 = vpop.f32.mrb[18].mxu0  ;;  %v2792_v49 = vpop.f32.mrb[83].mxu1 }
 0x2df   : > { %v5154_v7 = vadd.f32 %v3240_v62, %v2374_v48  ;;  %v3242_v38 = vpop.f32.mrb[19].mxu0  ;;  %v3468_v4 = vmax.f32 %v5152_v51, 0.0 }
 0x2e1   : > { %v3469_v25 = vmax.f32 %v5154_v7, 0.0  ;;  %3452 = vmatmul.mubr.bf16.gmra.mrb[124].mxu0 %v4586_v61 }
 0x2e3   : > { %v3528_v24 = vpack.c.bf16 %v3469_v25, %v3468_v4  ;;  %v6687_v30 = vpop.f32.mrb[84].mxu1 }
 0x2e4   : > { %v3245_v33 = vpop.f32.mrb[20].mxu0  ;;  %v2797_v0 = vpop.f32.mrb[85].mxu1 }
 0x2e5   : > { %v5156_v27 = vadd.f32 %v3245_v33, %v2379_v13  ;;  %v3247_v20 = vpop.f32.mrb[21].mxu0  ;;  %5047 = vmatprep.mubr.bf16.mxu1 %v3528_v24  ;;  %v6691_v22 = vpop.f32.mrb[86].mxu1 }
 0x2e6   : > { %v3248_v35 = vpop.f32.mrb[22].mxu0  ;;  %v2800_v18 = vpop.f32.mrb[87].mxu1 }
 0x2e7   : > { %v5158_v43 = vadd.f32 %v3248_v35, %v2382_v36  ;;  %v3250_v32 = vpop.f32.mrb[23].mxu0  ;;  %v3470_v8 = vmax.f32 %v5156_v27, 0.0 }
 0x2e9   : > { %v3471_v44 = vmax.f32 %v5158_v43, 0.0 }
 0x2eb   : > { %v3529_v52 = vpack.c.bf16 %v3471_v44, %v3470_v8  ;;  %v6695_v54 = vpop.f32.mrb[88].mxu1 }
 0x2ec   : > { %v3253_v39 = vpop.f32.mrb[24].mxu0  ;;  %v2805_v40 = vpop.f32.mrb[89].mxu1 }
 0x2ed   : > { %v5160_v56 = vadd.f32 %v3253_v39, %v2387_v42  ;;  %v3255_v57 = vpop.f32.mrb[25].mxu0  ;;  %5048 = vmatmul.mubr.bf16.gmra.mrb[136].mxu1 %v3529_v52  ;;  %v6699_v48 = vpop.f32.mrb[90].mxu1 }
 0x2ee   : > { %v3256_v51 = vpop.f32.mrb[26].mxu0  ;;  %v2808_v59 = vpop.f32.mrb[91].mxu1 }
 0x2ef   : > { %v5162_v61 = vadd.f32 %v3256_v51, %v2390_v26  ;;  %v3258_v62 = vpop.f32.mrb[27].mxu0  ;;  %v3472_v49 = vmax.f32 %v5160_v56, 0.0 }
 0x2f1   : > { %v3473_v7 = vmax.f32 %v5162_v61, 0.0 }
 0x2f3   : > { %v3530_v38 = vpack.c.bf16 %v3473_v7, %v3472_v49  ;;  %v6703_v4 = vpop.f32.mrb[92].mxu1 }
 0x2f4   : > { %v3261_v25 = vpop.f32.mrb[28].mxu0  ;;  %v2813_v13 = vpop.f32.mrb[93].mxu1 }
 0x2f5   : > { %v5164_v24 = vadd.f32 %v3261_v25, %v2395_v53  ;;  %v3263_v33 = vpop.f32.mrb[29].mxu0  ;;  %5051 = vmatprep.mubr.bf16.mxu1 %v3530_v38  ;;  %v6707_v0 = vpop.f32.mrb[94].mxu1 }
 0x2f6   : > { %v3264_v36 = vpop.f32.mrb[30].mxu0  ;;  %v2816_v27 = vpop.f32.mrb[95].mxu1 }
 0x2f7   : > { %v5166_v20 = vadd.f32 %v3264_v36, %v2398_v58  ;;  %v3266_v35 = vpop.f32.mrb[31].mxu0  ;;  %v3474_v18 = vmax.f32 %v5164_v24, 0.0 }
 0x2f9   : > { %v3475_v43 = vmax.f32 %v5166_v20, 0.0 }
 0x2fb   : > { %v3531_v32 = vpack.c.bf16 %v3475_v43, %v3474_v18  ;;  %v6711_v8 = vpop.f32.mrb[96].mxu1 }
 0x2fc   : > { %v3269_v44 = vpop.f32.mrb[32].mxu0  ;;  %v2821_v42 = vpop.f32.mrb[97].mxu1 }
 0x2fd   : > { %v5168_v52 = vadd.f32 %v5167_v2, %v3269_v44  ;;  %v3271_v39 = vpop.f32.mrb[33].mxu0  ;;  %5052 = vmatmul.mubr.bf16.gmra.mrb[140].mxu1 %v3531_v32  ;;  %v6715_v40 = vpop.f32.mrb[98].mxu1 }
 0x2fe   : > { %v3272_v26 = vpop.f32.mrb[34].mxu0  ;;  %v2824_v56 = vpop.f32.mrb[99].mxu1 }
 0x2ff   : > { %v5170_v57 = vadd.f32 %v5169_v6, %v3272_v26  ;;  %v3274_v51 = vpop.f32.mrb[35].mxu0  ;;  %v3476_v59 = vmax.f32 %v5168_v52, 0.0 }
 0x301   : > { %v3477_v61 = vmax.f32 %v5170_v57, 0.0 }
 0x303   : > { %v3532_v62 = vpack.c.bf16 %v3477_v61, %v3476_v59  ;;  %v6719_v49 = vpop.f32.mrb[100].mxu1 }
 0x304   : > { %v3277_v7 = vpop.f32.mrb[36].mxu0  ;;  %v2829_v53 = vpop.f32.mrb[101].mxu1 }
 0x305   : > { %v5172_v38 = vadd.f32 %v5171_v63, %v3277_v7  ;;  %v3279_v25 = vpop.f32.mrb[37].mxu0  ;;  %5055 = vmatprep.mubr.bf16.mxu1 %v3532_v62  ;;  %v6723_v13 = vpop.f32.mrb[102].mxu1 }
 0x306   : > { %v3280_v58 = vpop.f32.mrb[38].mxu0  ;;  %v2832_v24 = vpop.f32.mrb[103].mxu1 }
 0x307   : > { %v5174_v33 = vadd.f32 %v5173_v5, %v3280_v58  ;;  %v3282_v36 = vpop.f32.mrb[39].mxu0  ;;  %v3478_v27 = vmax.f32 %v5172_v38, 0.0 }
 0x309   : > { %v3479_v20 = vmax.f32 %v5174_v33, 0.0 }
 0x30b   : > { %v3533_v35 = vpack.c.bf16 %v3479_v20, %v3478_v27  ;;  %v6727_v18 = vpop.f32.mrb[104].mxu1 }
 0x30c   : > { %v3285_v43 = vpop.f32.mrb[40].mxu0  ;;  %v2837_v2 = vpop.f32.mrb[105].mxu1 }
 0x30d   : > { %v5176_v32 = vadd.f32 %v5175_v11, %v3285_v43  ;;  %v3287_v44 = vpop.f32.mrb[41].mxu0  ;;  %5056 = vmatmul.mubr.bf16.gmra.mrb[144].mxu1 %v3533_v35  ;;  %v6731_v42 = vpop.f32.mrb[106].mxu1 }
 0x30e   : > { %v3288_v6 = vpop.f32.mrb[42].mxu0  ;;  %v2840_v52 = vpop.f32.mrb[107].mxu1 }
 0x30f   : > { %v5178_v39 = vadd.f32 %v5177_v19, %v3288_v6  ;;  %v3290_v26 = vpop.f32.mrb[43].mxu0  ;;  %v3480_v56 = vmax.f32 %v5176_v32, 0.0 }
 0x311   : > { %v3481_v57 = vmax.f32 %v5178_v39, 0.0 }
 0x313   : > { %v3534_v51 = vpack.c.bf16 %v3481_v57, %v3480_v56  ;;  %v6735_v59 = vpop.f32.mrb[108].mxu1 }
 0x314   : > { %v3293_v61 = vpop.f32.mrb[44].mxu0  ;;  %v2845_v63 = vpop.f32.mrb[109].mxu1 }
 0x315   : > { %v5180_v62 = vadd.f32 %v5179_v23, %v3293_v61  ;;  %v3295_v7 = vpop.f32.mrb[45].mxu0  ;;  %5059 = vmatprep.mubr.bf16.mxu1 %v3534_v51  ;;  %v6739_v53 = vpop.f32.mrb[110].mxu1 }
 0x316   : > { %v3296_v5 = vpop.f32.mrb[46].mxu0  ;;  %v2848_v38 = vpop.f32.mrb[111].mxu1 }
 0x317   : > { %v5182_v25 = vadd.f32 %v5181_v29, %v3296_v5  ;;  %v3298_v58 = vpop.f32.mrb[47].mxu0  ;;  %v3482_v24 = vmax.f32 %v5180_v62, 0.0 }
 0x319   : > { %v3483_v33 = vmax.f32 %v5182_v25, 0.0 }
 0x31b   : > { %v3535_v36 = vpack.c.bf16 %v3483_v33, %v3482_v24  ;;  %v6743_v27 = vpop.f32.mrb[112].mxu1 }
 0x31c   : > { %v3301_v20 = vpop.f32.mrb[48].mxu0  ;;  %v2853_v11 = vpop.f32.mrb[113].mxu1 }
 0x31d   : > { %v5184_v35 = vadd.f32 %v5183_v37, %v3301_v20  ;;  %v3303_v43 = vpop.f32.mrb[49].mxu0  ;;  %5060 = vmatmul.mubr.bf16.gmra.mrb[148].mxu1 %v3535_v36  ;;  %v6747_v2 = vpop.f32.mrb[114].mxu1 }
 0x31e   : > { %v3304_v19 = vpop.f32.mrb[50].mxu0  ;;  %v2856_v32 = vpop.f32.mrb[115].mxu1 }
 0x31f   : > { %v5186_v44 = vadd.f32 %v5185_v41, %v3304_v19  ;;  %v3306_v6 = vpop.f32.mrb[51].mxu0  ;;  %v3484_v52 = vmax.f32 %v5184_v35, 0.0 }
 0x321   : > { %v3485_v39 = vmax.f32 %v5186_v44, 0.0 }
 0x323   : > { %v3536_v26 = vpack.c.bf16 %v3485_v39, %v3484_v52  ;;  %v6751_v56 = vpop.f32.mrb[116].mxu1 }
 0x324   : > { %v3309_v57 = vpop.f32.mrb[52].mxu0  ;;  %v2861_v23 = vpop.f32.mrb[117].mxu1 }
 0x325   : > { %v5188_v51 = vadd.f32 %v5187_v46, %v3309_v57  ;;  %v3311_v61 = vpop.f32.mrb[53].mxu0  ;;  %5063 = vmatprep.mubr.bf16.mxu1 %v3536_v26  ;;  %v6755_v63 = vpop.f32.mrb[118].mxu1 }
 0x326   : > { %v3312_v29 = vpop.f32.mrb[54].mxu0  ;;  %v2864_v62 = vpop.f32.mrb[119].mxu1 }
 0x327   : > { %v5190_v7 = vadd.f32 %v5189_v28, %v3312_v29  ;;  %v3314_v5 = vpop.f32.mrb[55].mxu0  ;;  %v3486_v38 = vmax.f32 %v5188_v51, 0.0 }
 0x329   : > { %v3487_v25 = vmax.f32 %v5190_v7, 0.0 }
 0x32b   : > { %v3537_v58 = vpack.c.bf16 %v3487_v25, %v3486_v38  ;;  %v6759_v24 = vpop.f32.mrb[120].mxu1  ;;  %v5201_v25 = vadd.f32 %v6635_v31, %v6645_v50 }
 0x32c   : > { %v3317_v33 = vpop.f32.mrb[56].mxu0  ;;  %v2869_v37 = vpop.f32.mrb[121].mxu1 }
 0x32d   : > { %v5192_v36 = vadd.f32 %v5191_v55, %v3317_v33  ;;  %v3319_v20 = vpop.f32.mrb[57].mxu0  ;;  %5064 = vmatmul.mubr.bf16.gmra.mrb[152].mxu1 %v3537_v58  ;;  %v6763_v11 = vpop.f32.mrb[122].mxu1 }
 0x32e   : > { %v3320_v41 = vpop.f32.mrb[58].mxu0  ;;  %v2872_v35 = vpop.f32.mrb[123].mxu1  ;;  %v5203_v20 = vadd.f32 %v6635_v31, %v6649_v34  ;;  %v5209_v34 = vadd.f32 %v6635_v31, %v6665_v45 }
 0x32f   : > { %v5194_v43 = vadd.f32 %v5193_v60, %v3320_v41  ;;  %v3322_v19 = vpop.f32.mrb[59].mxu0  ;;  %v3488_v32 = vmax.f32 %v5192_v36, 0.0 }
 0x331   : > { %v3489_v44 = vmax.f32 %v5194_v43, 0.0 }
 0x333   : > { %v3538_v6 = vpack.c.bf16 %v3489_v44, %v3488_v32  ;;  %v6767_v52 = vpop.f32.mrb[124].mxu1 }
 0x334   : > { %v3325_v39 = vpop.f32.mrb[60].mxu0  ;;  %v2877_v46 = vpop.f32.mrb[125].mxu1 }
 0x335   : > { %v5196_v26 = vadd.f32 %v5195_v3, %v3325_v39  ;;  %v3327_v57 = vpop.f32.mrb[61].mxu0  ;;  %5067 = vmatprep.mubr.bf16.mxu1 %v3538_v6  ;;  %v6771_v23 = vpop.f32.mrb[126].mxu1  ;;  %v5207_v39 = vadd.f32 %v6635_v31, %v6659_v47  ;;  %v5213_v47 = vadd.f32 %v6635_v31, %v6675_v14 }
 0x336   : > { %v3328_v28 = vpop.f32.mrb[62].mxu0  ;;  %v2880_v51 = vpop.f32.mrb[127].mxu1 }
 0x337   : > { %v5198_v61 = vadd.f32 %v5197_v9, %v3328_v28  ;;  %v3330_v29 = vpop.f32.mrb[63].mxu0  ;;  %v3490_v62 = vmax.f32 %v5196_v26, 0.0 }
 0x339   : > { %v3491_v7 = vmax.f32 %v5198_v61, 0.0 }
 0x33b   : > { %v3539_v5 = vpack.c.bf16 %v3491_v7, %v3490_v62  ;;  %v5211_v62 = vadd.f32 %v6635_v31, %v6669_v15  ;;  %v5217_v15 = vadd.f32 %v6635_v31, %v6683_v1 }
 0x33c   : > { %v3333_v38 = vpop.f32.mrb[64].mxu0 }
 0x33d   : > { %v5200_v12 = vadd.f32 %v5199_v17, %v3333_v38  ;;  %v3335_v55 = vpop.f32.mrb[65].mxu0  ;;  %5068 = vmatmul.mubr.bf16.gmra.mrb[156].mxu1 %v3539_v5 }
 0x33e   : > { %v3336_v58 = vpop.f32.mrb[66].mxu0 }
 0x33f   : > { %v5202_v33 = vadd.f32 %v5201_v25, %v3336_v58  ;;  %v3338_v37 = vpop.f32.mrb[67].mxu0  ;;  %v3492_v60 = vmax.f32 %v5200_v12, 0.0 }
 0x341   : > { %v3493_v36 = vmax.f32 %v5202_v33, 0.0  ;;  %v5215_v33 = vadd.f32 %v6635_v31, %v6679_v10  ;;  %v5221_v10 = vadd.f32 %v6635_v31, %v6691_v22 }
 0x343   : > { %v3540_v41 = vpack.c.bf16 %v3493_v36, %v3492_v60 }
 0x344   : > { %v3341_v35 = vpop.f32.mrb[68].mxu0 }
 0x345   : > { %v5204_v43 = vadd.f32 %v5203_v20, %v3341_v35  ;;  %v3343_v19 = vpop.f32.mrb[69].mxu0  ;;  %5071 = vmatprep.mubr.bf16.mxu1 %v3540_v41 }
 0x346   : > { %v3344_v50 = vpop.f32.mrb[70].mxu0  ;;  %v5219_v19 = vadd.f32 %v6635_v31, %v6687_v30  ;;  %v5225_v30 = vadd.f32 %v6635_v31, %v6699_v48 }
 0x347   : > { %v5206_v32 = vadd.f32 %v5205_v16, %v3344_v50  ;;  %v3346_v44 = vpop.f32.mrb[71].mxu0  ;;  %v3494_v3 = vmax.f32 %v5204_v43, 0.0 }
 0x349   : > { %v3495_v6 = vmax.f32 %v5206_v32, 0.0 }
 0x34b   : > { %v3541_v46 = vpack.c.bf16 %v3495_v6, %v3494_v3 }
 0x34c   : > { %v3349_v9 = vpop.f32.mrb[72].mxu0 }
 0x34d   : > { %v5208_v26 = vadd.f32 %v5207_v39, %v3349_v9  ;;  %v3351_v57 = vpop.f32.mrb[73].mxu0  ;;  %5072 = vmatmul.mubr.bf16.gmra.mrb[160].mxu1 %v3541_v46 }
 0x34e   : > { %v3352_v21 = vpop.f32.mrb[74].mxu0 }
 0x34f   : > { %v5210_v28 = vadd.f32 %v5209_v34, %v3352_v21  ;;  %v3354_v51 = vpop.f32.mrb[75].mxu0  ;;  %v3496_v61 = vmax.f32 %v5208_v26, 0.0  ;;  %v5223_v34 = vadd.f32 %v6635_v31, %v6695_v54  ;;  %v5229_v54 = vadd.f32 %v6635_v31, %v6707_v0 }
 0x351   : > { %v3497_v29 = vmax.f32 %v5210_v28, 0.0 }
 0x353   : > { %v3542_v7 = vpack.c.bf16 %v3497_v29, %v3496_v61 }
 0x354   : > { %v3357_v17 = vpop.f32.mrb[76].mxu0 }
 0x355   : > { %v5212_v5 = vadd.f32 %v5211_v62, %v3357_v17  ;;  %v3359_v38 = vpop.f32.mrb[77].mxu0  ;;  %5075 = vmatprep.mubr.bf16.mxu1 %v3542_v7  ;;  %v5227_v7 = vadd.f32 %v6635_v31, %v6703_v4  ;;  %v5233_v4 = vadd.f32 %v6635_v31, %v6715_v40 }
 0x356   : > { %v3360_v45 = vpop.f32.mrb[78].mxu0 }
 0x357   : > { %v5214_v25 = vadd.f32 %v5213_v47, %v3360_v45  ;;  %v3362_v12 = vpop.f32.mrb[79].mxu0  ;;  %v3498_v55 = vmax.f32 %v5212_v5, 0.0 }
 0x359   : > { %v3499_v58 = vmax.f32 %v5214_v25, 0.0 }
 0x35b   : > { %v3543_v37 = vpack.c.bf16 %v3499_v58, %v3498_v55  ;;  %v5231_v58 = vadd.f32 %v6635_v31, %v6711_v8  ;;  %v5237_v8 = vadd.f32 %v6635_v31, %v6723_v13 }
 0x35c   : > { %v3365_v60 = vpop.f32.mrb[80].mxu0 }
 0x35d   : > { %v5216_v36 = vadd.f32 %v5215_v33, %v3365_v60  ;;  %v3367_v20 = vpop.f32.mrb[81].mxu0  ;;  %5076 = vmatmul.mubr.bf16.gmra.mrb[164].mxu1 %v3543_v37 }
 0x35e   : > { %v3368_v14 = vpop.f32.mrb[82].mxu0 }
 0x35f   : > { %v5218_v41 = vadd.f32 %v5217_v15, %v3368_v14  ;;  %v3370_v35 = vpop.f32.mrb[83].mxu0  ;;  %v3500_v16 = vmax.f32 %v5216_v36, 0.0 }
 0x360   : > { %v5235_v35 = vadd.f32 %v6635_v31, %v6719_v49  ;;  %v5241_v49 = vadd.f32 %v6635_v31, %v6731_v42 }
 0x361   : > { %v3501_v43 = vmax.f32 %v5218_v41, 0.0 }
 0x363   : > { %v3544_v50 = vpack.c.bf16 %v3501_v43, %v3500_v16 }
 0x364   : > { %v3373_v32 = vpop.f32.mrb[84].mxu0 }
 0x365   : > { %v5220_v44 = vadd.f32 %v5219_v19, %v3373_v32  ;;  %v3375_v3 = vpop.f32.mrb[85].mxu0  ;;  %5079 = vmatprep.mubr.bf16.mxu1 %v3544_v50 }
 0x366   : > { %v3376_v1 = vpop.f32.mrb[86].mxu0 }
 0x367   : > { %v5222_v6 = vadd.f32 %v5221_v10, %v3376_v1  ;;  %v3378_v39 = vpop.f32.mrb[87].mxu0  ;;  %v3502_v46 = vmax.f32 %v5220_v44, 0.0  ;;  %v5239_v1 = vadd.f32 %v6635_v31, %v6727_v18  ;;  %v5245_v18 = vadd.f32 %v6635_v31, %v6739_v53 }
 0x369   : > { %v3503_v9 = vmax.f32 %v5222_v6, 0.0 }
 0x36b   : > { %v3545_v26 = vpack.c.bf16 %v3503_v9, %v3502_v46 }
 0x36c   : > { %v3381_v57 = vpop.f32.mrb[88].mxu0 }
 0x36d   : > { %v5224_v21 = vadd.f32 %v5223_v34, %v3381_v57  ;;  %v3383_v28 = vpop.f32.mrb[89].mxu0  ;;  %5080 = vmatmul.mubr.bf16.gmra.mrb[168].mxu1 %v3545_v26 }
 0x36e   : > { %v3384_v22 = vpop.f32.mrb[90].mxu0 }
 0x36f   : > { %v5226_v51 = vadd.f32 %v5225_v30, %v3384_v22  ;;  %v3386_v61 = vpop.f32.mrb[91].mxu0  ;;  %v3504_v29 = vmax.f32 %v5224_v21, 0.0  ;;  %v5243_v21 = vadd.f32 %v6635_v31, %v6735_v59 }
 0x371   : > { %v3505_v62 = vmax.f32 %v5226_v51, 0.0 }
 0x373   : > { %v3546_v17 = vpack.c.bf16 %v3505_v62, %v3504_v29 }
 0x374   : > { %v3389_v47 = vpop.f32.mrb[92].mxu0 }
 0x375   : > { %v5228_v5 = vadd.f32 %v5227_v7, %v3389_v47  ;;  %v3391_v38 = vpop.f32.mrb[93].mxu0  ;;  %5083 = vmatprep.mubr.bf16.mxu1 %v3546_v17  ;;  %v5247_v47 = vadd.f32 %v6635_v31, %v6743_v27 }
 0x376   : > { %v3392_v48 = vpop.f32.mrb[94].mxu0 }
 0x377   : > { %v5230_v45 = vadd.f32 %v5229_v54, %v3392_v48  ;;  %v3394_v25 = vpop.f32.mrb[95].mxu0  ;;  %v3506_v12 = vmax.f32 %v5228_v5, 0.0  ;;  %v5249_v5 = vadd.f32 %v6635_v31, %v6747_v2  ;;  %v5251_v2 = vadd.f32 %v6635_v31, %v6751_v56 }
 0x378   : > { %v5255_v56 = vadd.f32 %v6635_v31, %v6759_v24  ;;  %v5259_v24 = vadd.f32 %v6635_v31, %v6767_v52 }
 0x379   : > { %v3507_v55 = vmax.f32 %v5230_v45, 0.0 }
 0x37b   : > { %v3547_v33 = vpack.c.bf16 %v3507_v55, %v3506_v12 }
 0x37c   : > { %v3397_v37 = vpop.f32.mrb[96].mxu0 }
 0x37d   : > { %v5232_v60 = vadd.f32 %v5231_v58, %v3397_v37  ;;  %v3399_v15 = vpop.f32.mrb[97].mxu0  ;;  %5084 = vmatmul.mubr.bf16.gmra.mrb[172].mxu1 %v3547_v33 }
 0x37e   : > { %v3400_v0 = vpop.f32.mrb[98].mxu0 }
 0x37f   : > { %v5234_v36 = vadd.f32 %v5233_v4, %v3400_v0  ;;  %v3402_v20 = vpop.f32.mrb[99].mxu0  ;;  %v3508_v14 = vmax.f32 %v5232_v60, 0.0 }
 0x381   : > { %v3509_v41 = vmax.f32 %v5234_v36, 0.0  ;;  %v5253_v36 = vadd.f32 %v6635_v31, %v6755_v63 }
 0x383   : > { %v3548_v16 = vpack.c.bf16 %v3509_v41, %v3508_v14 }
 0x384   : > { %v3405_v43 = vpop.f32.mrb[100].mxu0 }
 0x385   : > { %v5236_v19 = vadd.f32 %v5235_v35, %v3405_v43  ;;  %v3407_v50 = vpop.f32.mrb[101].mxu0  ;;  %5087 = vmatprep.mubr.bf16.mxu1 %v3548_v16 }
 0x386   : > { %v3408_v40 = vpop.f32.mrb[102].mxu0 }
 0x387   : > { %v5238_v32 = vadd.f32 %v5237_v8, %v3408_v40  ;;  %v3410_v10 = vpop.f32.mrb[103].mxu0  ;;  %v3510_v44 = vmax.f32 %v5236_v19, 0.0  ;;  %v5257_v40 = vadd.f32 %v6635_v31, %v6763_v11 }
 0x389   : > { %v3511_v3 = vmax.f32 %v5238_v32, 0.0 }
 0x38b   : > { %v3549_v6 = vpack.c.bf16 %v3511_v3, %v3510_v44 }
 0x38c   : > { %v3413_v39 = vpop.f32.mrb[104].mxu0 }
 0x38d   : > { %v5240_v46 = vadd.f32 %v5239_v1, %v3413_v39  ;;  %v3415_v9 = vpop.f32.mrb[105].mxu0  ;;  %5088 = vmatmul.mubr.bf16.gmra.mrb[176].mxu1 %v3549_v6 }
 0x38e   : > { %v3416_v13 = vpop.f32.mrb[106].mxu0 }
 0x38f   : > { %v5242_v34 = vadd.f32 %v5241_v49, %v3416_v13  ;;  %v3418_v26 = vpop.f32.mrb[107].mxu0  ;;  %v3512_v57 = vmax.f32 %v5240_v46, 0.0 }
 0x391   : > { %v3513_v30 = vmax.f32 %v5242_v34, 0.0 }
 0x393   : > { %v3550_v28 = vpack.c.bf16 %v3513_v30, %v3512_v57  ;;  %v5261_v57 = vadd.f32 %v6635_v31, %v6771_v23 }
 0x394   : > { %v3421_v22 = vpop.f32.mrb[108].mxu0 }
 0x395   : > { %v5244_v51 = vadd.f32 %v5243_v21, %v3421_v22  ;;  %v3423_v42 = vpop.f32.mrb[109].mxu0  ;;  %5091 = vmatprep.mubr.bf16.mxu1 %v3550_v28 }
 0x396   : > { %v3424_v61 = vpop.f32.mrb[110].mxu0 }
 0x397   : > { %v5246_v29 = vadd.f32 %v5245_v18, %v3424_v61  ;;  %v3426_v62 = vpop.f32.mrb[111].mxu0  ;;  %v3514_v7 = vmax.f32 %v5244_v51, 0.0 }
 0x399   : > { %v3515_v17 = vmax.f32 %v5246_v29, 0.0 }
 0x39b   : > { %v3551_v59 = vpack.c.bf16 %v3515_v17, %v3514_v7 }
 0x39c   : > { %v3429_v54 = vpop.f32.mrb[112].mxu0 }
 0x39d   : > { %v5248_v38 = vadd.f32 %v5247_v47, %v3429_v54  ;;  %v3431_v53 = vpop.f32.mrb[113].mxu0  ;;  %5092 = vmatmul.mubr.bf16.gmra.mrb[180].mxu1 %v3551_v59 }
 0x39e   : > { %v3432_v48 = vpop.f32.mrb[114].mxu0 }
 0x39f   : > { %v5250_v45 = vadd.f32 %v5249_v5, %v3432_v48  ;;  %v3434_v25 = vpop.f32.mrb[115].mxu0  ;;  %v3516_v55 = vmax.f32 %v5248_v38, 0.0 }
 0x3a0   : > { %v5041_v12 = vpop.f32.mrb[128].mxu1 }
 0x3a1   : > { %v3517_v58 = vmax.f32 %v5250_v45, 0.0  ;;  %v3654_v33 = vpop.f32.mrb[129].mxu1 }
 0x3a2   : > { %v5042_v27 = vpop.f32.mrb[130].mxu1 }
 0x3a3   : > { %v3552_v37 = vpack.c.bf16 %v3517_v58, %v3516_v55  ;;  %v4800_v4 = vpack.c.bf16 %v5042_v27, %v5041_v12  ;;  %v3657_v60 = vpop.f32.mrb[131].mxu1 }
 0x3a4   : > { %v4795_v15 = vpack.c.bf16 %v3657_v60, %v3654_v33  ;;  %v3437_v0 = vpop.f32.mrb[116].mxu0 }
 0x3a5   : > { %4952 = vst [vmem:[%s6830_s8 + $0x8] sm:$0xff] %v4800_v4   ;;  %v5252_v20 = vadd.f32 %v5251_v2, %v3437_v0  ;;  %v3439_v14 = vpop.f32.mrb[117].mxu0  ;;  %5095 = vmatprep.mubr.bf16.mxu1 %v3552_v37 }
 0x3a6   : > { %4796 = vst [vmem:[%s6830_s8] sm:$0xff] %v4795_v15   ;;  %v3440_v41 = vpop.f32.mrb[118].mxu0 }
 0x3a7   : > { %v5254_v35 = vadd.f32 %v5253_v36, %v3440_v41  ;;  %v3442_v16 = vpop.f32.mrb[119].mxu0  ;;  %v3518_v43 = vmax.f32 %v5252_v20, 0.0 }
 0x3a9   : > { %v3519_v8 = vmax.f32 %v5254_v35, 0.0 }
 0x3ab   : > { %v3553_v19 = vpack.c.bf16 %v3519_v8, %v3518_v43 }
 0x3ac   : > { %v3445_v50 = vpop.f32.mrb[120].mxu0 }
 0x3ad   : > { %v5256_v32 = vadd.f32 %v5255_v56, %v3445_v50  ;;  %v3447_v63 = vpop.f32.mrb[121].mxu0  ;;  %5096 = vmatmul.mubr.bf16.gmra.mrb[184].mxu1 %v3553_v19 }
 0x3ae   : > { %v3448_v10 = vpop.f32.mrb[122].mxu0 }
 0x3af   : > { %v5258_v44 = vadd.f32 %v5257_v40, %v3448_v10  ;;  %v3450_v3 = vpop.f32.mrb[123].mxu0  ;;  %v3520_v6 = vmax.f32 %v5256_v32, 0.0 }
 0x3b0   : > { %v5045_v1 = vpop.f32.mrb[132].mxu1 }
 0x3b1   : > { %v3521_v39 = vmax.f32 %v5258_v44, 0.0  ;;  %v3670_v49 = vpop.f32.mrb[133].mxu1 }
 0x3b2   : > { %v5046_v46 = vpop.f32.mrb[134].mxu1 }
 0x3b3   : > { %v3554_v9 = vpack.c.bf16 %v3521_v39, %v3520_v6  ;;  %v4810_v13 = vpack.c.bf16 %v5046_v46, %v5045_v1  ;;  %v3673_v34 = vpop.f32.mrb[135].mxu1 }
 0x3b4   : > { %v4805_v11 = vpack.c.bf16 %v3673_v34, %v3670_v49  ;;  %v3453_v26 = vpop.f32.mrb[124].mxu0 }
 0x3b5   : > { %4954 = vst [vmem:[%s6830_s8 + $0x18] sm:$0xff] %v4810_v13   ;;  %v5260_v30 = vadd.f32 %v5259_v24, %v3453_v26  ;;  %v3455_v21 = vpop.f32.mrb[125].mxu0  ;;  %5099 = vmatprep.mubr.bf16.mxu1 %v3554_v9 }
 0x3b6   : > { %4953 = vst [vmem:[%s6830_s8 + $0x10] sm:$0xff] %v4805_v11   ;;  %v3456_v28 = vpop.f32.mrb[126].mxu0 }
 0x3b7   : > { %v5262_v22 = vadd.f32 %v5261_v57, %v3456_v28  ;;  %v3458_v18 = vpop.f32.mrb[127].mxu0  ;;  %v3522_v51 = vmax.f32 %v5260_v30, 0.0 }
 0x3b9   : > { %v3523_v52 = vmax.f32 %v5262_v22, 0.0 }
 0x3bb   : > { %v3555_v42 = vpack.c.bf16 %v3523_v52, %v3522_v51 }
 0x3bd   : > { %5100 = vmatmul.mubr.bf16.gmra.mrb[188].mxu1 %v3555_v42 }
 0x3c0   : > { %v5049_v61 = vpop.f32.mrb[136].mxu1 }
 0x3c1   : > { %v3686_v29 = vpop.f32.mrb[137].mxu1 }
 0x3c2   : > { %v5050_v62 = vpop.f32.mrb[138].mxu1 }
 0x3c3   : > { %v4820_v31 = vpack.c.bf16 %v5050_v62, %v5049_v61  ;;  %v3689_v23 = vpop.f32.mrb[139].mxu1 }
 0x3c4   : > { %v4815_v7 = vpack.c.bf16 %v3689_v23, %v3686_v29 }
 0x3c5   : > { %4956 = vst [vmem:[%s6830_s8 + $0x28] sm:$0xff] %v4820_v31  }
 0x3c6   : > { %4955 = vst [vmem:[%s6830_s8 + $0x20] sm:$0xff] %v4815_v7  }
 0x3d0   : > { %v5053_v17 = vpop.f32.mrb[140].mxu1 }
 0x3d1   : > { %v3702_v47 = vpop.f32.mrb[141].mxu1 }
 0x3d2   : > { %v5054_v59 = vpop.f32.mrb[142].mxu1 }
 0x3d3   : > { %v4830_v54 = vpack.c.bf16 %v5054_v59, %v5053_v17  ;;  %v3705_v5 = vpop.f32.mrb[143].mxu1 }
 0x3d4   : > { %v4825_v38 = vpack.c.bf16 %v3705_v5, %v3702_v47 }
 0x3d5   : > { %4958 = vst [vmem:[%s6830_s8 + $0x38] sm:$0xff] %v4830_v54  }
 0x3d6   : > { %4957 = vst [vmem:[%s6830_s8 + $0x30] sm:$0xff] %v4825_v38  }
 0x3e0   : > { %v5057_v53 = vpop.f32.mrb[144].mxu1 }
 0x3e1   : > { %v3718_v48 = vpop.f32.mrb[145].mxu1 }
 0x3e2   : > { %v5058_v45 = vpop.f32.mrb[146].mxu1 }
 0x3e3   : > { %v4840_v25 = vpack.c.bf16 %v5058_v45, %v5057_v53  ;;  %v3721_v12 = vpop.f32.mrb[147].mxu1 }
 0x3e4   : > { %v4835_v55 = vpack.c.bf16 %v3721_v12, %v3718_v48 }
 0x3e5   : > { %4960 = vst [vmem:[%s6830_s8 + $0x48] sm:$0xff] %v4840_v25  }
 0x3e6   : > { %4959 = vst [vmem:[%s6830_s8 + $0x40] sm:$0xff] %v4835_v55  }
 0x3f0   : > { %v5061_v58 = vpop.f32.mrb[148].mxu1 }
 0x3f1   : > { %v3734_v33 = vpop.f32.mrb[149].mxu1 }
 0x3f2   : > { %v5062_v27 = vpop.f32.mrb[150].mxu1 }
 0x3f3   : > { %v4850_v2 = vpack.c.bf16 %v5062_v27, %v5061_v58  ;;  %v3737_v37 = vpop.f32.mrb[151].mxu1 }
 0x3f4   : > { %v4845_v4 = vpack.c.bf16 %v3737_v37, %v3734_v33 }
 0x3f5   : > { %4962 = vst [vmem:[%s6830_s8 + $0x58] sm:$0xff] %v4850_v2  }
 0x3f6   : > { %4961 = vst [vmem:[%s6830_s8 + $0x50] sm:$0xff] %v4845_v4  }
 0x400   : > { %v5065_v60 = vpop.f32.mrb[152].mxu1 }
 0x401   : > { %v3750_v15 = vpop.f32.mrb[153].mxu1 }
 0x402   : > { %v5066_v0 = vpop.f32.mrb[154].mxu1 }
 0x403   : > { %v4860_v36 = vpack.c.bf16 %v5066_v0, %v5065_v60  ;;  %v3753_v20 = vpop.f32.mrb[155].mxu1 }
 0x404   : > { %v4855_v14 = vpack.c.bf16 %v3753_v20, %v3750_v15 }
 0x405   : > { %4964 = vst [vmem:[%s6830_s8 + $0x68] sm:$0xff] %v4860_v36  }
 0x406   : > { %4963 = vst [vmem:[%s6830_s8 + $0x60] sm:$0xff] %v4855_v14  }
 0x410   : > { %v5069_v41 = vpop.f32.mrb[156].mxu1 }
 0x411   : > { %v3766_v35 = vpop.f32.mrb[157].mxu1 }
 0x412   : > { %v5070_v16 = vpop.f32.mrb[158].mxu1 }
 0x413   : > { %v4870_v43 = vpack.c.bf16 %v5070_v16, %v5069_v41  ;;  %v3769_v8 = vpop.f32.mrb[159].mxu1 }
 0x414   : > { %v4865_v56 = vpack.c.bf16 %v3769_v8, %v3766_v35 }
 0x415   : > { %4966 = vst [vmem:[%s6830_s8 + $0x78] sm:$0xff] %v4870_v43  }
 0x416   : > { %4965 = vst [vmem:[%s6830_s8 + $0x70] sm:$0xff] %v4865_v56  }
 0x420   : > { %v5073_v19 = vpop.f32.mrb[160].mxu1 }
 0x421   : > { %v3782_v50 = vpop.f32.mrb[161].mxu1 }
 0x422   : > { %v5074_v40 = vpop.f32.mrb[162].mxu1 }
 0x423   : > { %v4880_v32 = vpack.c.bf16 %v5074_v40, %v5073_v19  ;;  %v3785_v63 = vpop.f32.mrb[163].mxu1 }
 0x424   : > { %v4875_v10 = vpack.c.bf16 %v3785_v63, %v3782_v50 }
 0x425   : > { %4968 = vst [vmem:[%s6830_s8 + $0x88] sm:$0xff] %v4880_v32  }
 0x426   : > { %4967 = vst [vmem:[%s6830_s8 + $0x80] sm:$0xff] %v4875_v10  }
 0x430   : > { %v5077_v44 = vpop.f32.mrb[164].mxu1 }
 0x431   : > { %v3798_v3 = vpop.f32.mrb[165].mxu1 }
 0x432   : > { %v5078_v1 = vpop.f32.mrb[166].mxu1 }
 0x433   : > { %v4890_v6 = vpack.c.bf16 %v5078_v1, %v5077_v44  ;;  %v3801_v39 = vpop.f32.mrb[167].mxu1 }
 0x434   : > { %v4885_v49 = vpack.c.bf16 %v3801_v39, %v3798_v3 }
 0x435   : > { %4970 = vst [vmem:[%s6830_s8 + $0x98] sm:$0xff] %v4890_v6  }
 0x436   : > { %4969 = vst [vmem:[%s6830_s8 + $0x90] sm:$0xff] %v4885_v49  }
 0x440   : > { %v5081_v46 = vpop.f32.mrb[168].mxu1 }
 0x441   : > { %v3814_v24 = vpop.f32.mrb[169].mxu1 }
 0x442   : > { %v5082_v9 = vpop.f32.mrb[170].mxu1 }
 0x443   : > { %v4900_v13 = vpack.c.bf16 %v5082_v9, %v5081_v46  ;;  %v3817_v34 = vpop.f32.mrb[171].mxu1 }
 0x444   : > { %v4895_v11 = vpack.c.bf16 %v3817_v34, %v3814_v24 }
 0x445   : > { %4972 = vst [vmem:[%s6830_s8 + $0xa8] sm:$0xff] %v4900_v13  }
 0x446   : > { %4971 = vst [vmem:[%s6830_s8 + $0xa0] sm:$0xff] %v4895_v11  }
 0x450   : > { %v5085_v26 = vpop.f32.mrb[172].mxu1 }
 0x451   : > { %v3830_v57 = vpop.f32.mrb[173].mxu1 }
 0x452   : > { %v5086_v30 = vpop.f32.mrb[174].mxu1 }
 0x453   : > { %v4910_v21 = vpack.c.bf16 %v5086_v30, %v5085_v26  ;;  %v3833_v28 = vpop.f32.mrb[175].mxu1 }
 0x454   : > { %v4905_v22 = vpack.c.bf16 %v3833_v28, %v3830_v57 }
 0x455   : > { %4974 = vst [vmem:[%s6830_s8 + $0xb8] sm:$0xff] %v4910_v21  }
 0x456   : > { %4973 = vst [vmem:[%s6830_s8 + $0xb0] sm:$0xff] %v4905_v22  }
 0x460   : > { %v5089_v18 = vpop.f32.mrb[176].mxu1 }
 0x461   : > { %v3846_v51 = vpop.f32.mrb[177].mxu1 }
 0x462   : > { %v5090_v52 = vpop.f32.mrb[178].mxu1 }
 0x463   : > { %v4920_v42 = vpack.c.bf16 %v5090_v52, %v5089_v18  ;;  %v3849_v61 = vpop.f32.mrb[179].mxu1 }
 0x464   : > { %v4915_v29 = vpack.c.bf16 %v3849_v61, %v3846_v51 }
 0x465   : > { %4976 = vst [vmem:[%s6830_s8 + $0xc8] sm:$0xff] %v4920_v42  }
 0x466   : > { %4975 = vst [vmem:[%s6830_s8 + $0xc0] sm:$0xff] %v4915_v29  }
 0x470   : > { %v5093_v62 = vpop.f32.mrb[180].mxu1 }
 0x471   : > { %v3862_v31 = vpop.f32.mrb[181].mxu1 }
 0x472   : > { %v5094_v23 = vpop.f32.mrb[182].mxu1 }
 0x473   : > { %v4930_v7 = vpack.c.bf16 %v5094_v23, %v5093_v62  ;;  %v3865_v17 = vpop.f32.mrb[183].mxu1 }
 0x474   : > { %v4925_v47 = vpack.c.bf16 %v3865_v17, %v3862_v31 }
 0x475   : > { %4978 = vst [vmem:[%s6830_s8 + $0xd8] sm:$0xff] %v4930_v7  }
 0x476   : > { %4977 = vst [vmem:[%s6830_s8 + $0xd0] sm:$0xff] %v4925_v47  }
 0x480   : > { %v5097_v59 = vpop.f32.mrb[184].mxu1 }
 0x481   : > { %v3878_v54 = vpop.f32.mrb[185].mxu1 }
 0x482   : > { %v5098_v5 = vpop.f32.mrb[186].mxu1 }
 0x483   : > { %v4940_v38 = vpack.c.bf16 %v5098_v5, %v5097_v59  ;;  %v3881_v53 = vpop.f32.mrb[187].mxu1 }
 0x484   : > { %v4935_v48 = vpack.c.bf16 %v3881_v53, %v3878_v54 }
 0x485   : > { %4980 = vst [vmem:[%s6830_s8 + $0xe8] sm:$0xff] %v4940_v38  }
 0x486   : > { %4979 = vst [vmem:[%s6830_s8 + $0xe0] sm:$0xff] %v4935_v48  }
 0x490   : > { %v5101_v45 = vpop.f32.mrb[188].mxu1 }
 0x491   : > { %v3894_v25 = vpop.f32.mrb[189].mxu1 }
 0x492   : > { %v5102_v12 = vpop.f32.mrb[190].mxu1 }
 0x493   : > { %v4950_v55 = vpack.c.bf16 %v5102_v12, %v5101_v45  ;;  %v3897_v58 = vpop.f32.mrb[191].mxu1 }
 0x494   : > { %v4945_v33 = vpack.c.bf16 %v3897_v58, %v3894_v25 }
 0x495   : > { %4982 = vst [vmem:[%s6830_s8 + $0xf8] sm:$0xff] %v4950_v55  }
 0x496   : > { %4981 = vst [vmem:[%s6830_s8 + $0xf0] sm:$0xff] %v4945_v33  }
 0x497 PF: > { %p15_p3 = scmp.ge.s32.totalorder %s5835_s20, 4   ;;  %s6909_s15 = smov %s5772_s16 }
 0x498   : > { %s6910_s16 = smov %s5776_s17  ;;  %s6911_s17 = smov %s5845_s23 }
 0x499   : > { %s6912_s18 = smov %s5835_s20  ;;  %17 = sbr.rel (!%p15_p3) target bundleno = 4 (0x4), region = 84 }
 0x4a0   :  { %4251 = vsyncpa [#allocation3], 1 }
 0x4a1   :  { %4253 = vsyncpa [#allocation3 + $0x1], 1 }
 0x4a2   :  { %4254 = vsyncpa [#allocation5], 1 }

// kernel: gcn_forward.5
= control target key start
LH: loop header
LB: loop body
LE: loop exit
PB: predicated region body
PF: predicated region fallthrough
CT: control target
= control target key end

     0   :  { %s4329_s12 = smov 0   ;;  %s5017_s0 = inlined_call_operand.vmem [shape: bf16[1024,1024], index: 0, kind: input, shape index: {}]   ;;  %s5018_s1 = inlined_call_operand.vmem [shape: bf16[1024,128], index: 1, kind: input, shape index: {}]   ;;  %s5019_s2 = inlined_call_operand.vmem [shape: f32[1,128], index: 2, kind: input, shape index: {}]   ;;  %s5020_s3 = inlined_call_operand.vmem [shape: f32[1024,128], index: 3, kind: output, shape index: {}]  }
   0x1 LB: > { %s3509_s13 = sadd.s32 4294967295, %s4306_s12   ;;  %p3513_p0 = scmp.ge.s32.totalorder %s4306_s12, 1  ;;  %s4306_s12 = sphi %s4329_s12, %s13_s12  }
   0x2   : > { %p139_p1 = scmp.lt.s32.totalorder %s4306_s12, 3 }
   0x4   : > { %p140_p2 = pnand %p3513_p0, %p139_p1 }
   0x5   : > { %v4236_v0 = vld [vmem:[%s5018_s1] sm:$0xff] (!%p140_p2)   ;;  %v4308_v1 = vmov (!%p140_p2), 0   ;;  %v4238_v3 = vld [vmem:[%s5018_s1 + $0x8] sm:$0xff] (!%p140_p2)   ;;  %v4240_v5 = vld [vmem:[%s5018_s1 + $0x10] sm:$0xff] (!%p140_p2)   ;;  %s3514_s7 = sshll.u32 (!%p140_p2), %s3509_s13, 6 }
   0x6   : > { %143 = sbr.rel (%p140_p2) target bundleno = 793 (0x319), region = 32  ;;  %2233 = vmatprep.subr.bf16.mxu1 (!%p140_p2), %v4308_v1  ;;  %2811 = vmatprep.subr.bf16.mxu0 (!%p140_p2), %v4308_v1  ;;  %v4237_v2 = vld [vmem:[%s5018_s1 + $0x100] sm:$0xff] (!%p140_p2)   ;;  %v4239_v4 = vld [vmem:[%s5018_s1 + $0x108] sm:$0xff] (!%p140_p2)   ;;  %v4241_v6 = vld [vmem:[%s5018_s1 + $0x110] sm:$0xff] (!%p140_p2)   ;;  %p165_p3 = scmp.lt.s32.totalorder (!%p140_p2), %s3514_s7, 127 }
   0x7   : > { %2234 = vmatpush1.bf16.msra.mxu1 (!%p140_p2), %v4236_v0  ;;  %2812 = vmatpush1.bf16.msra.mxu0 (!%p140_p2), %v4237_v2  ;;  %v4242_v7 = vld [vmem:[%s5018_s1 + $0x18] sm:$0xff] (!%p140_p2)   ;;  %v4244_v9 = vld [vmem:[%s5018_s1 + $0x20] sm:$0xff] (!%p140_p2)   ;;  %v4246_v11 = vld [vmem:[%s5018_s1 + $0x28] sm:$0xff] (!%p140_p2)  }
   0x8   : > { %2235 = vmatprep.subr.bf16.mxu1 (!%p140_p2), %v4308_v1  ;;  %2813 = vmatprep.subr.bf16.mxu0 (!%p140_p2), %v4308_v1  ;;  %v4243_v8 = vld [vmem:[%s5018_s1 + $0x118] sm:$0xff] (!%p140_p2)   ;;  %v4245_v10 = vld [vmem:[%s5018_s1 + $0x120] sm:$0xff] (!%p140_p2)   ;;  %v4247_v12 = vld [vmem:[%s5018_s1 + $0x128] sm:$0xff] (!%p140_p2)  }
   0x9   : > { %v4248_v13 = vld [vmem:[%s5018_s1 + $0x30] sm:$0xff] (!%p140_p2)   ;;  %v4250_v15 = vld [vmem:[%s5018_s1 + $0x38] sm:$0xff] (!%p140_p2)   ;;  %v4252_v17 = vld [vmem:[%s5018_s1 + $0x40] sm:$0xff] (!%p140_p2)  }
   0xa   : > { %v4249_v14 = vld [vmem:[%s5018_s1 + $0x130] sm:$0xff] (!%p140_p2)   ;;  %v4251_v16 = vld [vmem:[%s5018_s1 + $0x138] sm:$0xff] (!%p140_p2)   ;;  %v4253_v18 = vld [vmem:[%s5018_s1 + $0x140] sm:$0xff] (!%p140_p2)  }
   0xb   : > { %2236 = vmatpush1.bf16.msra.mxu1 (!%p140_p2), %v4238_v3  ;;  %2814 = vmatpush1.bf16.msra.mxu0 (!%p140_p2), %v4239_v4  ;;  %v4254_v24 = vld [vmem:[%s5018_s1 + $0x48] sm:$0xff] (!%p140_p2)   ;;  %v4256_v27 = vld [vmem:[%s5018_s1 + $0x50] sm:$0xff] (!%p140_p2)   ;;  %v4258_v29 = vld [vmem:[%s5018_s1 + $0x58] sm:$0xff] (!%p140_p2)  }
   0xc   : > { %2237 = vmatprep.subr.bf16.mxu1 (!%p140_p2), %v4308_v1  ;;  %2815 = vmatprep.subr.bf16.mxu0 (!%p140_p2), %v4308_v1  ;;  %v4255_v26 = vld [vmem:[%s5018_s1 + $0x148] sm:$0xff] (!%p140_p2)   ;;  %v4257_v28 = vld [vmem:[%s5018_s1 + $0x150] sm:$0xff] (!%p140_p2)   ;;  %v4259_v30 = vld [vmem:[%s5018_s1 + $0x158] sm:$0xff] (!%p140_p2)  }
   0xd   : > { %s5022_s7 = smov (!%p165_p3, %s3514_s7), 127  ;;  %v4260_v31 = vld [vmem:[%s5018_s1 + $0x60] sm:$0xff]   ;;  %v4262_v33 = vld [vmem:[%s5018_s1 + $0x68] sm:$0xff]   ;;  %v4264_v35 = vld [vmem:[%s5018_s1 + $0x70] sm:$0xff]  }
   0xe   : > { %s3842_s19 = sshll.u32 %s5022_s7, 5  ;;  %v4261_v32 = vld [vmem:[%s5018_s1 + $0x160] sm:$0xff]   ;;  %v4263_v34 = vld [vmem:[%s5018_s1 + $0x168] sm:$0xff]   ;;  %v4265_v36 = vld [vmem:[%s5018_s1 + $0x170] sm:$0xff]   ;;  %s3518_s27 = sshll.u32 %s5022_s7, 3 }
   0xf   : > { %2238 = vmatpush1.bf16.msra.mxu1 %v4240_v5  ;;  %2816 = vmatpush1.bf16.msra.mxu0 %v4241_v6  ;;  %s4409_s24 = scalar_lea.vmem %s5017_s0, %s3842_s19  ;;  %v4266_v37 = vld [vmem:[%s5018_s1 + $0x78] sm:$0xff]   ;;  %v4268_v45 = vld [vmem:[%s5018_s1 + $0x80] sm:$0xff]   ;;  %v4270_v51 = vld [vmem:[%s5018_s1 + $0x88] sm:$0xff]   ;;  %s4873_s30 = scalar_lea.vmem %s5020_s3, %s3518_s27 }
  0x10   : > { %2239 = vmatprep.subr.bf16.mxu1 %v4308_v1  ;;  %2817 = vmatprep.subr.bf16.mxu0 %v4308_v1  ;;  %v4420_v19 = vld [vmem:[%s4409_s24] sm:$0xff]  ;;  %v4426_v21 = vld [vmem:[%s4409_s24 + $0x10] sm:$0xff]  ;;  %v4267_v38 = vld [vmem:[%s5018_s1 + $0x178] sm:$0xff]  }
  0x11   : > { %v4423_v20 = vld [vmem:[%s4409_s24 + $0x20] sm:$0xff]  ;;  %v4431_v23 = vld [vmem:[%s4409_s24 + $0x30] sm:$0xff]  ;;  %v4271_v52 = vld [vmem:[%s5018_s1 + $0x188] sm:$0xff]  }
  0x12   : > { %v3521_v22 = vcombine.high %v4420_v19, %v4423_v20  ;;  %v3525_v25 = vcombine.high %v4426_v21, %v4431_v23  ;;  %v186_v39 = vld [vmem:[%s4409_s24 + $0x40] sm:$0xff]  ;;  %v188_v41 = vld [vmem:[%s4409_s24 + $0x50] sm:$0xff]  ;;  %v3520_v42 = vcombine.low %v4420_v19, %v4423_v20  ;;  %v3524_v44 = vcombine.low %v4426_v21, %v4431_v23  ;;  %v4274_v2 = vld [vmem:[%s5018_s1 + $0x98] sm:$0xff]  }
  0x13   : > { %2240 = vmatpush1.bf16.msra.mxu1 %v4242_v7  ;;  %2818 = vmatpush1.bf16.msra.mxu0 %v4243_v8  ;;  %v190_v40 = vld [vmem:[%s4409_s24 + $0x60] sm:$0xff]  ;;  %v192_v43 = vld [vmem:[%s4409_s24 + $0x70] sm:$0xff]  ;;  %v4275_v3 = vld [vmem:[%s5018_s1 + $0x198] sm:$0xff]  }
  0x14   : > { %2241 = vmatprep.subr.bf16.mxu1 %v4308_v1  ;;  %2819 = vmatprep.subr.bf16.mxu0 %v4308_v1  ;;  %v4269_v46 = vld [vmem:[%s5018_s1 + $0x180] sm:$0xff]   ;;  %v3529_v47 = vcombine.high %v186_v39, %v190_v40  ;;  %v3533_v48 = vcombine.high %v188_v41, %v192_v43  ;;  %v196_v53 = vld [vmem:[%s4409_s24 + $0x90] sm:$0xff]  ;;  %v3528_v55 = vcombine.low %v186_v39, %v190_v40  ;;  %v4287_v39 = vld [vmem:[%s5018_s1 + $0x1c8] sm:$0xff]  }
  0x15   : > { %2265 = vmatprep.mubr.bf16.mxu1 %v3521_v22  ;;  %2843 = vmatprep.mubr.bf16.mxu0 %v3525_v25  ;;  %v194_v49 = vld [vmem:[%s4409_s24 + $0x80] sm:$0xff]  ;;  %v200_v54 = vld [vmem:[%s4409_s24 + $0xb0] sm:$0xff]  ;;  %v3532_v56 = vcombine.low %v188_v41, %v192_v43 }
  0x16   : > { %v198_v50 = vld [vmem:[%s4409_s24 + $0xa0] sm:$0xff]  ;;  %v3541_v58 = vcombine.high %v196_v53, %v200_v54  ;;  %v4272_v59 = vld [vmem:[%s5018_s1 + $0x90] sm:$0xff]   ;;  %v3540_v6 = vcombine.low %v196_v53, %v200_v54  ;;  %v4290_v54 = vld [vmem:[%s5018_s1 + $0xd8] sm:$0xff]  }
  0x17   : > { %2242 = vmatpush1.bf16.msra.mxu1 %v4244_v9  ;;  %2820 = vmatpush1.bf16.msra.mxu0 %v4245_v10  ;;  %v3537_v57 = vcombine.high %v194_v49, %v198_v50  ;;  %v4273_v60 = vld [vmem:[%s5018_s1 + $0x190] sm:$0xff]   ;;  %v202_v61 = vld [vmem:[%s4409_s24 + $0xc0] sm:$0xff]  ;;  %v3536_v4 = vcombine.low %v194_v49, %v198_v50 }
  0x18   : > { %2243 = vmatprep.subr.bf16.mxu1 %v4308_v1  ;;  %2821 = vmatprep.subr.bf16.mxu0 %v4308_v1  ;;  %v206_v62 = vld [vmem:[%s4409_s24 + $0xe0] sm:$0xff]  ;;  %v204_v63 = vld [vmem:[%s4409_s24 + $0xd0] sm:$0xff] }
  0x19   : > { %v208_v0 = vld [vmem:[%s4409_s24 + $0xf0] sm:$0xff]  ;;  %v4276_v5 = vld [vmem:[%s5018_s1 + $0xa0] sm:$0xff]   ;;  %v3545_v7 = vcombine.high %v202_v61, %v206_v62 }
  0x1a   : > { %v4277_v8 = vld [vmem:[%s5018_s1 + $0x1a0] sm:$0xff]   ;;  %v3549_v9 = vcombine.high %v204_v63, %v208_v0  ;;  %v4280_v20 = vld [vmem:[%s5018_s1 + $0xb0] sm:$0xff]  }
  0x1b   : > { %2244 = vmatpush1.bf16.msra.mxu1 %v4246_v11  ;;  %2822 = vmatpush1.bf16.msra.mxu0 %v4247_v12  ;;  %v210_v10 = vld [vmem:[%s4409_s24 + $0x100] sm:$0xff]  ;;  %v212_v12 = vld [vmem:[%s4409_s24 + $0x110] sm:$0xff] }
  0x1c   : > { %2245 = vmatprep.subr.bf16.mxu1 %v4308_v1  ;;  %2823 = vmatprep.subr.bf16.mxu0 %v4308_v1  ;;  %v214_v11 = vld [vmem:[%s4409_s24 + $0x120] sm:$0xff]  ;;  %v4281_v21 = vld [vmem:[%s5018_s1 + $0x1b0] sm:$0xff]  }
  0x1d   : > { %v218_v22 = vld [vmem:[%s4409_s24 + $0x140] sm:$0xff]  ;;  %v220_v25 = vld [vmem:[%s4409_s24 + $0x150] sm:$0xff] }
  0x1e   : > { %v222_v23 = vld [vmem:[%s4409_s24 + $0x160] sm:$0xff]  ;;  %v240_v49 = vld [vmem:[%s4409_s24 + $0x1f0] sm:$0xff] }
  0x1f   : > { %2246 = vmatpush1.bf16.msra.mxu1 %v4248_v13  ;;  %2824 = vmatpush1.bf16.msra.mxu0 %v4249_v14  ;;  %v216_v13 = vld [vmem:[%s4409_s24 + $0x130] sm:$0xff]  ;;  %v4278_v14 = vld [vmem:[%s5018_s1 + $0xa8] sm:$0xff]   ;;  %v3560_v40 = vcombine.low %v218_v22, %v222_v23 }
  0x20   : > { %2247 = vmatprep.subr.bf16.mxu1 %v4308_v1  ;;  %2825 = vmatprep.subr.bf16.mxu0 %v4308_v1  ;;  %v3557_v19 = vcombine.high %v212_v12, %v216_v13 }
  0x23   : > { %2248 = vmatpush1.bf16.msra.mxu1 %v4250_v15  ;;  %2826 = vmatpush1.bf16.msra.mxu0 %v4251_v16  ;;  %v4279_v15 = vld [vmem:[%s5018_s1 + $0x1a8] sm:$0xff]   ;;  %v3544_v16 = vcombine.low %v202_v61, %v206_v62 }
  0x24   : > { %2249 = vmatprep.subr.bf16.mxu1 %v4308_v1  ;;  %2827 = vmatprep.subr.bf16.mxu0 %v4308_v1 }
  0x27   : > { %2250 = vmatpush1.bf16.msra.mxu1 %v4252_v17  ;;  %2828 = vmatpush1.bf16.msra.mxu0 %v4253_v18  ;;  %v3548_v17 = vcombine.low %v204_v63, %v208_v0  ;;  %v3553_v18 = vcombine.high %v210_v10, %v214_v11  ;;  %v250_v0 = vld [vmem:[%s4409_s24 + $0x240] sm:$0xff] }
  0x28   : > { %2251 = vmatprep.subr.bf16.mxu1 %v4308_v1  ;;  %2829 = vmatprep.subr.bf16.mxu0 %v4308_v1 }
  0x2b   : > { %2252 = vmatpush1.bf16.msra.mxu1 %v4254_v24  ;;  %2830 = vmatpush1.bf16.msra.mxu0 %v4255_v26  ;;  %v4282_v24 = vld [vmem:[%s5018_s1 + $0xb8] sm:$0xff]   ;;  %v224_v26 = vld [vmem:[%s4409_s24 + $0x170] sm:$0xff] }
  0x2c   : > { %2253 = vmatprep.subr.bf16.mxu1 %v4308_v1  ;;  %2831 = vmatprep.subr.bf16.mxu0 %v4308_v1  ;;  %v3564_v41 = vcombine.low %v220_v25, %v224_v26 }
  0x2f   : > { %2254 = vmatpush1.bf16.msra.mxu1 %v4256_v27  ;;  %2832 = vmatpush1.bf16.msra.mxu0 %v4257_v28  ;;  %v4283_v27 = vld [vmem:[%s5018_s1 + $0x1b8] sm:$0xff]   ;;  %v3552_v28 = vcombine.low %v210_v10, %v214_v11  ;;  %v4293_v10 = vld [vmem:[%s5018_s1 + $0x1e0] sm:$0xff]  }
  0x30   : > { %2255 = vmatprep.subr.bf16.mxu1 %v4308_v1  ;;  %2833 = vmatprep.subr.bf16.mxu0 %v4308_v1  ;;  %v258_v11 = vld [vmem:[%s4409_s24 + $0x280] sm:$0xff] }
  0x33   : > { %2256 = vmatpush1.bf16.msra.mxu1 %v4258_v29  ;;  %2834 = vmatpush1.bf16.msra.mxu0 %v4259_v30  ;;  %v3556_v29 = vcombine.low %v212_v12, %v216_v13  ;;  %v3561_v30 = vcombine.high %v218_v22, %v222_v23  ;;  %v262_v12 = vld [vmem:[%s4409_s24 + $0x2a0] sm:$0xff]  ;;  %v260_v13 = vld [vmem:[%s4409_s24 + $0x290] sm:$0xff] }
  0x34   : > { %2257 = vmatprep.subr.bf16.mxu1 %v4308_v1  ;;  %2835 = vmatprep.subr.bf16.mxu0 %v4308_v1  ;;  %v272_v22 = vld [vmem:[%s4409_s24 + $0x2f0] sm:$0xff]  ;;  %v3600_v23 = vcombine.low %v258_v11, %v262_v12 }
  0x37   : > { %2258 = vmatpush1.bf16.msra.mxu1 %v4260_v31  ;;  %2836 = vmatpush1.bf16.msra.mxu0 %v4261_v32  ;;  %v3565_v31 = vcombine.high %v220_v25, %v224_v26  ;;  %v4284_v32 = vld [vmem:[%s5018_s1 + $0xc0] sm:$0xff]  }
  0x38   : > { %2259 = vmatprep.subr.bf16.mxu1 %v4308_v1  ;;  %2837 = vmatprep.subr.bf16.mxu0 %v4308_v1 }
  0x3b   : > { %2260 = vmatpush1.bf16.msra.mxu1 %v4262_v33  ;;  %2838 = vmatpush1.bf16.msra.mxu0 %v4263_v34  ;;  %v4285_v33 = vld [vmem:[%s5018_s1 + $0x1c0] sm:$0xff]  }
  0x3c   : > { %2261 = vmatprep.subr.bf16.mxu1 %v4308_v1  ;;  %2839 = vmatprep.subr.bf16.mxu0 %v4308_v1  ;;  %v226_v34 = vld [vmem:[%s4409_s24 + $0x180] sm:$0xff] }
  0x3f   : > { %2262 = vmatpush1.bf16.msra.mxu1 %v4264_v35  ;;  %2840 = vmatpush1.bf16.msra.mxu0 %v4265_v36  ;;  %v230_v35 = vld [vmem:[%s4409_s24 + $0x1a0] sm:$0xff]  ;;  %v4286_v36 = vld [vmem:[%s5018_s1 + $0xc8] sm:$0xff]  }
  0x40   : > { %2263 = vmatprep.subr.bf16.mxu1 %v4308_v1  ;;  %2841 = vmatprep.subr.bf16.mxu0 %v4308_v1  ;;  %v3568_v50 = vcombine.low %v226_v34, %v230_v35 }
  0x43   : > { %2264 = vmatpush1.bf16.msra.mxu1 %v4266_v37  ;;  %2842 = vmatpush1.bf16.msra.mxu0 %v4267_v38  ;;  %v228_v37 = vld [vmem:[%s4409_s24 + $0x190] sm:$0xff] }
  0x44   : > { %2522 = vmatprep.subr.bf16.mxu1 %v4308_v1  ;;  %3100 = vmatprep.subr.bf16.mxu0 %v4308_v1  ;;  %v232_v38 = vld [vmem:[%s4409_s24 + $0x1b0] sm:$0xff] }
  0x45   : > { %v3573_v43 = vcombine.high %v228_v37, %v232_v38 }
  0x46   : > { %2266 = vmatmul.mubr.bf16.vlgmr.msra.gmra.mrb[0].mxu1 %v3520_v42  ;;  %2844 = vmatmul.mubr.bf16.vlgmr.msra.gmra.mrb[0].mxu0 %v3524_v44  ;;  %v3569_v42 = vcombine.high %v226_v34, %v230_v35  ;;  %v4288_v44 = vld [vmem:[%s5018_s1 + $0xd0] sm:$0xff]  }
  0x47   : > { %2523 = vmatpush1.bf16.msra.mxu1 %v4268_v45  ;;  %3101 = vmatpush1.bf16.msra.mxu0 %v4269_v46  ;;  %v4289_v45 = vld [vmem:[%s5018_s1 + $0x1d0] sm:$0xff]   ;;  %v234_v46 = vld [vmem:[%s4409_s24 + $0x1c0] sm:$0xff] }
  0x48   : > { %2273 = vmatprep.mubr.bf16.mxu1 %v3529_v47  ;;  %2851 = vmatprep.mubr.bf16.mxu0 %v3533_v48  ;;  %v238_v47 = vld [vmem:[%s4409_s24 + $0x1e0] sm:$0xff]  ;;  %v236_v48 = vld [vmem:[%s4409_s24 + $0x1d0] sm:$0xff] }
  0x49   : > { %2524 = vmatprep.subr.bf16.mxu1 %v4308_v1  ;;  %3102 = vmatprep.subr.bf16.mxu0 %v4308_v1  ;;  %v3581_v53 = vcombine.high %v236_v48, %v240_v49  ;;  %v3580_v61 = vcombine.low %v236_v48, %v240_v49  ;;  %v294_v48 = vld [vmem:[%s4409_s24 + $0x3a0] sm:$0xff]  ;;  %v292_v49 = vld [vmem:[%s4409_s24 + $0x390] sm:$0xff] }
  0x4b   : > { %2525 = vmatpush1.bf16.msra.mxu1 %v4270_v51  ;;  %3103 = vmatpush1.bf16.msra.mxu0 %v4271_v52  ;;  %v3572_v51 = vcombine.low %v228_v37, %v232_v38  ;;  %v3577_v52 = vcombine.high %v234_v46, %v238_v47  ;;  %v282_v37 = vld [vmem:[%s4409_s24 + $0x340] sm:$0xff] }
  0x4c   : > { %2526 = vmatprep.subr.bf16.mxu1 %v4308_v1  ;;  %3104 = vmatprep.subr.bf16.mxu0 %v4308_v1  ;;  %v286_v38 = vld [vmem:[%s4409_s24 + $0x360] sm:$0xff] }
  0x4e   : > { %2274 = vmatmul.mubr.bf16.gmra.mrb[4].mxu1 %v3528_v55  ;;  %2852 = vmatmul.mubr.bf16.gmra.mrb[4].mxu0 %v3532_v56  ;;  %v4291_v55 = vld [vmem:[%s5018_s1 + $0x1d8] sm:$0xff]   ;;  %v242_v56 = vld [vmem:[%s4409_s24 + $0x200] sm:$0xff] }
  0x4f   : > { %2281 = vmatprep.mubr.bf16.mxu1 %v3537_v57  ;;  %2859 = vmatprep.mubr.bf16.mxu0 %v3541_v58  ;;  %v246_v57 = vld [vmem:[%s4409_s24 + $0x220] sm:$0xff]  ;;  %v244_v58 = vld [vmem:[%s4409_s24 + $0x210] sm:$0xff] }
  0x50   : > { %2527 = vmatpush1.bf16.msra.mxu1 %v4272_v59  ;;  %3105 = vmatpush1.bf16.msra.mxu0 %v4273_v60  ;;  %v248_v59 = vld [vmem:[%s4409_s24 + $0x230] sm:$0xff]  ;;  %v3576_v60 = vcombine.low %v234_v46, %v238_v47  ;;  %v3585_v62 = vcombine.high %v242_v56, %v246_v57  ;;  %v290_v47 = vld [vmem:[%s4409_s24 + $0x380] sm:$0xff] }
  0x51   : > { %2528 = vmatprep.subr.bf16.mxu1 %v4308_v1  ;;  %3106 = vmatprep.subr.bf16.mxu0 %v4308_v1  ;;  %v3589_v63 = vcombine.high %v244_v58, %v248_v59  ;;  %v4297_v46 = vld [vmem:[%s5018_s1 + $0x1f0] sm:$0xff]  }
  0x54   : > { %2529 = vmatpush1.bf16.msra.mxu1 %v4274_v2  ;;  %3107 = vmatpush1.bf16.msra.mxu0 %v4275_v3  ;;  %v254_v2 = vld [vmem:[%s4409_s24 + $0x260] sm:$0xff]  ;;  %v252_v3 = vld [vmem:[%s4409_s24 + $0x250] sm:$0xff] }
  0x55   : > { %2530 = vmatprep.subr.bf16.mxu1 %v4308_v1  ;;  %3108 = vmatprep.subr.bf16.mxu0 %v4308_v1 }
  0x56   : > { %2282 = vmatmul.mubr.bf16.gmra.mrb[8].mxu1 %v3536_v4  ;;  %2860 = vmatmul.mubr.bf16.gmra.mrb[8].mxu0 %v3540_v6  ;;  %v256_v4 = vld [vmem:[%s4409_s24 + $0x270] sm:$0xff]  ;;  %v3588_v6 = vcombine.low %v244_v58, %v248_v59  ;;  %v3632_v59 = vcombine.low %v290_v47, %v294_v48 }
  0x57   : > { %2289 = vmatprep.mubr.bf16.mxu1 %v3545_v7  ;;  %2867 = vmatprep.mubr.bf16.mxu0 %v3549_v9  ;;  %v3593_v7 = vcombine.high %v250_v0, %v254_v2  ;;  %v4292_v9 = vld [vmem:[%s5018_s1 + $0xe0] sm:$0xff]   ;;  %v304_v58 = vld [vmem:[%s4409_s24 + $0x3f0] sm:$0xff] }
  0x58   : > { %2531 = vmatpush1.bf16.msra.mxu1 %v4276_v5  ;;  %3109 = vmatpush1.bf16.msra.mxu0 %v4277_v8  ;;  %v3584_v5 = vcombine.low %v242_v56, %v246_v57  ;;  %v3597_v8 = vcombine.high %v252_v3, %v256_v4  ;;  %v302_v56 = vld [vmem:[%s4409_s24 + $0x3e0] sm:$0xff]  ;;  %v300_v57 = vld [vmem:[%s4409_s24 + $0x3d0] sm:$0xff] }
  0x59   : > { %2532 = vmatprep.subr.bf16.mxu1 %v4308_v1  ;;  %3110 = vmatprep.subr.bf16.mxu0 %v4308_v1 }
  0x5c   : > { %2533 = vmatpush1.bf16.msra.mxu1 %v4278_v14  ;;  %3111 = vmatpush1.bf16.msra.mxu0 %v4279_v15  ;;  %v264_v14 = vld [vmem:[%s4409_s24 + $0x2b0] sm:$0xff]  ;;  %v3592_v15 = vcombine.low %v250_v0, %v254_v2  ;;  %v306_v0 = vld [vmem:[%s4409_s24 + $0x400] sm:$0xff] }
  0x5d   : > { %2534 = vmatprep.subr.bf16.mxu1 %v4308_v1  ;;  %3112 = vmatprep.subr.bf16.mxu0 %v4308_v1  ;;  %v310_v2 = vld [vmem:[%s4409_s24 + $0x420] sm:$0xff] }
  0x5e   : > { %2290 = vmatmul.mubr.bf16.gmra.mrb[12].mxu1 %v3544_v16  ;;  %2868 = vmatmul.mubr.bf16.gmra.mrb[12].mxu0 %v3548_v17  ;;  %v3596_v16 = vcombine.low %v252_v3, %v256_v4  ;;  %v3601_v17 = vcombine.high %v258_v11, %v262_v12  ;;  %v308_v3 = vld [vmem:[%s4409_s24 + $0x410] sm:$0xff] }
  0x5f   : > { %2297 = vmatprep.mubr.bf16.mxu1 %v3553_v18  ;;  %2875 = vmatprep.mubr.bf16.mxu0 %v3557_v19  ;;  %v3605_v18 = vcombine.high %v260_v13, %v264_v14  ;;  %v266_v19 = vld [vmem:[%s4409_s24 + $0x2c0] sm:$0xff]  ;;  %v312_v4 = vld [vmem:[%s4409_s24 + $0x430] sm:$0xff] }
  0x60   : > { %2535 = vmatpush1.bf16.msra.mxu1 %v4280_v20  ;;  %3113 = vmatpush1.bf16.msra.mxu0 %v4281_v21  ;;  %v270_v20 = vld [vmem:[%s4409_s24 + $0x2e0] sm:$0xff]  ;;  %v268_v21 = vld [vmem:[%s4409_s24 + $0x2d0] sm:$0xff] }
  0x61   : > { %2536 = vmatprep.subr.bf16.mxu1 %v4308_v1  ;;  %3114 = vmatprep.subr.bf16.mxu0 %v4308_v1  ;;  %v3609_v25 = vcombine.high %v266_v19, %v270_v20  ;;  %v3613_v26 = vcombine.high %v268_v21, %v272_v22  ;;  %v3612_v34 = vcombine.low %v268_v21, %v272_v22  ;;  %v316_v11 = vld [vmem:[%s4409_s24 + $0x450] sm:$0xff] }
  0x62   : > { %v320_v12 = vld [vmem:[%s4409_s24 + $0x470] sm:$0xff] }
  0x63   : > { %v3660_v22 = vcombine.low %v316_v11, %v320_v12 }
  0x64   : > { %2537 = vmatpush1.bf16.msra.mxu1 %v4282_v24  ;;  %3115 = vmatpush1.bf16.msra.mxu0 %v4283_v27  ;;  %v3604_v24 = vcombine.low %v260_v13, %v264_v14  ;;  %v4294_v27 = vld [vmem:[%s5018_s1 + $0xe8] sm:$0xff]   ;;  %v3648_v13 = vcombine.low %v306_v0, %v310_v2  ;;  %v3652_v14 = vcombine.low %v308_v3, %v312_v4 }
  0x65   : > { %2538 = vmatprep.subr.bf16.mxu1 %v4308_v1  ;;  %3116 = vmatprep.subr.bf16.mxu0 %v4308_v1 }
  0x66   : > { %2298 = vmatmul.mubr.bf16.gmra.mrb[16].mxu1 %v3552_v28  ;;  %2876 = vmatmul.mubr.bf16.gmra.mrb[16].mxu0 %v3556_v29  ;;  %v4295_v28 = vld [vmem:[%s5018_s1 + $0x1e8] sm:$0xff]   ;;  %v274_v29 = vld [vmem:[%s4409_s24 + $0x300] sm:$0xff] }
  0x67   : > { %2305 = vmatprep.mubr.bf16.mxu1 %v3561_v30  ;;  %2883 = vmatprep.mubr.bf16.mxu0 %v3565_v31  ;;  %v278_v30 = vld [vmem:[%s4409_s24 + $0x320] sm:$0xff]  ;;  %v276_v31 = vld [vmem:[%s4409_s24 + $0x310] sm:$0xff] }
  0x68   : > { %2539 = vmatpush1.bf16.msra.mxu1 %v4284_v32  ;;  %3117 = vmatpush1.bf16.msra.mxu0 %v4285_v33  ;;  %v280_v32 = vld [vmem:[%s4409_s24 + $0x330] sm:$0xff]  ;;  %v3608_v33 = vcombine.low %v266_v19, %v270_v20  ;;  %v3617_v35 = vcombine.high %v274_v29, %v278_v30 }
  0x69   : > { %2540 = vmatprep.subr.bf16.mxu1 %v4308_v1  ;;  %3118 = vmatprep.subr.bf16.mxu0 %v4308_v1  ;;  %v324_v19 = vld [vmem:[%s4409_s24 + $0x490] sm:$0xff] }
  0x6a   : > { %v328_v20 = vld [vmem:[%s4409_s24 + $0x4b0] sm:$0xff] }
  0x6c   : > { %2541 = vmatpush1.bf16.msra.mxu1 %v4286_v36  ;;  %3119 = vmatpush1.bf16.msra.mxu0 %v4287_v39  ;;  %v3621_v36 = vcombine.high %v276_v31, %v280_v32  ;;  %v284_v39 = vld [vmem:[%s4409_s24 + $0x350] sm:$0xff] }
  0x6d   : > { %2542 = vmatprep.subr.bf16.mxu1 %v4308_v1  ;;  %3120 = vmatprep.subr.bf16.mxu0 %v4308_v1 }
  0x6e   : > { %2306 = vmatmul.mubr.bf16.gmra.mrb[20].mxu1 %v3560_v40  ;;  %2884 = vmatmul.mubr.bf16.gmra.mrb[20].mxu0 %v3564_v41  ;;  %v288_v40 = vld [vmem:[%s4409_s24 + $0x370] sm:$0xff]  ;;  %v3616_v41 = vcombine.low %v274_v29, %v278_v30  ;;  %v3668_v30 = vcombine.low %v324_v19, %v328_v20 }
  0x6f   : > { %2313 = vmatprep.mubr.bf16.mxu1 %v3569_v42  ;;  %2891 = vmatprep.mubr.bf16.mxu0 %v3573_v43  ;;  %v3620_v42 = vcombine.low %v276_v31, %v280_v32  ;;  %v3625_v43 = vcombine.high %v282_v37, %v286_v38 }
  0x70   : > { %2543 = vmatpush1.bf16.msra.mxu1 %v4288_v44  ;;  %3121 = vmatpush1.bf16.msra.mxu0 %v4289_v45  ;;  %v3629_v44 = vcombine.high %v284_v39, %v288_v40  ;;  %v4296_v45 = vld [vmem:[%s5018_s1 + $0xf0] sm:$0xff]  }
  0x71   : > { %2544 = vmatprep.subr.bf16.mxu1 %v4308_v1  ;;  %3122 = vmatprep.subr.bf16.mxu0 %v4308_v1 }
  0x74   : > { %2545 = vmatpush1.bf16.msra.mxu1 %v4290_v54  ;;  %3123 = vmatpush1.bf16.msra.mxu0 %v4291_v55  ;;  %v298_v55 = vld [vmem:[%s4409_s24 + $0x3c0] sm:$0xff] }
  0x75   : > { %2546 = vmatprep.subr.bf16.mxu1 %v4308_v1  ;;  %3124 = vmatprep.subr.bf16.mxu0 %v4308_v1 }
  0x76   : > { %2314 = vmatmul.mubr.bf16.gmra.mrb[24].mxu1 %v3568_v50  ;;  %2892 = vmatmul.mubr.bf16.gmra.mrb[24].mxu0 %v3572_v51  ;;  %v296_v50 = vld [vmem:[%s4409_s24 + $0x3b0] sm:$0xff]  ;;  %v3624_v51 = vcombine.low %v282_v37, %v286_v38 }
  0x77   : > { %2321 = vmatprep.mubr.bf16.mxu1 %v3577_v52  ;;  %2899 = vmatprep.mubr.bf16.mxu0 %v3581_v53  ;;  %v3628_v52 = vcombine.low %v284_v39, %v288_v40  ;;  %v3633_v53 = vcombine.high %v290_v47, %v294_v48  ;;  %v3637_v54 = vcombine.high %v292_v49, %v296_v50 }
  0x78   : > { %2547 = vmatpush1.bf16.msra.mxu1 %v4292_v9  ;;  %3125 = vmatpush1.bf16.msra.mxu0 %v4293_v10  ;;  %v314_v9 = vld [vmem:[%s4409_s24 + $0x440] sm:$0xff] }
  0x79   : > { %2548 = vmatprep.subr.bf16.mxu1 %v4308_v1  ;;  %3126 = vmatprep.subr.bf16.mxu0 %v4308_v1  ;;  %v318_v10 = vld [vmem:[%s4409_s24 + $0x460] sm:$0xff] }
  0x7a   : > { %v3656_v21 = vcombine.low %v314_v9, %v318_v10 }
  0x7c   : > { %2549 = vmatpush1.bf16.msra.mxu1 %v4294_v27  ;;  %3127 = vmatpush1.bf16.msra.mxu0 %v4295_v28  ;;  %v332_v27 = vld [vmem:[%s4409_s24 + $0x4d0] sm:$0xff] }
  0x7d   : > { %2550 = vmatprep.subr.bf16.mxu1 %v4308_v1  ;;  %3128 = vmatprep.subr.bf16.mxu0 %v4308_v1  ;;  %v336_v28 = vld [vmem:[%s4409_s24 + $0x4f0] sm:$0xff] }
  0x7e   : > { %2322 = vmatmul.mubr.bf16.gmra.mrb[28].mxu1 %v3576_v60  ;;  %2900 = vmatmul.mubr.bf16.gmra.mrb[28].mxu0 %v3580_v61  ;;  %v3636_v60 = vcombine.low %v292_v49, %v296_v50  ;;  %v3641_v61 = vcombine.high %v298_v55, %v302_v56  ;;  %v3677_v32 = vcombine.high %v332_v27, %v336_v28  ;;  %v354_v49 = vld [vmem:[%s4409_s24 + $0x580] sm:$0xff] }
  0x7f   : > { %2329 = vmatprep.mubr.bf16.mxu1 %v3585_v62  ;;  %2907 = vmatprep.mubr.bf16.mxu0 %v3589_v63  ;;  %v3645_v62 = vcombine.high %v300_v57, %v304_v58  ;;  %v4299_v63 = vld [vmem:[%s5018_s1 + $0x1f8] sm:$0xff]   ;;  %v3676_v38 = vcombine.low %v332_v27, %v336_v28  ;;  %v358_v50 = vld [vmem:[%s4409_s24 + $0x5a0] sm:$0xff]  ;;  %v396_v27 = vld [vmem:[%s4409_s24 + $0x6d0] sm:$0xff] }
  0x80   : > { %2551 = vmatpush1.bf16.msra.mxu1 %v4296_v45  ;;  %3129 = vmatpush1.bf16.msra.mxu0 %v4297_v46  ;;  %v400_v28 = vld [vmem:[%s4409_s24 + $0x6f0] sm:$0xff] }
  0x81   : > { %2552 = vmatprep.subr.bf16.mxu1 %v4308_v1  ;;  %3130 = vmatprep.subr.bf16.mxu0 %v4308_v1  ;;  %v4298_v1 = vld [vmem:[%s5018_s1 + $0xf8] sm:$0xff]  }
  0x84   : > { %2553 = vmatpush1.bf16.msra.mxu1 %v4298_v1  ;;  %3131 = vmatpush1.bf16.msra.mxu0 %v4299_v63 }
  0x86   : > { %2330 = vmatmul.mubr.bf16.gmra.mrb[32].mxu1 %v3584_v5  ;;  %2908 = vmatmul.mubr.bf16.gmra.mrb[32].mxu0 %v3588_v6  ;;  %v3640_v5 = vcombine.low %v298_v55, %v302_v56  ;;  %v3644_v6 = vcombine.low %v300_v57, %v304_v58  ;;  %v3697_v55 = vcombine.high %v354_v49, %v358_v50  ;;  %v362_v57 = vld [vmem:[%s4409_s24 + $0x5c0] sm:$0xff] }
  0x87   : > { %2337 = vmatprep.mubr.bf16.mxu1 %v3593_v7  ;;  %2915 = vmatprep.mubr.bf16.mxu0 %v3597_v8  ;;  %v3649_v7 = vcombine.high %v306_v0, %v310_v2  ;;  %v3653_v8 = vcombine.high %v308_v3, %v312_v4  ;;  %v366_v58 = vld [vmem:[%s4409_s24 + $0x5e0] sm:$0xff]  ;;  %v372_v3 = vld [vmem:[%s4409_s24 + $0x610] sm:$0xff] }
  0x88   : > { %v3705_v1 = vcombine.high %v362_v57, %v366_v58  ;;  %v370_v0 = vld [vmem:[%s4409_s24 + $0x600] sm:$0xff]  ;;  %v376_v4 = vld [vmem:[%s4409_s24 + $0x630] sm:$0xff] }
  0x89   : > { %v374_v2 = vld [vmem:[%s4409_s24 + $0x620] sm:$0xff] }
  0x8e   : > { %2338 = vmatmul.mubr.bf16.gmra.mrb[36].mxu1 %v3592_v15  ;;  %2916 = vmatmul.mubr.bf16.gmra.mrb[36].mxu0 %v3596_v16  ;;  %v3657_v15 = vcombine.high %v314_v9, %v318_v10  ;;  %v3661_v16 = vcombine.high %v316_v11, %v320_v12  ;;  %v378_v9 = vld [vmem:[%s4409_s24 + $0x640] sm:$0xff]  ;;  %v380_v11 = vld [vmem:[%s4409_s24 + $0x650] sm:$0xff] }
  0x8f   : > { %2345 = vmatprep.mubr.bf16.mxu1 %v3601_v17  ;;  %2923 = vmatprep.mubr.bf16.mxu0 %v3605_v18  ;;  %v322_v17 = vld [vmem:[%s4409_s24 + $0x480] sm:$0xff]  ;;  %v384_v12 = vld [vmem:[%s4409_s24 + $0x670] sm:$0xff] }
  0x90   : > { %v326_v18 = vld [vmem:[%s4409_s24 + $0x4a0] sm:$0xff] }
  0x91   : > { %v3664_v29 = vcombine.low %v322_v17, %v326_v18  ;;  %v382_v10 = vld [vmem:[%s4409_s24 + $0x660] sm:$0xff] }
  0x96   : > { %2346 = vmatmul.mubr.bf16.gmra.mrb[40].mxu1 %v3600_v23  ;;  %2924 = vmatmul.mubr.bf16.gmra.mrb[40].mxu0 %v3604_v24  ;;  %v3665_v23 = vcombine.high %v322_v17, %v326_v18  ;;  %v3669_v24 = vcombine.high %v324_v19, %v328_v20  ;;  %v386_v17 = vld [vmem:[%s4409_s24 + $0x680] sm:$0xff]  ;;  %v388_v19 = vld [vmem:[%s4409_s24 + $0x690] sm:$0xff] }
  0x97   : > { %2353 = vmatprep.mubr.bf16.mxu1 %v3609_v25  ;;  %2931 = vmatprep.mubr.bf16.mxu0 %v3613_v26  ;;  %v330_v25 = vld [vmem:[%s4409_s24 + $0x4c0] sm:$0xff]  ;;  %v392_v20 = vld [vmem:[%s4409_s24 + $0x6b0] sm:$0xff] }
  0x98   : > { %v334_v26 = vld [vmem:[%s4409_s24 + $0x4e0] sm:$0xff] }
  0x99   : > { %v3673_v31 = vcombine.high %v330_v25, %v334_v26  ;;  %v3672_v37 = vcombine.low %v330_v25, %v334_v26  ;;  %v390_v18 = vld [vmem:[%s4409_s24 + $0x6a0] sm:$0xff] }
  0x9a   : > { %v394_v25 = vld [vmem:[%s4409_s24 + $0x6c0] sm:$0xff] }
  0x9b   : > { %v398_v26 = vld [vmem:[%s4409_s24 + $0x6e0] sm:$0xff] }
  0x9e   : > { %2354 = vmatmul.mubr.bf16.gmra.mrb[44].mxu1 %v3608_v33  ;;  %2932 = vmatmul.mubr.bf16.gmra.mrb[44].mxu0 %v3612_v34  ;;  %v338_v33 = vld [vmem:[%s4409_s24 + $0x500] sm:$0xff] }
  0x9f   : > { %2361 = vmatprep.mubr.bf16.mxu1 %v3617_v35  ;;  %2939 = vmatprep.mubr.bf16.mxu0 %v3621_v36  ;;  %v342_v34 = vld [vmem:[%s4409_s24 + $0x520] sm:$0xff]  ;;  %v340_v35 = vld [vmem:[%s4409_s24 + $0x510] sm:$0xff] }
  0xa0   : > { %v344_v36 = vld [vmem:[%s4409_s24 + $0x530] sm:$0xff]  ;;  %v3681_v39 = vcombine.high %v338_v33, %v342_v34  ;;  %v3680_v45 = vcombine.low %v338_v33, %v342_v34  ;;  %v402_v33 = vld [vmem:[%s4409_s24 + $0x700] sm:$0xff] }
  0xa1   : > { %v3685_v40 = vcombine.high %v340_v35, %v344_v36  ;;  %v3684_v46 = vcombine.low %v340_v35, %v344_v36  ;;  %v406_v34 = vld [vmem:[%s4409_s24 + $0x720] sm:$0xff]  ;;  %v404_v35 = vld [vmem:[%s4409_s24 + $0x710] sm:$0xff] }
  0xa2   : > { %v408_v36 = vld [vmem:[%s4409_s24 + $0x730] sm:$0xff] }
  0xa6   : > { %2362 = vmatmul.mubr.bf16.gmra.mrb[48].mxu1 %v3616_v41  ;;  %2940 = vmatmul.mubr.bf16.gmra.mrb[48].mxu0 %v3620_v42  ;;  %v346_v41 = vld [vmem:[%s4409_s24 + $0x540] sm:$0xff] }
  0xa7   : > { %2369 = vmatprep.mubr.bf16.mxu1 %v3625_v43  ;;  %2947 = vmatprep.mubr.bf16.mxu0 %v3629_v44  ;;  %v350_v42 = vld [vmem:[%s4409_s24 + $0x560] sm:$0xff]  ;;  %v348_v43 = vld [vmem:[%s4409_s24 + $0x550] sm:$0xff] }
  0xa8   : > { %v352_v44 = vld [vmem:[%s4409_s24 + $0x570] sm:$0xff]  ;;  %v3689_v47 = vcombine.high %v346_v41, %v350_v42 }
  0xa9   : > { %v3693_v48 = vcombine.high %v348_v43, %v352_v44 }
  0xae   : > { %2370 = vmatmul.mubr.bf16.gmra.mrb[52].mxu1 %v3624_v51  ;;  %2948 = vmatmul.mubr.bf16.gmra.mrb[52].mxu0 %v3628_v52  ;;  %v356_v51 = vld [vmem:[%s4409_s24 + $0x590] sm:$0xff] }
  0xaf   : > { %2377 = vmatprep.mubr.bf16.mxu1 %v3633_v53  ;;  %2955 = vmatprep.mubr.bf16.mxu0 %v3637_v54  ;;  %v360_v52 = vld [vmem:[%s4409_s24 + $0x5b0] sm:$0xff]  ;;  %v3688_v53 = vcombine.low %v346_v41, %v350_v42  ;;  %v3692_v54 = vcombine.low %v348_v43, %v352_v44  ;;  %v410_v41 = vld [vmem:[%s4409_s24 + $0x740] sm:$0xff] }
  0xb0   : > { %v3701_v56 = vcombine.high %v356_v51, %v360_v52  ;;  %v414_v42 = vld [vmem:[%s4409_s24 + $0x760] sm:$0xff]  ;;  %v412_v43 = vld [vmem:[%s4409_s24 + $0x750] sm:$0xff] }
  0xb1   : > { %v416_v44 = vld [vmem:[%s4409_s24 + $0x770] sm:$0xff] }
  0xb6   : > { %2378 = vmatmul.mubr.bf16.gmra.mrb[56].mxu1 %v3632_v59  ;;  %2956 = vmatmul.mubr.bf16.gmra.mrb[56].mxu0 %v3636_v60  ;;  %v364_v59 = vld [vmem:[%s4409_s24 + $0x5d0] sm:$0xff] }
  0xb7   : > { %2385 = vmatprep.mubr.bf16.mxu1 %v3641_v61  ;;  %2963 = vmatprep.mubr.bf16.mxu0 %v3645_v62  ;;  %v368_v60 = vld [vmem:[%s4409_s24 + $0x5f0] sm:$0xff]  ;;  %v3696_v61 = vcombine.low %v354_v49, %v358_v50  ;;  %v3700_v62 = vcombine.low %v356_v51, %v360_v52  ;;  %v418_v49 = vld [vmem:[%s4409_s24 + $0x780] sm:$0xff] }
  0xb8   : > { %v3709_v63 = vcombine.high %v364_v59, %v368_v60  ;;  %v422_v50 = vld [vmem:[%s4409_s24 + $0x7a0] sm:$0xff]  ;;  %v420_v51 = vld [vmem:[%s4409_s24 + $0x790] sm:$0xff] }
  0xb9   : > { %v424_v52 = vld [vmem:[%s4409_s24 + $0x7b0] sm:$0xff] }
  0xbe   : > { %2386 = vmatmul.mubr.bf16.gmra.mrb[60].mxu1 %v3640_v5  ;;  %2964 = vmatmul.mubr.bf16.gmra.mrb[60].mxu0 %v3644_v6  ;;  %v3704_v5 = vcombine.low %v362_v57, %v366_v58  ;;  %v3708_v6 = vcombine.low %v364_v59, %v368_v60  ;;  %v426_v57 = vld [vmem:[%s4409_s24 + $0x7c0] sm:$0xff]  ;;  %v428_v59 = vld [vmem:[%s4409_s24 + $0x7d0] sm:$0xff] }
  0xbf   : > { %2393 = vmatprep.mubr.bf16.mxu1 %v3649_v7  ;;  %2971 = vmatprep.mubr.bf16.mxu0 %v3653_v8  ;;  %v3713_v7 = vcombine.high %v370_v0, %v374_v2  ;;  %v3717_v8 = vcombine.high %v372_v3, %v376_v4  ;;  %v430_v58 = vld [vmem:[%s4409_s24 + $0x7e0] sm:$0xff]  ;;  %v432_v60 = vld [vmem:[%s4409_s24 + $0x7f0] sm:$0xff] }
  0xc6   : > { %2394 = vmatmul.mubr.bf16.gmra.mrb[64].mxu1 %v3648_v13  ;;  %2972 = vmatmul.mubr.bf16.gmra.mrb[64].mxu0 %v3652_v14  ;;  %v3712_v13 = vcombine.low %v370_v0, %v374_v2  ;;  %v3716_v14 = vcombine.low %v372_v3, %v376_v4  ;;  %v179_v0 = vld [vmem:[%s4409_s24 + $0x8] sm:$0xff]  ;;  %v181_v3 = vld [vmem:[%s4409_s24 + $0x18] sm:$0xff] }
  0xc7   : > { %2401 = vmatprep.mubr.bf16.mxu1 %v3657_v15  ;;  %2979 = vmatprep.mubr.bf16.mxu0 %v3661_v16  ;;  %v3721_v15 = vcombine.high %v378_v9, %v382_v10  ;;  %v3725_v16 = vcombine.high %v380_v11, %v384_v12  ;;  %v183_v2 = vld [vmem:[%s4409_s24 + $0x28] sm:$0xff]  ;;  %v185_v4 = vld [vmem:[%s4409_s24 + $0x38] sm:$0xff] }
  0xce   : > { %2402 = vmatmul.mubr.bf16.gmra.mrb[68].mxu1 %v3656_v21  ;;  %2980 = vmatmul.mubr.bf16.gmra.mrb[68].mxu0 %v3660_v22  ;;  %v3720_v21 = vcombine.low %v378_v9, %v382_v10  ;;  %v3724_v22 = vcombine.low %v380_v11, %v384_v12  ;;  %v187_v9 = vld [vmem:[%s4409_s24 + $0x48] sm:$0xff]  ;;  %v189_v11 = vld [vmem:[%s4409_s24 + $0x58] sm:$0xff] }
  0xcf   : > { %2409 = vmatprep.mubr.bf16.mxu1 %v3665_v23  ;;  %2987 = vmatprep.mubr.bf16.mxu0 %v3669_v24  ;;  %v3729_v23 = vcombine.high %v386_v17, %v390_v18  ;;  %v3733_v24 = vcombine.high %v388_v19, %v392_v20  ;;  %v191_v10 = vld [vmem:[%s4409_s24 + $0x68] sm:$0xff]  ;;  %v193_v12 = vld [vmem:[%s4409_s24 + $0x78] sm:$0xff] }
  0xd6   : > { %2410 = vmatmul.mubr.bf16.gmra.mrb[72].mxu1 %v3664_v29  ;;  %2988 = vmatmul.mubr.bf16.gmra.mrb[72].mxu0 %v3668_v30  ;;  %v3728_v29 = vcombine.low %v386_v17, %v390_v18  ;;  %v3732_v30 = vcombine.low %v388_v19, %v392_v20  ;;  %v195_v17 = vld [vmem:[%s4409_s24 + $0x88] sm:$0xff]  ;;  %v197_v19 = vld [vmem:[%s4409_s24 + $0x98] sm:$0xff] }
  0xd7   : > { %2417 = vmatprep.mubr.bf16.mxu1 %v3673_v31  ;;  %2995 = vmatprep.mubr.bf16.mxu0 %v3677_v32  ;;  %v3737_v31 = vcombine.high %v394_v25, %v398_v26  ;;  %v3741_v32 = vcombine.high %v396_v27, %v400_v28  ;;  %v199_v18 = vld [vmem:[%s4409_s24 + $0xa8] sm:$0xff]  ;;  %v201_v20 = vld [vmem:[%s4409_s24 + $0xb8] sm:$0xff] }
  0xde   : > { %2418 = vmatmul.mubr.bf16.gmra.mrb[76].mxu1 %v3672_v37  ;;  %2996 = vmatmul.mubr.bf16.gmra.mrb[76].mxu0 %v3676_v38  ;;  %v3736_v37 = vcombine.low %v394_v25, %v398_v26  ;;  %v3740_v38 = vcombine.low %v396_v27, %v400_v28  ;;  %v203_v25 = vld [vmem:[%s4409_s24 + $0xc8] sm:$0xff]  ;;  %v205_v27 = vld [vmem:[%s4409_s24 + $0xd8] sm:$0xff] }
  0xdf   : > { %2425 = vmatprep.mubr.bf16.mxu1 %v3681_v39  ;;  %3003 = vmatprep.mubr.bf16.mxu0 %v3685_v40  ;;  %v3745_v39 = vcombine.high %v402_v33, %v406_v34  ;;  %v3749_v40 = vcombine.high %v404_v35, %v408_v36  ;;  %v207_v26 = vld [vmem:[%s4409_s24 + $0xe8] sm:$0xff]  ;;  %v209_v28 = vld [vmem:[%s4409_s24 + $0xf8] sm:$0xff] }
  0xe6   : > { %2426 = vmatmul.mubr.bf16.gmra.mrb[80].mxu1 %v3680_v45  ;;  %3004 = vmatmul.mubr.bf16.gmra.mrb[80].mxu0 %v3684_v46  ;;  %v3744_v45 = vcombine.low %v402_v33, %v406_v34  ;;  %v3748_v46 = vcombine.low %v404_v35, %v408_v36  ;;  %v211_v33 = vld [vmem:[%s4409_s24 + $0x108] sm:$0xff]  ;;  %v213_v35 = vld [vmem:[%s4409_s24 + $0x118] sm:$0xff] }
  0xe7   : > { %2433 = vmatprep.mubr.bf16.mxu1 %v3689_v47  ;;  %3011 = vmatprep.mubr.bf16.mxu0 %v3693_v48  ;;  %v3753_v47 = vcombine.high %v410_v41, %v414_v42  ;;  %v3757_v48 = vcombine.high %v412_v43, %v416_v44  ;;  %v215_v34 = vld [vmem:[%s4409_s24 + $0x128] sm:$0xff]  ;;  %v217_v36 = vld [vmem:[%s4409_s24 + $0x138] sm:$0xff] }
  0xee   : > { %2434 = vmatmul.mubr.bf16.gmra.mrb[84].mxu1 %v3688_v53  ;;  %3012 = vmatmul.mubr.bf16.gmra.mrb[84].mxu0 %v3692_v54  ;;  %v3752_v53 = vcombine.low %v410_v41, %v414_v42  ;;  %v3756_v54 = vcombine.low %v412_v43, %v416_v44  ;;  %v219_v41 = vld [vmem:[%s4409_s24 + $0x148] sm:$0xff]  ;;  %v221_v43 = vld [vmem:[%s4409_s24 + $0x158] sm:$0xff] }
  0xef   : > { %2441 = vmatprep.mubr.bf16.mxu1 %v3697_v55  ;;  %3019 = vmatprep.mubr.bf16.mxu0 %v3701_v56  ;;  %v3761_v55 = vcombine.high %v418_v49, %v422_v50  ;;  %v3765_v56 = vcombine.high %v420_v51, %v424_v52  ;;  %v223_v42 = vld [vmem:[%s4409_s24 + $0x168] sm:$0xff]  ;;  %v225_v44 = vld [vmem:[%s4409_s24 + $0x178] sm:$0xff] }
  0xf6   : > { %2442 = vmatmul.mubr.bf16.gmra.mrb[88].mxu1 %v3696_v61  ;;  %3020 = vmatmul.mubr.bf16.gmra.mrb[88].mxu0 %v3700_v62  ;;  %v3760_v61 = vcombine.low %v418_v49, %v422_v50  ;;  %v3764_v62 = vcombine.low %v420_v51, %v424_v52  ;;  %v227_v49 = vld [vmem:[%s4409_s24 + $0x188] sm:$0xff]  ;;  %v229_v51 = vld [vmem:[%s4409_s24 + $0x198] sm:$0xff] }
  0xf7   : > { %2449 = vmatprep.mubr.bf16.mxu1 %v3705_v1  ;;  %3027 = vmatprep.mubr.bf16.mxu0 %v3709_v63  ;;  %v3769_v1 = vcombine.high %v426_v57, %v430_v58  ;;  %v3773_v63 = vcombine.high %v428_v59, %v432_v60  ;;  %v231_v50 = vld [vmem:[%s4409_s24 + $0x1a8] sm:$0xff]  ;;  %v233_v52 = vld [vmem:[%s4409_s24 + $0x1b8] sm:$0xff] }
  0xfe   : > { %2450 = vmatmul.mubr.bf16.gmra.mrb[92].mxu1 %v3704_v5  ;;  %3028 = vmatmul.mubr.bf16.gmra.mrb[92].mxu0 %v3708_v6  ;;  %v3768_v5 = vcombine.low %v426_v57, %v430_v58  ;;  %v3772_v6 = vcombine.low %v428_v59, %v432_v60  ;;  %v235_v57 = vld [vmem:[%s4409_s24 + $0x1c8] sm:$0xff]  ;;  %v237_v59 = vld [vmem:[%s4409_s24 + $0x1d8] sm:$0xff] }
  0xff   : > { %2457 = vmatprep.mubr.bf16.mxu1 %v3713_v7  ;;  %3035 = vmatprep.mubr.bf16.mxu0 %v3717_v8  ;;  %v3523_v7 = vcombine.high %v179_v0, %v183_v2  ;;  %v3527_v8 = vcombine.high %v181_v3, %v185_v4  ;;  %v239_v58 = vld [vmem:[%s4409_s24 + $0x1e8] sm:$0xff]  ;;  %v241_v60 = vld [vmem:[%s4409_s24 + $0x1f8] sm:$0xff] }
 0x106   : > { %2458 = vmatmul.mubr.bf16.gmra.mrb[96].mxu1 %v3712_v13  ;;  %3036 = vmatmul.mubr.bf16.gmra.mrb[96].mxu0 %v3716_v14  ;;  %v3522_v13 = vcombine.low %v179_v0, %v183_v2  ;;  %v3526_v14 = vcombine.low %v181_v3, %v185_v4  ;;  %v243_v0 = vld [vmem:[%s4409_s24 + $0x208] sm:$0xff]  ;;  %v245_v3 = vld [vmem:[%s4409_s24 + $0x218] sm:$0xff] }
 0x107   : > { %2465 = vmatprep.mubr.bf16.mxu1 %v3721_v15  ;;  %3043 = vmatprep.mubr.bf16.mxu0 %v3725_v16  ;;  %v3531_v15 = vcombine.high %v187_v9, %v191_v10  ;;  %v3535_v16 = vcombine.high %v189_v11, %v193_v12  ;;  %v247_v2 = vld [vmem:[%s4409_s24 + $0x228] sm:$0xff]  ;;  %v249_v4 = vld [vmem:[%s4409_s24 + $0x238] sm:$0xff] }
 0x10e   : > { %2466 = vmatmul.mubr.bf16.gmra.mrb[100].mxu1 %v3720_v21  ;;  %3044 = vmatmul.mubr.bf16.gmra.mrb[100].mxu0 %v3724_v22  ;;  %v3530_v21 = vcombine.low %v187_v9, %v191_v10  ;;  %v3534_v22 = vcombine.low %v189_v11, %v193_v12  ;;  %v251_v9 = vld [vmem:[%s4409_s24 + $0x248] sm:$0xff]  ;;  %v253_v11 = vld [vmem:[%s4409_s24 + $0x258] sm:$0xff] }
 0x10f   : > { %2473 = vmatprep.mubr.bf16.mxu1 %v3729_v23  ;;  %3051 = vmatprep.mubr.bf16.mxu0 %v3733_v24  ;;  %v3539_v23 = vcombine.high %v195_v17, %v199_v18  ;;  %v3543_v24 = vcombine.high %v197_v19, %v201_v20  ;;  %v255_v10 = vld [vmem:[%s4409_s24 + $0x268] sm:$0xff]  ;;  %v257_v12 = vld [vmem:[%s4409_s24 + $0x278] sm:$0xff] }
 0x116   : > { %2474 = vmatmul.mubr.bf16.gmra.mrb[104].mxu1 %v3728_v29  ;;  %3052 = vmatmul.mubr.bf16.gmra.mrb[104].mxu0 %v3732_v30  ;;  %v3538_v29 = vcombine.low %v195_v17, %v199_v18  ;;  %v3542_v30 = vcombine.low %v197_v19, %v201_v20  ;;  %v259_v17 = vld [vmem:[%s4409_s24 + $0x288] sm:$0xff]  ;;  %v261_v19 = vld [vmem:[%s4409_s24 + $0x298] sm:$0xff] }
 0x117   : > { %2481 = vmatprep.mubr.bf16.mxu1 %v3737_v31  ;;  %3059 = vmatprep.mubr.bf16.mxu0 %v3741_v32  ;;  %v3547_v31 = vcombine.high %v203_v25, %v207_v26  ;;  %v3551_v32 = vcombine.high %v205_v27, %v209_v28  ;;  %v263_v18 = vld [vmem:[%s4409_s24 + $0x2a8] sm:$0xff]  ;;  %v265_v20 = vld [vmem:[%s4409_s24 + $0x2b8] sm:$0xff] }
 0x11e   : > { %2482 = vmatmul.mubr.bf16.gmra.mrb[108].mxu1 %v3736_v37  ;;  %3060 = vmatmul.mubr.bf16.gmra.mrb[108].mxu0 %v3740_v38  ;;  %v3546_v37 = vcombine.low %v203_v25, %v207_v26  ;;  %v3550_v38 = vcombine.low %v205_v27, %v209_v28  ;;  %v267_v25 = vld [vmem:[%s4409_s24 + $0x2c8] sm:$0xff]  ;;  %v269_v27 = vld [vmem:[%s4409_s24 + $0x2d8] sm:$0xff] }
 0x11f   : > { %2489 = vmatprep.mubr.bf16.mxu1 %v3745_v39  ;;  %3067 = vmatprep.mubr.bf16.mxu0 %v3749_v40  ;;  %v3555_v39 = vcombine.high %v211_v33, %v215_v34  ;;  %v3559_v40 = vcombine.high %v213_v35, %v217_v36  ;;  %v271_v26 = vld [vmem:[%s4409_s24 + $0x2e8] sm:$0xff]  ;;  %v273_v28 = vld [vmem:[%s4409_s24 + $0x2f8] sm:$0xff] }
 0x126   : > { %2490 = vmatmul.mubr.bf16.gmra.mrb[112].mxu1 %v3744_v45  ;;  %3068 = vmatmul.mubr.bf16.gmra.mrb[112].mxu0 %v3748_v46  ;;  %v3554_v45 = vcombine.low %v211_v33, %v215_v34  ;;  %v3558_v46 = vcombine.low %v213_v35, %v217_v36  ;;  %v275_v33 = vld [vmem:[%s4409_s24 + $0x308] sm:$0xff]  ;;  %v277_v35 = vld [vmem:[%s4409_s24 + $0x318] sm:$0xff] }
 0x127   : > { %2497 = vmatprep.mubr.bf16.mxu1 %v3753_v47  ;;  %3075 = vmatprep.mubr.bf16.mxu0 %v3757_v48  ;;  %v3563_v47 = vcombine.high %v219_v41, %v223_v42  ;;  %v3567_v48 = vcombine.high %v221_v43, %v225_v44  ;;  %v279_v34 = vld [vmem:[%s4409_s24 + $0x328] sm:$0xff]  ;;  %v281_v36 = vld [vmem:[%s4409_s24 + $0x338] sm:$0xff] }
 0x12e   : > { %2498 = vmatmul.mubr.bf16.gmra.mrb[116].mxu1 %v3752_v53  ;;  %3076 = vmatmul.mubr.bf16.gmra.mrb[116].mxu0 %v3756_v54  ;;  %v3562_v53 = vcombine.low %v219_v41, %v223_v42  ;;  %v3566_v54 = vcombine.low %v221_v43, %v225_v44  ;;  %v283_v41 = vld [vmem:[%s4409_s24 + $0x348] sm:$0xff]  ;;  %v285_v43 = vld [vmem:[%s4409_s24 + $0x358] sm:$0xff] }
 0x12f   : > { %2505 = vmatprep.mubr.bf16.mxu1 %v3761_v55  ;;  %3083 = vmatprep.mubr.bf16.mxu0 %v3765_v56  ;;  %v3571_v55 = vcombine.high %v227_v49, %v231_v50  ;;  %v3575_v56 = vcombine.high %v229_v51, %v233_v52  ;;  %v287_v42 = vld [vmem:[%s4409_s24 + $0x368] sm:$0xff]  ;;  %v289_v44 = vld [vmem:[%s4409_s24 + $0x378] sm:$0xff] }
 0x136   : > { %2506 = vmatmul.mubr.bf16.gmra.mrb[120].mxu1 %v3760_v61  ;;  %3084 = vmatmul.mubr.bf16.gmra.mrb[120].mxu0 %v3764_v62  ;;  %v3570_v61 = vcombine.low %v227_v49, %v231_v50  ;;  %v3574_v62 = vcombine.low %v229_v51, %v233_v52  ;;  %v291_v49 = vld [vmem:[%s4409_s24 + $0x388] sm:$0xff]  ;;  %v293_v51 = vld [vmem:[%s4409_s24 + $0x398] sm:$0xff] }
 0x137   : > { %2513 = vmatprep.mubr.bf16.mxu1 %v3769_v1  ;;  %3091 = vmatprep.mubr.bf16.mxu0 %v3773_v63  ;;  %v3579_v1 = vcombine.high %v235_v57, %v239_v58  ;;  %v3583_v63 = vcombine.high %v237_v59, %v241_v60  ;;  %v295_v50 = vld [vmem:[%s4409_s24 + $0x3a8] sm:$0xff]  ;;  %v297_v52 = vld [vmem:[%s4409_s24 + $0x3b8] sm:$0xff] }
 0x13e   : > { %2514 = vmatmul.mubr.bf16.gmra.mrb[124].mxu1 %v3768_v5  ;;  %3092 = vmatmul.mubr.bf16.gmra.mrb[124].mxu0 %v3772_v6  ;;  %v3578_v5 = vcombine.low %v235_v57, %v239_v58  ;;  %v3582_v6 = vcombine.low %v237_v59, %v241_v60  ;;  %v299_v57 = vld [vmem:[%s4409_s24 + $0x3c8] sm:$0xff]  ;;  %v301_v59 = vld [vmem:[%s4409_s24 + $0x3d8] sm:$0xff] }
 0x13f   : > { %2554 = vmatprep.mubr.bf16.mxu1 %v3523_v7  ;;  %3132 = vmatprep.mubr.bf16.mxu0 %v3527_v8  ;;  %v3587_v7 = vcombine.high %v243_v0, %v247_v2  ;;  %v3591_v8 = vcombine.high %v245_v3, %v249_v4  ;;  %v303_v58 = vld [vmem:[%s4409_s24 + $0x3e8] sm:$0xff]  ;;  %v305_v60 = vld [vmem:[%s4409_s24 + $0x3f8] sm:$0xff] }
 0x146   : > { %2555 = vmatmul.mubr.bf16.vlgmr.msra.gmra.mrb[0].mxu1 %v3522_v13  ;;  %3133 = vmatmul.mubr.bf16.vlgmr.msra.gmra.mrb[0].mxu0 %v3526_v14  ;;  %v3586_v13 = vcombine.low %v243_v0, %v247_v2  ;;  %v3590_v14 = vcombine.low %v245_v3, %v249_v4  ;;  %v307_v0 = vld [vmem:[%s4409_s24 + $0x408] sm:$0xff]  ;;  %v309_v3 = vld [vmem:[%s4409_s24 + $0x418] sm:$0xff] }
 0x147   : > { %2562 = vmatprep.mubr.bf16.mxu1 %v3531_v15  ;;  %3140 = vmatprep.mubr.bf16.mxu0 %v3535_v16  ;;  %v3595_v15 = vcombine.high %v251_v9, %v255_v10  ;;  %v3599_v16 = vcombine.high %v253_v11, %v257_v12  ;;  %v311_v2 = vld [vmem:[%s4409_s24 + $0x428] sm:$0xff]  ;;  %v313_v4 = vld [vmem:[%s4409_s24 + $0x438] sm:$0xff] }
 0x14e   : > { %2563 = vmatmul.mubr.bf16.gmra.mrb[4].mxu1 %v3530_v21  ;;  %3141 = vmatmul.mubr.bf16.gmra.mrb[4].mxu0 %v3534_v22  ;;  %v3594_v21 = vcombine.low %v251_v9, %v255_v10  ;;  %v3598_v22 = vcombine.low %v253_v11, %v257_v12  ;;  %v315_v9 = vld [vmem:[%s4409_s24 + $0x448] sm:$0xff]  ;;  %v317_v11 = vld [vmem:[%s4409_s24 + $0x458] sm:$0xff] }
 0x14f   : > { %2570 = vmatprep.mubr.bf16.mxu1 %v3539_v23  ;;  %3148 = vmatprep.mubr.bf16.mxu0 %v3543_v24  ;;  %v3603_v23 = vcombine.high %v259_v17, %v263_v18  ;;  %v3607_v24 = vcombine.high %v261_v19, %v265_v20  ;;  %v319_v10 = vld [vmem:[%s4409_s24 + $0x468] sm:$0xff]  ;;  %v321_v12 = vld [vmem:[%s4409_s24 + $0x478] sm:$0xff] }
 0x156   : > { %2571 = vmatmul.mubr.bf16.gmra.mrb[8].mxu1 %v3538_v29  ;;  %3149 = vmatmul.mubr.bf16.gmra.mrb[8].mxu0 %v3542_v30  ;;  %v3602_v29 = vcombine.low %v259_v17, %v263_v18  ;;  %v3606_v30 = vcombine.low %v261_v19, %v265_v20  ;;  %v323_v17 = vld [vmem:[%s4409_s24 + $0x488] sm:$0xff]  ;;  %v325_v19 = vld [vmem:[%s4409_s24 + $0x498] sm:$0xff] }
 0x157   : > { %2578 = vmatprep.mubr.bf16.mxu1 %v3547_v31  ;;  %3156 = vmatprep.mubr.bf16.mxu0 %v3551_v32  ;;  %v3611_v31 = vcombine.high %v267_v25, %v271_v26  ;;  %v3615_v32 = vcombine.high %v269_v27, %v273_v28  ;;  %v327_v18 = vld [vmem:[%s4409_s24 + $0x4a8] sm:$0xff]  ;;  %v329_v20 = vld [vmem:[%s4409_s24 + $0x4b8] sm:$0xff] }
 0x15e   : > { %2579 = vmatmul.mubr.bf16.gmra.mrb[12].mxu1 %v3546_v37  ;;  %3157 = vmatmul.mubr.bf16.gmra.mrb[12].mxu0 %v3550_v38  ;;  %v3610_v37 = vcombine.low %v267_v25, %v271_v26  ;;  %v3614_v38 = vcombine.low %v269_v27, %v273_v28  ;;  %v331_v25 = vld [vmem:[%s4409_s24 + $0x4c8] sm:$0xff]  ;;  %v333_v27 = vld [vmem:[%s4409_s24 + $0x4d8] sm:$0xff] }
 0x15f   : > { %2586 = vmatprep.mubr.bf16.mxu1 %v3555_v39  ;;  %3164 = vmatprep.mubr.bf16.mxu0 %v3559_v40  ;;  %v3619_v39 = vcombine.high %v275_v33, %v279_v34  ;;  %v3623_v40 = vcombine.high %v277_v35, %v281_v36  ;;  %v335_v26 = vld [vmem:[%s4409_s24 + $0x4e8] sm:$0xff]  ;;  %v337_v28 = vld [vmem:[%s4409_s24 + $0x4f8] sm:$0xff] }
 0x166   : > { %2587 = vmatmul.mubr.bf16.gmra.mrb[16].mxu1 %v3554_v45  ;;  %3165 = vmatmul.mubr.bf16.gmra.mrb[16].mxu0 %v3558_v46  ;;  %v3618_v45 = vcombine.low %v275_v33, %v279_v34  ;;  %v3622_v46 = vcombine.low %v277_v35, %v281_v36  ;;  %v339_v33 = vld [vmem:[%s4409_s24 + $0x508] sm:$0xff]  ;;  %v341_v35 = vld [vmem:[%s4409_s24 + $0x518] sm:$0xff] }
 0x167   : > { %2594 = vmatprep.mubr.bf16.mxu1 %v3563_v47  ;;  %3172 = vmatprep.mubr.bf16.mxu0 %v3567_v48  ;;  %v3627_v47 = vcombine.high %v283_v41, %v287_v42  ;;  %v3631_v48 = vcombine.high %v285_v43, %v289_v44  ;;  %v343_v34 = vld [vmem:[%s4409_s24 + $0x528] sm:$0xff]  ;;  %v345_v36 = vld [vmem:[%s4409_s24 + $0x538] sm:$0xff] }
 0x16e   : > { %2595 = vmatmul.mubr.bf16.gmra.mrb[20].mxu1 %v3562_v53  ;;  %3173 = vmatmul.mubr.bf16.gmra.mrb[20].mxu0 %v3566_v54  ;;  %v3626_v53 = vcombine.low %v283_v41, %v287_v42  ;;  %v3630_v54 = vcombine.low %v285_v43, %v289_v44  ;;  %v347_v41 = vld [vmem:[%s4409_s24 + $0x548] sm:$0xff]  ;;  %v349_v43 = vld [vmem:[%s4409_s24 + $0x558] sm:$0xff] }
 0x16f   : > { %2602 = vmatprep.mubr.bf16.mxu1 %v3571_v55  ;;  %3180 = vmatprep.mubr.bf16.mxu0 %v3575_v56  ;;  %v3635_v55 = vcombine.high %v291_v49, %v295_v50  ;;  %v3639_v56 = vcombine.high %v293_v51, %v297_v52  ;;  %v351_v42 = vld [vmem:[%s4409_s24 + $0x568] sm:$0xff]  ;;  %v353_v44 = vld [vmem:[%s4409_s24 + $0x578] sm:$0xff] }
 0x176   : > { %2603 = vmatmul.mubr.bf16.gmra.mrb[24].mxu1 %v3570_v61  ;;  %3181 = vmatmul.mubr.bf16.gmra.mrb[24].mxu0 %v3574_v62  ;;  %v3634_v61 = vcombine.low %v291_v49, %v295_v50  ;;  %v3638_v62 = vcombine.low %v293_v51, %v297_v52  ;;  %v355_v49 = vld [vmem:[%s4409_s24 + $0x588] sm:$0xff]  ;;  %v357_v51 = vld [vmem:[%s4409_s24 + $0x598] sm:$0xff] }
 0x177   : > { %2610 = vmatprep.mubr.bf16.mxu1 %v3579_v1  ;;  %3188 = vmatprep.mubr.bf16.mxu0 %v3583_v63  ;;  %v3643_v1 = vcombine.high %v299_v57, %v303_v58  ;;  %v3647_v63 = vcombine.high %v301_v59, %v305_v60  ;;  %v359_v50 = vld [vmem:[%s4409_s24 + $0x5a8] sm:$0xff]  ;;  %v361_v52 = vld [vmem:[%s4409_s24 + $0x5b8] sm:$0xff] }
 0x17e   : > { %2611 = vmatmul.mubr.bf16.gmra.mrb[28].mxu1 %v3578_v5  ;;  %3189 = vmatmul.mubr.bf16.gmra.mrb[28].mxu0 %v3582_v6  ;;  %v3642_v5 = vcombine.low %v299_v57, %v303_v58  ;;  %v3646_v6 = vcombine.low %v301_v59, %v305_v60  ;;  %v363_v57 = vld [vmem:[%s4409_s24 + $0x5c8] sm:$0xff]  ;;  %v365_v59 = vld [vmem:[%s4409_s24 + $0x5d8] sm:$0xff] }
 0x17f   : > { %2618 = vmatprep.mubr.bf16.mxu1 %v3587_v7  ;;  %3196 = vmatprep.mubr.bf16.mxu0 %v3591_v8  ;;  %v3651_v7 = vcombine.high %v307_v0, %v311_v2  ;;  %v3655_v8 = vcombine.high %v309_v3, %v313_v4  ;;  %v367_v58 = vld [vmem:[%s4409_s24 + $0x5e8] sm:$0xff]  ;;  %v369_v60 = vld [vmem:[%s4409_s24 + $0x5f8] sm:$0xff] }
 0x186   : > { %2619 = vmatmul.mubr.bf16.gmra.mrb[32].mxu1 %v3586_v13  ;;  %3197 = vmatmul.mubr.bf16.gmra.mrb[32].mxu0 %v3590_v14  ;;  %v3650_v13 = vcombine.low %v307_v0, %v311_v2  ;;  %v3654_v14 = vcombine.low %v309_v3, %v313_v4  ;;  %v371_v0 = vld [vmem:[%s4409_s24 + $0x608] sm:$0xff]  ;;  %v373_v3 = vld [vmem:[%s4409_s24 + $0x618] sm:$0xff] }
 0x187   : > { %2626 = vmatprep.mubr.bf16.mxu1 %v3595_v15  ;;  %3204 = vmatprep.mubr.bf16.mxu0 %v3599_v16  ;;  %v3659_v15 = vcombine.high %v315_v9, %v319_v10  ;;  %v3663_v16 = vcombine.high %v317_v11, %v321_v12  ;;  %v375_v2 = vld [vmem:[%s4409_s24 + $0x628] sm:$0xff]  ;;  %v377_v4 = vld [vmem:[%s4409_s24 + $0x638] sm:$0xff] }
 0x18e   : > { %2627 = vmatmul.mubr.bf16.gmra.mrb[36].mxu1 %v3594_v21  ;;  %3205 = vmatmul.mubr.bf16.gmra.mrb[36].mxu0 %v3598_v22  ;;  %v3658_v21 = vcombine.low %v315_v9, %v319_v10  ;;  %v3662_v22 = vcombine.low %v317_v11, %v321_v12  ;;  %v379_v9 = vld [vmem:[%s4409_s24 + $0x648] sm:$0xff]  ;;  %v381_v11 = vld [vmem:[%s4409_s24 + $0x658] sm:$0xff] }
 0x18f   : > { %2634 = vmatprep.mubr.bf16.mxu1 %v3603_v23  ;;  %3212 = vmatprep.mubr.bf16.mxu0 %v3607_v24  ;;  %v3667_v23 = vcombine.high %v323_v17, %v327_v18  ;;  %v3671_v24 = vcombine.high %v325_v19, %v329_v20  ;;  %v383_v10 = vld [vmem:[%s4409_s24 + $0x668] sm:$0xff]  ;;  %v385_v12 = vld [vmem:[%s4409_s24 + $0x678] sm:$0xff] }
 0x196   : > { %2635 = vmatmul.mubr.bf16.gmra.mrb[40].mxu1 %v3602_v29  ;;  %3213 = vmatmul.mubr.bf16.gmra.mrb[40].mxu0 %v3606_v30  ;;  %v3666_v29 = vcombine.low %v323_v17, %v327_v18  ;;  %v3670_v30 = vcombine.low %v325_v19, %v329_v20  ;;  %v387_v17 = vld [vmem:[%s4409_s24 + $0x688] sm:$0xff]  ;;  %v389_v19 = vld [vmem:[%s4409_s24 + $0x698] sm:$0xff] }
 0x197   : > { %2642 = vmatprep.mubr.bf16.mxu1 %v3611_v31  ;;  %3220 = vmatprep.mubr.bf16.mxu0 %v3615_v32  ;;  %v3675_v31 = vcombine.high %v331_v25, %v335_v26  ;;  %v3679_v32 = vcombine.high %v333_v27, %v337_v28  ;;  %v391_v18 = vld [vmem:[%s4409_s24 + $0x6a8] sm:$0xff]  ;;  %v393_v20 = vld [vmem:[%s4409_s24 + $0x6b8] sm:$0xff] }
 0x19e   : > { %2643 = vmatmul.mubr.bf16.gmra.mrb[44].mxu1 %v3610_v37  ;;  %3221 = vmatmul.mubr.bf16.gmra.mrb[44].mxu0 %v3614_v38  ;;  %v3674_v37 = vcombine.low %v331_v25, %v335_v26  ;;  %v3678_v38 = vcombine.low %v333_v27, %v337_v28  ;;  %v395_v25 = vld [vmem:[%s4409_s24 + $0x6c8] sm:$0xff]  ;;  %v397_v27 = vld [vmem:[%s4409_s24 + $0x6d8] sm:$0xff] }
 0x19f   : > { %2650 = vmatprep.mubr.bf16.mxu1 %v3619_v39  ;;  %3228 = vmatprep.mubr.bf16.mxu0 %v3623_v40  ;;  %v3683_v39 = vcombine.high %v339_v33, %v343_v34  ;;  %v3687_v40 = vcombine.high %v341_v35, %v345_v36  ;;  %v399_v26 = vld [vmem:[%s4409_s24 + $0x6e8] sm:$0xff]  ;;  %v401_v28 = vld [vmem:[%s4409_s24 + $0x6f8] sm:$0xff] }
 0x1a6   : > { %2651 = vmatmul.mubr.bf16.gmra.mrb[48].mxu1 %v3618_v45  ;;  %3229 = vmatmul.mubr.bf16.gmra.mrb[48].mxu0 %v3622_v46  ;;  %v3682_v45 = vcombine.low %v339_v33, %v343_v34  ;;  %v3686_v46 = vcombine.low %v341_v35, %v345_v36  ;;  %v4862_v33 = vld [vmem:[%s5019_s2] ss:$0 sm:$0xff]  ;;  %v403_v34 = vld [vmem:[%s4409_s24 + $0x708] sm:$0xff] }
 0x1a7   : > { %2658 = vmatprep.mubr.bf16.mxu1 %v3627_v47  ;;  %3236 = vmatprep.mubr.bf16.mxu0 %v3631_v48  ;;  %v3691_v47 = vcombine.high %v347_v41, %v351_v42  ;;  %v3695_v48 = vcombine.high %v349_v43, %v353_v44  ;;  %v407_v35 = vld [vmem:[%s4409_s24 + $0x728] sm:$0xff] }
 0x1ae   : > { %2659 = vmatmul.mubr.bf16.gmra.mrb[52].mxu1 %v3626_v53  ;;  %3237 = vmatmul.mubr.bf16.gmra.mrb[52].mxu0 %v3630_v54  ;;  %v3690_v53 = vcombine.low %v347_v41, %v351_v42  ;;  %v3694_v54 = vcombine.low %v349_v43, %v353_v44  ;;  %v3738_v42 = vcombine.low %v395_v25, %v399_v26 }
 0x1af   : > { %2666 = vmatprep.mubr.bf16.mxu1 %v3635_v55  ;;  %3244 = vmatprep.mubr.bf16.mxu0 %v3639_v56  ;;  %v3699_v55 = vcombine.high %v355_v49, %v359_v50  ;;  %v3703_v56 = vcombine.high %v357_v51, %v361_v52 }
 0x1b6   : > { %2667 = vmatmul.mubr.bf16.gmra.mrb[56].mxu1 %v3634_v61  ;;  %3245 = vmatmul.mubr.bf16.gmra.mrb[56].mxu0 %v3638_v62  ;;  %v3698_v61 = vcombine.low %v355_v49, %v359_v50  ;;  %v3702_v62 = vcombine.low %v357_v51, %v361_v52 }
 0x1b7   : > { %2674 = vmatprep.mubr.bf16.mxu1 %v3643_v1  ;;  %3252 = vmatprep.mubr.bf16.mxu0 %v3647_v63  ;;  %v3707_v1 = vcombine.high %v363_v57, %v367_v58  ;;  %v3711_v63 = vcombine.high %v365_v59, %v369_v60 }
 0x1be   : > { %2675 = vmatmul.mubr.bf16.gmra.mrb[60].mxu1 %v3642_v5  ;;  %3253 = vmatmul.mubr.bf16.gmra.mrb[60].mxu0 %v3646_v6  ;;  %v3706_v5 = vcombine.low %v363_v57, %v367_v58  ;;  %v3710_v6 = vcombine.low %v365_v59, %v369_v60  ;;  %v413_v57 = vld [vmem:[%s4409_s24 + $0x758] sm:$0xff] }
 0x1bf   : > { %2682 = vmatprep.mubr.bf16.mxu1 %v3651_v7  ;;  %3260 = vmatprep.mubr.bf16.mxu0 %v3655_v8  ;;  %v3715_v7 = vcombine.high %v371_v0, %v375_v2  ;;  %v3719_v8 = vcombine.high %v373_v3, %v377_v4  ;;  %v417_v58 = vld [vmem:[%s4409_s24 + $0x778] sm:$0xff] }
 0x1c6   : > { %2683 = vmatmul.mubr.bf16.gmra.mrb[64].mxu1 %v3650_v13  ;;  %3261 = vmatmul.mubr.bf16.gmra.mrb[64].mxu0 %v3654_v14  ;;  %v3714_v13 = vcombine.low %v371_v0, %v375_v2  ;;  %v3718_v14 = vcombine.low %v373_v3, %v377_v4 }
 0x1c7   : > { %2690 = vmatprep.mubr.bf16.mxu1 %v3659_v15  ;;  %3268 = vmatprep.mubr.bf16.mxu0 %v3663_v16  ;;  %v3723_v15 = vcombine.high %v379_v9, %v383_v10  ;;  %v3727_v16 = vcombine.high %v381_v11, %v385_v12 }
 0x1ce   : > { %2691 = vmatmul.mubr.bf16.gmra.mrb[68].mxu1 %v3658_v21  ;;  %3269 = vmatmul.mubr.bf16.gmra.mrb[68].mxu0 %v3662_v22  ;;  %v3722_v21 = vcombine.low %v379_v9, %v383_v10  ;;  %v3726_v22 = vcombine.low %v381_v11, %v385_v12  ;;  %v419_v10 = vld [vmem:[%s4409_s24 + $0x788] sm:$0xff] }
 0x1cf   : > { %2698 = vmatprep.mubr.bf16.mxu1 %v3667_v23  ;;  %3276 = vmatprep.mubr.bf16.mxu0 %v3671_v24  ;;  %v3731_v23 = vcombine.high %v387_v17, %v391_v18  ;;  %v3735_v24 = vcombine.high %v389_v19, %v393_v20  ;;  %v423_v11 = vld [vmem:[%s4409_s24 + $0x7a8] sm:$0xff] }
 0x1d6   : > { %2699 = vmatmul.mubr.bf16.gmra.mrb[72].mxu1 %v3666_v29  ;;  %3277 = vmatmul.mubr.bf16.gmra.mrb[72].mxu0 %v3670_v30  ;;  %v3730_v29 = vcombine.low %v387_v17, %v391_v18  ;;  %v3734_v30 = vcombine.low %v389_v19, %v393_v20 }
 0x1d7   : > { %2706 = vmatprep.mubr.bf16.mxu1 %v3675_v31  ;;  %3284 = vmatprep.mubr.bf16.mxu0 %v3679_v32  ;;  %v3739_v31 = vcombine.high %v395_v25, %v399_v26  ;;  %v3743_v32 = vcombine.high %v397_v27, %v401_v28 }
 0x1de   : > { %2707 = vmatmul.mubr.bf16.gmra.mrb[76].mxu1 %v3674_v37  ;;  %3285 = vmatmul.mubr.bf16.gmra.mrb[76].mxu0 %v3678_v38  ;;  %v405_v37 = vld [vmem:[%s4409_s24 + $0x718] sm:$0xff] }
 0x1df   : > { %2714 = vmatprep.mubr.bf16.mxu1 %v3683_v39  ;;  %3292 = vmatprep.mubr.bf16.mxu0 %v3687_v40  ;;  %v409_v38 = vld [vmem:[%s4409_s24 + $0x738] sm:$0xff] }
 0x1e0   : > { %v3751_v51 = vcombine.high %v405_v37, %v409_v38  ;;  %v3750_v0 = vcombine.low %v405_v37, %v409_v38 }
 0x1e6   : > { %2715 = vmatmul.mubr.bf16.gmra.mrb[80].mxu1 %v3682_v45  ;;  %3293 = vmatmul.mubr.bf16.gmra.mrb[80].mxu0 %v3686_v46  ;;  %v3742_v45 = vcombine.low %v397_v27, %v401_v28  ;;  %v3747_v46 = vcombine.high %v403_v34, %v407_v35 }
 0x1e7   : > { %2722 = vmatprep.mubr.bf16.mxu1 %v3691_v47  ;;  %3300 = vmatprep.mubr.bf16.mxu0 %v3695_v48 }
 0x1ee   : > { %2723 = vmatmul.mubr.bf16.gmra.mrb[84].mxu1 %v3690_v53  ;;  %3301 = vmatmul.mubr.bf16.gmra.mrb[84].mxu0 %v3694_v54  ;;  %v411_v54 = vld [vmem:[%s4409_s24 + $0x748] sm:$0xff] }
 0x1ef   : > { %2730 = vmatprep.mubr.bf16.mxu1 %v3699_v55  ;;  %3308 = vmatprep.mubr.bf16.mxu0 %v3703_v56  ;;  %v415_v55 = vld [vmem:[%s4409_s24 + $0x768] sm:$0xff] }
 0x1f0   : > { %v3755_v2 = vcombine.high %v411_v54, %v415_v55  ;;  %v3754_v18 = vcombine.low %v411_v54, %v415_v55 }
 0x1f6   : > { %2731 = vmatmul.mubr.bf16.gmra.mrb[88].mxu1 %v3698_v61  ;;  %3309 = vmatmul.mubr.bf16.gmra.mrb[88].mxu0 %v3702_v62  ;;  %v3746_v62 = vcombine.low %v403_v34, %v407_v35  ;;  %v429_v34 = vld [vmem:[%s4409_s24 + $0x7d8] sm:$0xff] }
 0x1f7   : > { %2738 = vmatprep.mubr.bf16.mxu1 %v3707_v1  ;;  %3316 = vmatprep.mubr.bf16.mxu0 %v3711_v63  ;;  %v433_v35 = vld [vmem:[%s4409_s24 + $0x7f8] sm:$0xff] }
 0x1fe   : > { %2739 = vmatmul.mubr.bf16.gmra.mrb[92].mxu1 %v3706_v5  ;;  %3317 = vmatmul.mubr.bf16.gmra.mrb[92].mxu0 %v3710_v6 }
 0x1ff   : > { %2746 = vmatprep.mubr.bf16.mxu1 %v3715_v7  ;;  %3324 = vmatprep.mubr.bf16.mxu0 %v3719_v8  ;;  %v3759_v7 = vcombine.high %v413_v57, %v417_v58 }
 0x206   : > { %2747 = vmatmul.mubr.bf16.gmra.mrb[96].mxu1 %v3714_v13  ;;  %3325 = vmatmul.mubr.bf16.gmra.mrb[96].mxu0 %v3718_v14  ;;  %v421_v13 = vld [vmem:[%s4409_s24 + $0x798] sm:$0xff] }
 0x207   : > { %2754 = vmatprep.mubr.bf16.mxu1 %v3723_v15  ;;  %3332 = vmatprep.mubr.bf16.mxu0 %v3727_v16  ;;  %v425_v14 = vld [vmem:[%s4409_s24 + $0x7b8] sm:$0xff] }
 0x208   : > { %v3767_v27 = vcombine.high %v421_v13, %v425_v14 }
 0x20e   : > { %2755 = vmatmul.mubr.bf16.gmra.mrb[100].mxu1 %v3722_v21  ;;  %3333 = vmatmul.mubr.bf16.gmra.mrb[100].mxu0 %v3726_v22  ;;  %v3758_v21 = vcombine.low %v413_v57, %v417_v58  ;;  %v3763_v22 = vcombine.high %v419_v10, %v423_v11  ;;  %v3774_v58 = vcombine.low %v429_v34, %v433_v35 }
 0x20f   : > { %2762 = vmatprep.mubr.bf16.mxu1 %v3731_v23  ;;  %3340 = vmatprep.mubr.bf16.mxu0 %v3735_v24 }
 0x216   : > { %2763 = vmatmul.mubr.bf16.gmra.mrb[104].mxu1 %v3730_v29  ;;  %3341 = vmatmul.mubr.bf16.gmra.mrb[104].mxu0 %v3734_v30  ;;  %v427_v30 = vld [vmem:[%s4409_s24 + $0x7c8] sm:$0xff] }
 0x217   : > { %2770 = vmatprep.mubr.bf16.mxu1 %v3739_v31  ;;  %3348 = vmatprep.mubr.bf16.mxu0 %v3743_v32  ;;  %v431_v31 = vld [vmem:[%s4409_s24 + $0x7e8] sm:$0xff] }
 0x218   : > { %v3770_v55 = vcombine.low %v427_v30, %v431_v31 }
 0x219   : > { %v2556_v36 = vpop.f32.mrb[0].mxu1  ;;  %v3134_v40 = vpop.f32.mrb[0].mxu0 }
 0x21a   : > { %v3843_v39 = vadd.f32 %v4862_v33, %v2556_v36  ;;  %v2558_v41 = vpop.f32.mrb[1].mxu1  ;;  %v3136_v43 = vpop.f32.mrb[1].mxu0 }
 0x21b   : > { %v2559_v44 = vpop.f32.mrb[2].mxu1  ;;  %v3137_v49 = vpop.f32.mrb[2].mxu0  ;;  %v3771_v43 = vcombine.high %v427_v30, %v431_v31 }
 0x21c   : > { %v3844_v47 = vadd.f32 %v3843_v39, %v3134_v40  ;;  %v3845_v48 = vadd.f32 %v4862_v33, %v2559_v44  ;;  %v2561_v50 = vpop.f32.mrb[3].mxu1  ;;  %v3139_v52 = vpop.f32.mrb[3].mxu0  ;;  %v3762_v39 = vcombine.low %v419_v10, %v423_v11 }
 0x21e   : > { %3389 = vst [vmem:[%s4873_s30] sm:$0xff] %v3844_v47  ;;  %v3846_v53 = vadd.f32 %v3845_v48, %v3137_v49  ;;  %2771 = vmatmul.mubr.bf16.gmra.mrb[108].mxu1 %v3738_v42  ;;  %3349 = vmatmul.mubr.bf16.gmra.mrb[108].mxu0 %v3742_v45  ;;  %v3766_v42 = vcombine.low %v421_v13, %v425_v14 }
 0x21f   : > { %2778 = vmatprep.mubr.bf16.mxu1 %v3747_v46  ;;  %3356 = vmatprep.mubr.bf16.mxu0 %v3751_v51  ;;  %v3775_v48 = vcombine.high %v429_v34, %v433_v35 }
 0x220   : > { %3390 = vst [vmem:[%s4873_s30 + $0x8] sm:$0xff] %v3846_v53 }
 0x221   : > { %v2564_v56 = vpop.f32.mrb[4].mxu1  ;;  %v3142_v60 = vpop.f32.mrb[4].mxu0 }
 0x222   : > { %v3847_v59 = vadd.f32 %v4862_v33, %v2564_v56  ;;  %v2566_v61 = vpop.f32.mrb[5].mxu1  ;;  %v3144_v1 = vpop.f32.mrb[5].mxu0 }
 0x223   : > { %v2567_v63 = vpop.f32.mrb[6].mxu1  ;;  %v3145_v5 = vpop.f32.mrb[6].mxu0 }
 0x224   : > { %v3848_v3 = vadd.f32 %v3847_v59, %v3142_v60  ;;  %v3849_v4 = vadd.f32 %v4862_v33, %v2567_v63  ;;  %v2569_v6 = vpop.f32.mrb[7].mxu1  ;;  %v3147_v8 = vpop.f32.mrb[7].mxu0 }
 0x226   : > { %3391 = vst [vmem:[%s4873_s30 + $0x10] sm:$0xff] %v3848_v3  ;;  %v3850_v9 = vadd.f32 %v3849_v4, %v3145_v5  ;;  %2779 = vmatmul.mubr.bf16.gmra.mrb[112].mxu1 %v3746_v62  ;;  %3357 = vmatmul.mubr.bf16.gmra.mrb[112].mxu0 %v3750_v0 }
 0x227   : > { %2786 = vmatprep.mubr.bf16.mxu1 %v3755_v2  ;;  %3364 = vmatprep.mubr.bf16.mxu0 %v3759_v7 }
 0x228   : > { %3392 = vst [vmem:[%s4873_s30 + $0x18] sm:$0xff] %v3850_v9 }
 0x229   : > { %v2572_v12 = vpop.f32.mrb[8].mxu1  ;;  %v3150_v16 = vpop.f32.mrb[8].mxu0 }
 0x22a   : > { %v3851_v15 = vadd.f32 %v4862_v33, %v2572_v12  ;;  %v2574_v17 = vpop.f32.mrb[9].mxu1  ;;  %v3152_v19 = vpop.f32.mrb[9].mxu0 }
 0x22b   : > { %v2575_v20 = vpop.f32.mrb[10].mxu1  ;;  %v3153_v25 = vpop.f32.mrb[10].mxu0 }
 0x22c   : > { %v3852_v23 = vadd.f32 %v3851_v15, %v3150_v16  ;;  %v3853_v24 = vadd.f32 %v4862_v33, %v2575_v20  ;;  %v2577_v26 = vpop.f32.mrb[11].mxu1  ;;  %v3155_v28 = vpop.f32.mrb[11].mxu0 }
 0x22e   : > { %3393 = vst [vmem:[%s4873_s30 + $0x20] sm:$0xff] %v3852_v23  ;;  %v3854_v29 = vadd.f32 %v3853_v24, %v3153_v25  ;;  %2787 = vmatmul.mubr.bf16.gmra.mrb[116].mxu1 %v3754_v18  ;;  %3365 = vmatmul.mubr.bf16.gmra.mrb[116].mxu0 %v3758_v21 }
 0x22f   : > { %2794 = vmatprep.mubr.bf16.mxu1 %v3763_v22  ;;  %3372 = vmatprep.mubr.bf16.mxu0 %v3767_v27 }
 0x230   : > { %3394 = vst [vmem:[%s4873_s30 + $0x28] sm:$0xff] %v3854_v29 }
 0x231   : > { %v2580_v32 = vpop.f32.mrb[12].mxu1  ;;  %v3158_v37 = vpop.f32.mrb[12].mxu0 }
 0x232   : > { %v3855_v36 = vadd.f32 %v4862_v33, %v2580_v32  ;;  %v2582_v38 = vpop.f32.mrb[13].mxu1  ;;  %v3160_v40 = vpop.f32.mrb[13].mxu0 }
 0x233   : > { %v2583_v41 = vpop.f32.mrb[14].mxu1  ;;  %v3161_v46 = vpop.f32.mrb[14].mxu0 }
 0x234   : > { %v3856_v44 = vadd.f32 %v3855_v36, %v3158_v37  ;;  %v3857_v45 = vadd.f32 %v4862_v33, %v2583_v41  ;;  %v2585_v47 = vpop.f32.mrb[15].mxu1  ;;  %v3163_v49 = vpop.f32.mrb[15].mxu0 }
 0x236   : > { %3395 = vst [vmem:[%s4873_s30 + $0x30] sm:$0xff] %v3856_v44  ;;  %v3858_v50 = vadd.f32 %v3857_v45, %v3161_v46  ;;  %2795 = vmatmul.mubr.bf16.gmra.mrb[120].mxu1 %v3762_v39  ;;  %3373 = vmatmul.mubr.bf16.gmra.mrb[120].mxu0 %v3766_v42 }
 0x237   : > { %2802 = vmatprep.mubr.bf16.mxu1 %v3771_v43  ;;  %3380 = vmatprep.mubr.bf16.mxu0 %v3775_v48 }
 0x238   : > { %3396 = vst [vmem:[%s4873_s30 + $0x38] sm:$0xff] %v3858_v50 }
 0x239   : > { %v2588_v51 = vpop.f32.mrb[16].mxu1  ;;  %v3166_v53 = vpop.f32.mrb[16].mxu0 }
 0x23a   : > { %v3859_v52 = vadd.f32 %v4862_v33, %v2588_v51  ;;  %v2590_v54 = vpop.f32.mrb[17].mxu1  ;;  %v3168_v56 = vpop.f32.mrb[17].mxu0 }
 0x23b   : > { %v2591_v57 = vpop.f32.mrb[18].mxu1  ;;  %v3169_v61 = vpop.f32.mrb[18].mxu0 }
 0x23c   : > { %v3860_v59 = vadd.f32 %v3859_v52, %v3166_v53  ;;  %v3861_v60 = vadd.f32 %v4862_v33, %v2591_v57  ;;  %v2593_v62 = vpop.f32.mrb[19].mxu1  ;;  %v3171_v1 = vpop.f32.mrb[19].mxu0 }
 0x23e   : > { %3397 = vst [vmem:[%s4873_s30 + $0x40] sm:$0xff] %v3860_v59  ;;  %v3862_v63 = vadd.f32 %v3861_v60, %v3169_v61  ;;  %2803 = vmatmul.mubr.bf16.gmra.mrb[124].mxu1 %v3770_v55  ;;  %3381 = vmatmul.mubr.bf16.gmra.mrb[124].mxu0 %v3774_v58 }
 0x240   : > { %3398 = vst [vmem:[%s4873_s30 + $0x48] sm:$0xff] %v3862_v63 }
 0x241   : > { %v2596_v0 = vpop.f32.mrb[20].mxu1  ;;  %v3174_v3 = vpop.f32.mrb[20].mxu0 }
 0x242   : > { %v3863_v2 = vadd.f32 %v4862_v33, %v2596_v0  ;;  %v2598_v4 = vpop.f32.mrb[21].mxu1  ;;  %v3176_v5 = vpop.f32.mrb[21].mxu0 }
 0x243   : > { %v2599_v6 = vpop.f32.mrb[22].mxu1  ;;  %v3177_v9 = vpop.f32.mrb[22].mxu0 }
 0x244   : > { %v3864_v7 = vadd.f32 %v3863_v2, %v3174_v3  ;;  %v3865_v8 = vadd.f32 %v4862_v33, %v2599_v6  ;;  %v2601_v10 = vpop.f32.mrb[23].mxu1  ;;  %v3179_v11 = vpop.f32.mrb[23].mxu0 }
 0x246   : > { %3399 = vst [vmem:[%s4873_s30 + $0x50] sm:$0xff] %v3864_v7  ;;  %v3866_v12 = vadd.f32 %v3865_v8, %v3177_v9 }
 0x248   : > { %3400 = vst [vmem:[%s4873_s30 + $0x58] sm:$0xff] %v3866_v12 }
 0x249   : > { %v2604_v13 = vpop.f32.mrb[24].mxu1  ;;  %v3182_v15 = vpop.f32.mrb[24].mxu0 }
 0x24a   : > { %v3867_v14 = vadd.f32 %v4862_v33, %v2604_v13  ;;  %v2606_v16 = vpop.f32.mrb[25].mxu1  ;;  %v3184_v17 = vpop.f32.mrb[25].mxu0 }
 0x24b   : > { %v2607_v18 = vpop.f32.mrb[26].mxu1  ;;  %v3185_v21 = vpop.f32.mrb[26].mxu0 }
 0x24c   : > { %v3868_v19 = vadd.f32 %v3867_v14, %v3182_v15  ;;  %v3869_v20 = vadd.f32 %v4862_v33, %v2607_v18  ;;  %v2609_v22 = vpop.f32.mrb[27].mxu1  ;;  %v3187_v23 = vpop.f32.mrb[27].mxu0 }
 0x24e   : > { %3401 = vst [vmem:[%s4873_s30 + $0x60] sm:$0xff] %v3868_v19  ;;  %v3870_v24 = vadd.f32 %v3869_v20, %v3185_v21 }
 0x250   : > { %3402 = vst [vmem:[%s4873_s30 + $0x68] sm:$0xff] %v3870_v24 }
 0x251   : > { %v2612_v25 = vpop.f32.mrb[28].mxu1  ;;  %v3190_v27 = vpop.f32.mrb[28].mxu0 }
 0x252   : > { %v3871_v26 = vadd.f32 %v4862_v33, %v2612_v25  ;;  %v2614_v28 = vpop.f32.mrb[29].mxu1  ;;  %v3192_v29 = vpop.f32.mrb[29].mxu0 }
 0x253   : > { %v2615_v30 = vpop.f32.mrb[30].mxu1  ;;  %v3193_v34 = vpop.f32.mrb[30].mxu0 }
 0x254   : > { %v3872_v31 = vadd.f32 %v3871_v26, %v3190_v27  ;;  %v3873_v32 = vadd.f32 %v4862_v33, %v2615_v30  ;;  %v2617_v35 = vpop.f32.mrb[31].mxu1  ;;  %v3195_v36 = vpop.f32.mrb[31].mxu0 }
 0x256   : > { %3403 = vst [vmem:[%s4873_s30 + $0x70] sm:$0xff] %v3872_v31  ;;  %v3874_v37 = vadd.f32 %v3873_v32, %v3193_v34 }
 0x258   : > { %3404 = vst [vmem:[%s4873_s30 + $0x78] sm:$0xff] %v3874_v37 }
 0x259   : > { %v2620_v38 = vpop.f32.mrb[32].mxu1  ;;  %v3198_v40 = vpop.f32.mrb[32].mxu0 }
 0x25a   : > { %v3875_v39 = vadd.f32 %v4862_v33, %v2620_v38  ;;  %v2622_v41 = vpop.f32.mrb[33].mxu1  ;;  %v3200_v42 = vpop.f32.mrb[33].mxu0 }
 0x25b   : > { %v2623_v43 = vpop.f32.mrb[34].mxu1  ;;  %v3201_v46 = vpop.f32.mrb[34].mxu0 }
 0x25c   : > { %v3876_v44 = vadd.f32 %v3875_v39, %v3198_v40  ;;  %v3877_v45 = vadd.f32 %v4862_v33, %v2623_v43  ;;  %v2625_v47 = vpop.f32.mrb[35].mxu1  ;;  %v3203_v48 = vpop.f32.mrb[35].mxu0 }
 0x25e   : > { %3405 = vst [vmem:[%s4873_s30 + $0x80] sm:$0xff] %v3876_v44  ;;  %v3878_v49 = vadd.f32 %v3877_v45, %v3201_v46 }
 0x260   : > { %3406 = vst [vmem:[%s4873_s30 + $0x88] sm:$0xff] %v3878_v49 }
 0x261   : > { %v2628_v50 = vpop.f32.mrb[36].mxu1  ;;  %v3206_v52 = vpop.f32.mrb[36].mxu0 }
 0x262   : > { %v3879_v51 = vadd.f32 %v4862_v33, %v2628_v50  ;;  %v2630_v53 = vpop.f32.mrb[37].mxu1  ;;  %v3208_v54 = vpop.f32.mrb[37].mxu0 }
 0x263   : > { %v2631_v55 = vpop.f32.mrb[38].mxu1  ;;  %v3209_v58 = vpop.f32.mrb[38].mxu0 }
 0x264   : > { %v3880_v56 = vadd.f32 %v3879_v51, %v3206_v52  ;;  %v3881_v57 = vadd.f32 %v4862_v33, %v2631_v55  ;;  %v2633_v59 = vpop.f32.mrb[39].mxu1  ;;  %v3211_v60 = vpop.f32.mrb[39].mxu0 }
 0x266   : > { %3407 = vst [vmem:[%s4873_s30 + $0x90] sm:$0xff] %v3880_v56  ;;  %v3882_v61 = vadd.f32 %v3881_v57, %v3209_v58 }
 0x268   : > { %3408 = vst [vmem:[%s4873_s30 + $0x98] sm:$0xff] %v3882_v61 }
 0x269   : > { %v2636_v62 = vpop.f32.mrb[40].mxu1  ;;  %v3214_v63 = vpop.f32.mrb[40].mxu0 }
 0x26a   : > { %v3883_v1 = vadd.f32 %v4862_v33, %v2636_v62  ;;  %v2638_v0 = vpop.f32.mrb[41].mxu1  ;;  %v3216_v2 = vpop.f32.mrb[41].mxu0 }
 0x26b   : > { %v2639_v3 = vpop.f32.mrb[42].mxu1  ;;  %v3217_v6 = vpop.f32.mrb[42].mxu0 }
 0x26c   : > { %v3884_v4 = vadd.f32 %v3883_v1, %v3214_v63  ;;  %v3885_v5 = vadd.f32 %v4862_v33, %v2639_v3  ;;  %v2641_v7 = vpop.f32.mrb[43].mxu1  ;;  %v3219_v8 = vpop.f32.mrb[43].mxu0 }
 0x26e   : > { %3409 = vst [vmem:[%s4873_s30 + $0xa0] sm:$0xff] %v3884_v4  ;;  %v3886_v9 = vadd.f32 %v3885_v5, %v3217_v6 }
 0x270   : > { %3410 = vst [vmem:[%s4873_s30 + $0xa8] sm:$0xff] %v3886_v9 }
 0x271   : > { %v2644_v10 = vpop.f32.mrb[44].mxu1  ;;  %v3222_v12 = vpop.f32.mrb[44].mxu0 }
 0x272   : > { %v3887_v11 = vadd.f32 %v4862_v33, %v2644_v10  ;;  %v2646_v13 = vpop.f32.mrb[45].mxu1  ;;  %v3224_v14 = vpop.f32.mrb[45].mxu0 }
 0x273   : > { %v2647_v15 = vpop.f32.mrb[46].mxu1  ;;  %v3225_v18 = vpop.f32.mrb[46].mxu0 }
 0x274   : > { %v3888_v16 = vadd.f32 %v3887_v11, %v3222_v12  ;;  %v3889_v17 = vadd.f32 %v4862_v33, %v2647_v15  ;;  %v2649_v19 = vpop.f32.mrb[47].mxu1  ;;  %v3227_v20 = vpop.f32.mrb[47].mxu0 }
 0x276   : > { %3411 = vst [vmem:[%s4873_s30 + $0xb0] sm:$0xff] %v3888_v16  ;;  %v3890_v21 = vadd.f32 %v3889_v17, %v3225_v18 }
 0x278   : > { %3412 = vst [vmem:[%s4873_s30 + $0xb8] sm:$0xff] %v3890_v21 }
 0x279   : > { %v2652_v22 = vpop.f32.mrb[48].mxu1  ;;  %v3230_v24 = vpop.f32.mrb[48].mxu0 }
 0x27a   : > { %v3891_v23 = vadd.f32 %v4862_v33, %v2652_v22  ;;  %v2654_v25 = vpop.f32.mrb[49].mxu1  ;;  %v3232_v26 = vpop.f32.mrb[49].mxu0 }
 0x27b   : > { %v2655_v27 = vpop.f32.mrb[50].mxu1  ;;  %v3233_v30 = vpop.f32.mrb[50].mxu0 }
 0x27c   : > { %v3892_v28 = vadd.f32 %v3891_v23, %v3230_v24  ;;  %v3893_v29 = vadd.f32 %v4862_v33, %v2655_v27  ;;  %v2657_v31 = vpop.f32.mrb[51].mxu1  ;;  %v3235_v32 = vpop.f32.mrb[51].mxu0 }
 0x27e   : > { %3413 = vst [vmem:[%s4873_s30 + $0xc0] sm:$0xff] %v3892_v28  ;;  %v3894_v34 = vadd.f32 %v3893_v29, %v3233_v30 }
 0x280   : > { %3414 = vst [vmem:[%s4873_s30 + $0xc8] sm:$0xff] %v3894_v34 }
 0x281   : > { %v2660_v35 = vpop.f32.mrb[52].mxu1  ;;  %v3238_v37 = vpop.f32.mrb[52].mxu0 }
 0x282   : > { %v3895_v36 = vadd.f32 %v4862_v33, %v2660_v35  ;;  %v2662_v38 = vpop.f32.mrb[53].mxu1  ;;  %v3240_v39 = vpop.f32.mrb[53].mxu0 }
 0x283   : > { %v2663_v40 = vpop.f32.mrb[54].mxu1  ;;  %v3241_v43 = vpop.f32.mrb[54].mxu0 }
 0x284   : > { %v3896_v41 = vadd.f32 %v3895_v36, %v3238_v37  ;;  %v3897_v42 = vadd.f32 %v4862_v33, %v2663_v40  ;;  %v2665_v44 = vpop.f32.mrb[55].mxu1  ;;  %v3243_v45 = vpop.f32.mrb[55].mxu0 }
 0x286   : > { %3415 = vst [vmem:[%s4873_s30 + $0xd0] sm:$0xff] %v3896_v41  ;;  %v3898_v46 = vadd.f32 %v3897_v42, %v3241_v43 }
 0x288   : > { %3416 = vst [vmem:[%s4873_s30 + $0xd8] sm:$0xff] %v3898_v46 }
 0x289   : > { %v2668_v47 = vpop.f32.mrb[56].mxu1  ;;  %v3246_v49 = vpop.f32.mrb[56].mxu0 }
 0x28a   : > { %v3899_v48 = vadd.f32 %v4862_v33, %v2668_v47  ;;  %v2670_v50 = vpop.f32.mrb[57].mxu1  ;;  %v3248_v51 = vpop.f32.mrb[57].mxu0 }
 0x28b   : > { %v2671_v52 = vpop.f32.mrb[58].mxu1  ;;  %v3249_v55 = vpop.f32.mrb[58].mxu0 }
 0x28c   : > { %v3900_v53 = vadd.f32 %v3899_v48, %v3246_v49  ;;  %v3901_v54 = vadd.f32 %v4862_v33, %v2671_v52  ;;  %v2673_v56 = vpop.f32.mrb[59].mxu1  ;;  %v3251_v57 = vpop.f32.mrb[59].mxu0 }
 0x28e   : > { %3417 = vst [vmem:[%s4873_s30 + $0xe0] sm:$0xff] %v3900_v53  ;;  %v3902_v58 = vadd.f32 %v3901_v54, %v3249_v55 }
 0x290   : > { %3418 = vst [vmem:[%s4873_s30 + $0xe8] sm:$0xff] %v3902_v58 }
 0x291   : > { %v2676_v59 = vpop.f32.mrb[60].mxu1  ;;  %v3254_v61 = vpop.f32.mrb[60].mxu0 }
 0x292   : > { %v3903_v60 = vadd.f32 %v4862_v33, %v2676_v59  ;;  %v2678_v62 = vpop.f32.mrb[61].mxu1  ;;  %v3256_v1 = vpop.f32.mrb[61].mxu0 }
 0x293   : > { %v2679_v63 = vpop.f32.mrb[62].mxu1  ;;  %v3257_v3 = vpop.f32.mrb[62].mxu0 }
 0x294   : > { %v3904_v0 = vadd.f32 %v3903_v60, %v3254_v61  ;;  %v3905_v2 = vadd.f32 %v4862_v33, %v2679_v63  ;;  %v2681_v4 = vpop.f32.mrb[63].mxu1  ;;  %v3259_v5 = vpop.f32.mrb[63].mxu0 }
 0x296   : > { %3419 = vst [vmem:[%s4873_s30 + $0xf0] sm:$0xff] %v3904_v0  ;;  %v3906_v6 = vadd.f32 %v3905_v2, %v3257_v3 }
 0x298   : > { %3420 = vst [vmem:[%s4873_s30 + $0xf8] sm:$0xff] %v3906_v6 }
 0x299   : > { %v2684_v7 = vpop.f32.mrb[64].mxu1  ;;  %v3262_v9 = vpop.f32.mrb[64].mxu0 }
 0x29a   : > { %v3907_v8 = vadd.f32 %v4862_v33, %v2684_v7  ;;  %v2686_v10 = vpop.f32.mrb[65].mxu1  ;;  %v3264_v11 = vpop.f32.mrb[65].mxu0 }
 0x29b   : > { %v2687_v12 = vpop.f32.mrb[66].mxu1  ;;  %v3265_v15 = vpop.f32.mrb[66].mxu0 }
 0x29c   : > { %v3908_v13 = vadd.f32 %v3907_v8, %v3262_v9  ;;  %v3909_v14 = vadd.f32 %v4862_v33, %v2687_v12  ;;  %v2689_v16 = vpop.f32.mrb[67].mxu1  ;;  %v3267_v17 = vpop.f32.mrb[67].mxu0 }
 0x29e   : > { %3421 = vst [vmem:[%s4873_s30 + $0x100] sm:$0xff] %v3908_v13  ;;  %v3910_v18 = vadd.f32 %v3909_v14, %v3265_v15 }
 0x2a0   : > { %3422 = vst [vmem:[%s4873_s30 + $0x108] sm:$0xff] %v3910_v18 }
 0x2a1   : > { %v2692_v19 = vpop.f32.mrb[68].mxu1  ;;  %v3270_v21 = vpop.f32.mrb[68].mxu0 }
 0x2a2   : > { %v3911_v20 = vadd.f32 %v4862_v33, %v2692_v19  ;;  %v2694_v22 = vpop.f32.mrb[69].mxu1  ;;  %v3272_v23 = vpop.f32.mrb[69].mxu0 }
 0x2a3   : > { %v2695_v24 = vpop.f32.mrb[70].mxu1  ;;  %v3273_v27 = vpop.f32.mrb[70].mxu0 }
 0x2a4   : > { %v3912_v25 = vadd.f32 %v3911_v20, %v3270_v21  ;;  %v3913_v26 = vadd.f32 %v4862_v33, %v2695_v24  ;;  %v2697_v28 = vpop.f32.mrb[71].mxu1  ;;  %v3275_v29 = vpop.f32.mrb[71].mxu0 }
 0x2a6   : > { %3423 = vst [vmem:[%s4873_s30 + $0x110] sm:$0xff] %v3912_v25  ;;  %v3914_v30 = vadd.f32 %v3913_v26, %v3273_v27 }
 0x2a8   : > { %3424 = vst [vmem:[%s4873_s30 + $0x118] sm:$0xff] %v3914_v30 }
 0x2a9   : > { %v2700_v31 = vpop.f32.mrb[72].mxu1  ;;  %v3278_v34 = vpop.f32.mrb[72].mxu0 }
 0x2aa   : > { %v3915_v32 = vadd.f32 %v4862_v33, %v2700_v31  ;;  %v2702_v35 = vpop.f32.mrb[73].mxu1  ;;  %v3280_v36 = vpop.f32.mrb[73].mxu0 }
 0x2ab   : > { %v2703_v37 = vpop.f32.mrb[74].mxu1  ;;  %v3281_v40 = vpop.f32.mrb[74].mxu0 }
 0x2ac   : > { %v3916_v38 = vadd.f32 %v3915_v32, %v3278_v34  ;;  %v3917_v39 = vadd.f32 %v4862_v33, %v2703_v37  ;;  %v2705_v41 = vpop.f32.mrb[75].mxu1  ;;  %v3283_v42 = vpop.f32.mrb[75].mxu0 }
 0x2ae   : > { %3425 = vst [vmem:[%s4873_s30 + $0x120] sm:$0xff] %v3916_v38  ;;  %v3918_v43 = vadd.f32 %v3917_v39, %v3281_v40 }
 0x2b0   : > { %3426 = vst [vmem:[%s4873_s30 + $0x128] sm:$0xff] %v3918_v43 }
 0x2b1   : > { %v2708_v44 = vpop.f32.mrb[76].mxu1  ;;  %v3286_v46 = vpop.f32.mrb[76].mxu0 }
 0x2b2   : > { %v3919_v45 = vadd.f32 %v4862_v33, %v2708_v44  ;;  %v2710_v47 = vpop.f32.mrb[77].mxu1  ;;  %v3288_v48 = vpop.f32.mrb[77].mxu0 }
 0x2b3   : > { %v2711_v49 = vpop.f32.mrb[78].mxu1  ;;  %v3289_v52 = vpop.f32.mrb[78].mxu0 }
 0x2b4   : > { %v3920_v50 = vadd.f32 %v3919_v45, %v3286_v46  ;;  %v3921_v51 = vadd.f32 %v4862_v33, %v2711_v49  ;;  %v2713_v53 = vpop.f32.mrb[79].mxu1  ;;  %v3291_v54 = vpop.f32.mrb[79].mxu0 }
 0x2b6   : > { %3427 = vst [vmem:[%s4873_s30 + $0x130] sm:$0xff] %v3920_v50  ;;  %v3922_v55 = vadd.f32 %v3921_v51, %v3289_v52 }
 0x2b8   : > { %3428 = vst [vmem:[%s4873_s30 + $0x138] sm:$0xff] %v3922_v55 }
 0x2b9   : > { %v2716_v56 = vpop.f32.mrb[80].mxu1  ;;  %v3294_v58 = vpop.f32.mrb[80].mxu0 }
 0x2ba   : > { %v3923_v57 = vadd.f32 %v4862_v33, %v2716_v56  ;;  %v2718_v59 = vpop.f32.mrb[81].mxu1  ;;  %v3296_v60 = vpop.f32.mrb[81].mxu0 }
 0x2bb   : > { %v2719_v61 = vpop.f32.mrb[82].mxu1  ;;  %v3297_v63 = vpop.f32.mrb[82].mxu0 }
 0x2bc   : > { %v3924_v62 = vadd.f32 %v3923_v57, %v3294_v58  ;;  %v3925_v1 = vadd.f32 %v4862_v33, %v2719_v61  ;;  %v2721_v0 = vpop.f32.mrb[83].mxu1  ;;  %v3299_v2 = vpop.f32.mrb[83].mxu0 }
 0x2be   : > { %3429 = vst [vmem:[%s4873_s30 + $0x140] sm:$0xff] %v3924_v62  ;;  %v3926_v3 = vadd.f32 %v3925_v1, %v3297_v63 }
 0x2c0   : > { %3430 = vst [vmem:[%s4873_s30 + $0x148] sm:$0xff] %v3926_v3 }
 0x2c1   : > { %v2724_v4 = vpop.f32.mrb[84].mxu1  ;;  %v3302_v6 = vpop.f32.mrb[84].mxu0 }
 0x2c2   : > { %v3927_v5 = vadd.f32 %v4862_v33, %v2724_v4  ;;  %v2726_v7 = vpop.f32.mrb[85].mxu1  ;;  %v3304_v8 = vpop.f32.mrb[85].mxu0 }
 0x2c3   : > { %v2727_v9 = vpop.f32.mrb[86].mxu1  ;;  %v3305_v12 = vpop.f32.mrb[86].mxu0 }
 0x2c4   : > { %v3928_v10 = vadd.f32 %v3927_v5, %v3302_v6  ;;  %v3929_v11 = vadd.f32 %v4862_v33, %v2727_v9  ;;  %v2729_v13 = vpop.f32.mrb[87].mxu1  ;;  %v3307_v14 = vpop.f32.mrb[87].mxu0 }
 0x2c6   : > { %3431 = vst [vmem:[%s4873_s30 + $0x150] sm:$0xff] %v3928_v10  ;;  %v3930_v15 = vadd.f32 %v3929_v11, %v3305_v12 }
 0x2c8   : > { %3432 = vst [vmem:[%s4873_s30 + $0x158] sm:$0xff] %v3930_v15 }
 0x2c9   : > { %v2732_v16 = vpop.f32.mrb[88].mxu1  ;;  %v3310_v18 = vpop.f32.mrb[88].mxu0 }
 0x2ca   : > { %v3931_v17 = vadd.f32 %v4862_v33, %v2732_v16  ;;  %v2734_v19 = vpop.f32.mrb[89].mxu1  ;;  %v3312_v20 = vpop.f32.mrb[89].mxu0 }
 0x2cb   : > { %v2735_v21 = vpop.f32.mrb[90].mxu1  ;;  %v3313_v24 = vpop.f32.mrb[90].mxu0 }
 0x2cc   : > { %v3932_v22 = vadd.f32 %v3931_v17, %v3310_v18  ;;  %v3933_v23 = vadd.f32 %v4862_v33, %v2735_v21  ;;  %v2737_v25 = vpop.f32.mrb[91].mxu1  ;;  %v3315_v26 = vpop.f32.mrb[91].mxu0 }
 0x2ce   : > { %3433 = vst [vmem:[%s4873_s30 + $0x160] sm:$0xff] %v3932_v22  ;;  %v3934_v27 = vadd.f32 %v3933_v23, %v3313_v24 }
 0x2d0   : > { %3434 = vst [vmem:[%s4873_s30 + $0x168] sm:$0xff] %v3934_v27 }
 0x2d1   : > { %v2740_v28 = vpop.f32.mrb[92].mxu1  ;;  %v3318_v30 = vpop.f32.mrb[92].mxu0 }
 0x2d2   : > { %v3935_v29 = vadd.f32 %v4862_v33, %v2740_v28  ;;  %v2742_v31 = vpop.f32.mrb[93].mxu1  ;;  %v3320_v32 = vpop.f32.mrb[93].mxu0 }
 0x2d3   : > { %v2743_v34 = vpop.f32.mrb[94].mxu1  ;;  %v3321_v37 = vpop.f32.mrb[94].mxu0 }
 0x2d4   : > { %v3936_v35 = vadd.f32 %v3935_v29, %v3318_v30  ;;  %v3937_v36 = vadd.f32 %v4862_v33, %v2743_v34  ;;  %v2745_v38 = vpop.f32.mrb[95].mxu1  ;;  %v3323_v39 = vpop.f32.mrb[95].mxu0 }
 0x2d6   : > { %3435 = vst [vmem:[%s4873_s30 + $0x170] sm:$0xff] %v3936_v35  ;;  %v3938_v40 = vadd.f32 %v3937_v36, %v3321_v37 }
 0x2d8   : > { %3436 = vst [vmem:[%s4873_s30 + $0x178] sm:$0xff] %v3938_v40 }
 0x2d9   : > { %v2748_v41 = vpop.f32.mrb[96].mxu1  ;;  %v3326_v43 = vpop.f32.mrb[96].mxu0 }
 0x2da   : > { %v3939_v42 = vadd.f32 %v4862_v33, %v2748_v41  ;;  %v2750_v44 = vpop.f32.mrb[97].mxu1  ;;  %v3328_v45 = vpop.f32.mrb[97].mxu0 }
 0x2db   : > { %v2751_v46 = vpop.f32.mrb[98].mxu1  ;;  %v3329_v49 = vpop.f32.mrb[98].mxu0 }
 0x2dc   : > { %v3940_v47 = vadd.f32 %v3939_v42, %v3326_v43  ;;  %v3941_v48 = vadd.f32 %v4862_v33, %v2751_v46  ;;  %v2753_v50 = vpop.f32.mrb[99].mxu1  ;;  %v3331_v51 = vpop.f32.mrb[99].mxu0 }
 0x2de   : > { %3437 = vst [vmem:[%s4873_s30 + $0x180] sm:$0xff] %v3940_v47  ;;  %v3942_v52 = vadd.f32 %v3941_v48, %v3329_v49 }
 0x2e0   : > { %3438 = vst [vmem:[%s4873_s30 + $0x188] sm:$0xff] %v3942_v52 }
 0x2e1   : > { %v2756_v53 = vpop.f32.mrb[100].mxu1  ;;  %v3334_v55 = vpop.f32.mrb[100].mxu0 }
 0x2e2   : > { %v3943_v54 = vadd.f32 %v4862_v33, %v2756_v53  ;;  %v2758_v56 = vpop.f32.mrb[101].mxu1  ;;  %v3336_v57 = vpop.f32.mrb[101].mxu0 }
 0x2e3   : > { %v2759_v58 = vpop.f32.mrb[102].mxu1  ;;  %v3337_v61 = vpop.f32.mrb[102].mxu0 }
 0x2e4   : > { %v3944_v59 = vadd.f32 %v3943_v54, %v3334_v55  ;;  %v3945_v60 = vadd.f32 %v4862_v33, %v2759_v58  ;;  %v2761_v62 = vpop.f32.mrb[103].mxu1  ;;  %v3339_v1 = vpop.f32.mrb[103].mxu0 }
 0x2e6   : > { %3439 = vst [vmem:[%s4873_s30 + $0x190] sm:$0xff] %v3944_v59  ;;  %v3946_v63 = vadd.f32 %v3945_v60, %v3337_v61 }
 0x2e8   : > { %3440 = vst [vmem:[%s4873_s30 + $0x198] sm:$0xff] %v3946_v63 }
 0x2e9   : > { %v2764_v0 = vpop.f32.mrb[104].mxu1  ;;  %v3342_v3 = vpop.f32.mrb[104].mxu0 }
 0x2ea   : > { %v3947_v2 = vadd.f32 %v4862_v33, %v2764_v0  ;;  %v2766_v4 = vpop.f32.mrb[105].mxu1  ;;  %v3344_v5 = vpop.f32.mrb[105].mxu0 }
 0x2eb   : > { %v2767_v6 = vpop.f32.mrb[106].mxu1  ;;  %v3345_v9 = vpop.f32.mrb[106].mxu0 }
 0x2ec   : > { %v3948_v7 = vadd.f32 %v3947_v2, %v3342_v3  ;;  %v3949_v8 = vadd.f32 %v4862_v33, %v2767_v6  ;;  %v2769_v10 = vpop.f32.mrb[107].mxu1  ;;  %v3347_v11 = vpop.f32.mrb[107].mxu0 }
 0x2ee   : > { %3441 = vst [vmem:[%s4873_s30 + $0x1a0] sm:$0xff] %v3948_v7  ;;  %v3950_v12 = vadd.f32 %v3949_v8, %v3345_v9 }
 0x2f0   : > { %3442 = vst [vmem:[%s4873_s30 + $0x1a8] sm:$0xff] %v3950_v12 }
 0x2f1   : > { %v2772_v13 = vpop.f32.mrb[108].mxu1  ;;  %v3350_v15 = vpop.f32.mrb[108].mxu0 }
 0x2f2   : > { %v3951_v14 = vadd.f32 %v4862_v33, %v2772_v13  ;;  %v2774_v16 = vpop.f32.mrb[109].mxu1  ;;  %v3352_v17 = vpop.f32.mrb[109].mxu0 }
 0x2f3   : > { %v2775_v18 = vpop.f32.mrb[110].mxu1  ;;  %v3353_v21 = vpop.f32.mrb[110].mxu0 }
 0x2f4   : > { %v3952_v19 = vadd.f32 %v3951_v14, %v3350_v15  ;;  %v3953_v20 = vadd.f32 %v4862_v33, %v2775_v18  ;;  %v2777_v22 = vpop.f32.mrb[111].mxu1  ;;  %v3355_v23 = vpop.f32.mrb[111].mxu0 }
 0x2f6   : > { %3443 = vst [vmem:[%s4873_s30 + $0x1b0] sm:$0xff] %v3952_v19  ;;  %v3954_v24 = vadd.f32 %v3953_v20, %v3353_v21 }
 0x2f8   : > { %3444 = vst [vmem:[%s4873_s30 + $0x1b8] sm:$0xff] %v3954_v24 }
 0x2f9   : > { %v2780_v25 = vpop.f32.mrb[112].mxu1  ;;  %v3358_v27 = vpop.f32.mrb[112].mxu0 }
 0x2fa   : > { %v3955_v26 = vadd.f32 %v4862_v33, %v2780_v25  ;;  %v2782_v28 = vpop.f32.mrb[113].mxu1  ;;  %v3360_v29 = vpop.f32.mrb[113].mxu0 }
 0x2fb   : > { %v2783_v30 = vpop.f32.mrb[114].mxu1  ;;  %v3361_v34 = vpop.f32.mrb[114].mxu0 }
 0x2fc   : > { %v3956_v31 = vadd.f32 %v3955_v26, %v3358_v27  ;;  %v3957_v32 = vadd.f32 %v4862_v33, %v2783_v30  ;;  %v2785_v35 = vpop.f32.mrb[115].mxu1  ;;  %v3363_v36 = vpop.f32.mrb[115].mxu0 }
 0x2fe   : > { %3445 = vst [vmem:[%s4873_s30 + $0x1c0] sm:$0xff] %v3956_v31  ;;  %v3958_v37 = vadd.f32 %v3957_v32, %v3361_v34 }
 0x300   : > { %3446 = vst [vmem:[%s4873_s30 + $0x1c8] sm:$0xff] %v3958_v37 }
 0x301   : > { %v2788_v38 = vpop.f32.mrb[116].mxu1  ;;  %v3366_v40 = vpop.f32.mrb[116].mxu0 }
 0x302   : > { %v3959_v39 = vadd.f32 %v4862_v33, %v2788_v38  ;;  %v2790_v41 = vpop.f32.mrb[117].mxu1  ;;  %v3368_v42 = vpop.f32.mrb[117].mxu0 }
 0x303   : > { %v2791_v43 = vpop.f32.mrb[118].mxu1  ;;  %v3369_v46 = vpop.f32.mrb[118].mxu0 }
 0x304   : > { %v3960_v44 = vadd.f32 %v3959_v39, %v3366_v40  ;;  %v3961_v45 = vadd.f32 %v4862_v33, %v2791_v43  ;;  %v2793_v47 = vpop.f32.mrb[119].mxu1  ;;  %v3371_v48 = vpop.f32.mrb[119].mxu0 }
 0x306   : > { %3447 = vst [vmem:[%s4873_s30 + $0x1d0] sm:$0xff] %v3960_v44  ;;  %v3962_v49 = vadd.f32 %v3961_v45, %v3369_v46 }
 0x308   : > { %3448 = vst [vmem:[%s4873_s30 + $0x1d8] sm:$0xff] %v3962_v49 }
 0x309   : > { %v2796_v50 = vpop.f32.mrb[120].mxu1  ;;  %v3374_v52 = vpop.f32.mrb[120].mxu0 }
 0x30a   : > { %v3963_v51 = vadd.f32 %v4862_v33, %v2796_v50  ;;  %v2798_v53 = vpop.f32.mrb[121].mxu1  ;;  %v3376_v54 = vpop.f32.mrb[121].mxu0 }
 0x30b   : > { %v2799_v55 = vpop.f32.mrb[122].mxu1  ;;  %v3377_v58 = vpop.f32.mrb[122].mxu0 }
 0x30c   : > { %v3964_v56 = vadd.f32 %v3963_v51, %v3374_v52  ;;  %v3965_v57 = vadd.f32 %v4862_v33, %v2799_v55  ;;  %v2801_v59 = vpop.f32.mrb[123].mxu1  ;;  %v3379_v60 = vpop.f32.mrb[123].mxu0 }
 0x30e   : > { %3449 = vst [vmem:[%s4873_s30 + $0x1e0] sm:$0xff] %v3964_v56  ;;  %v3966_v61 = vadd.f32 %v3965_v57, %v3377_v58 }
 0x310   : > { %3450 = vst [vmem:[%s4873_s30 + $0x1e8] sm:$0xff] %v3966_v61 }
 0x311   : > { %v2804_v62 = vpop.f32.mrb[124].mxu1  ;;  %v3382_v63 = vpop.f32.mrb[124].mxu0 }
 0x312   : > { %v3967_v1 = vadd.f32 %v4862_v33, %v2804_v62  ;;  %v2806_v0 = vpop.f32.mrb[125].mxu1  ;;  %v3384_v2 = vpop.f32.mrb[125].mxu0 }
 0x313   : > { %v2807_v3 = vpop.f32.mrb[126].mxu1  ;;  %v3385_v6 = vpop.f32.mrb[126].mxu0 }
 0x314   : > { %v3968_v4 = vadd.f32 %v3967_v1, %v3382_v63  ;;  %v3969_v5 = vadd.f32 %v4862_v33, %v2807_v3  ;;  %v2809_v7 = vpop.f32.mrb[127].mxu1  ;;  %v3387_v8 = vpop.f32.mrb[127].mxu0 }
 0x316   : > { %3451 = vst [vmem:[%s4873_s30 + $0x1f0] sm:$0xff] %v3968_v4  ;;  %v3970_v9 = vadd.f32 %v3969_v5, %v3385_v6 }
 0x318   : > { %3452 = vst [vmem:[%s4873_s30 + $0x1f8] sm:$0xff] %v3970_v9 }
 0x319 PF: > { %s13_s12 = sadd.s32 1, %s4306_s12  }
 0x31a   : > { %p10_p4 = scmp.ge.s32.totalorder %s13_s12, 4  }
 0x31c   :  { %12 = sbr.rel (!%p10_p4) target bundleno = 1 (0x1), region = 62 }

</bundles_post_ra>
